<compile_context>
chip_gen: v7x
topology: tpu7x:2x2x1
jax: 0.10.0
libtpu: 0.0.40
codegen_flags: <defaults>
</compile_context>

<pallas_src>
import functools

import jax
import jax.numpy as jnp
from jax.experimental import pallas as pl
from jax.experimental.pallas import tpu as pltpu

LN_EPS = 1e-5  # torch.nn.LayerNorm default


# ----------------------------- budget helpers --------------------------------

def _round_up(x, m):
    return ((x + m - 1) // m) * m


def _vmem_limit_bytes():
    """Generation-aware scoped-VMEM budget (v5e/v6e: 128 MiB, v7x: 64 MiB)."""
    cap = 64 * 1024 * 1024
    try:
        cap = int(pltpu.get_tpu_info().vmem_capacity_bytes)
    except Exception:
        pass
    return max(32 * 1024 * 1024, min(int(cap * 0.75), 100 * 1024 * 1024))


def _pick_batch_block(B, N, D, F, nh, vmem_limit):
    """Largest batch block that (a) fits an activation/temporary budget of
    ~1/3 of VMEM (the rest is for double-buffered streamed weights) and
    (b) leaves >= 2 parallel grid points when B > 1 (v7x has 2 TCs)."""
    if B <= 1:
        return 1
    per_row = 4 * (4 * N * D + max(3 * N * D, N * F) + 2 * nh * N * N)
    cap = max(1, (vmem_limit // 3) // max(per_row, 1))
    best = 1
    for bt in range(1, B + 1):
        if B % bt == 0 and bt <= cap and B // bt >= 2:
            best = bt
    return best


# ------------------------------ in-kernel math --------------------------------

def _layer_norm(x, g, b):
    mu = jnp.mean(x, axis=-1, keepdims=True)
    var = jnp.mean((x - mu) ** 2, axis=-1, keepdims=True)
    return (x - mu) * jax.lax.rsqrt(var + LN_EPS) * g + b


# Abramowitz & Stegun 7.1.26 erf approximation (|err| < 1.5e-7): matches
# PyTorch's exact erf GELU to f32 noise using only exp / mul / div / select.
_A1, _A2, _A3, _A4, _A5 = 0.254829592, -0.284496736, 1.421413741, -1.453152027, 1.061405429
_ERF_P = 0.3275911
_INV_SQRT2 = 0.7071067811865476


def _erf(z):
    a = jnp.abs(z)
    t = 1.0 / (1.0 + _ERF_P * a)
    poly = ((((_A5 * t + _A4) * t + _A3) * t + _A2) * t + _A1) * t
    e = 1.0 - poly * jnp.exp(-a * a)
    return jnp.where(z < 0, -e, e)


def _gelu(x):
    return 0.5 * x * (1.0 + _erf(x * _INV_SQRT2))


def _mha(q, k, v, bt, num_heads, wo, bo):
    """Multi-head attention core.

    q: (bt*Sq, D) f32 (1/sqrt(dh) already folded into the Q projection),
    k, v: (bt*Sk, D) f32, wo: (D, D) bf16.  Returns (bt*Sq, D) f32.
    """
    rows_q, d = q.shape
    sq = rows_q // bt
    sk = k.shape[0] // bt
    dh = d // num_heads
    bf = jnp.bfloat16

    def split(t, s):
        # (bt*s, D) -> (bt*nh, s, dh) via static lane/sublane slices.
        return jnp.stack(
            [t[b * s:(b + 1) * s, h * dh:(h + 1) * dh]
             for b in range(bt) for h in range(num_heads)],
            axis=0).astype(bf)

    qh, kh, vh = split(q, sq), split(k, sk), split(v, sk)
    # TODO(synk): for large images (S >~ 512) tile the (bt*nh, S, S) score/prob
    # temporaries flash-style over KV chunks to bound VMEM.
    s = jax.lax.dot_general(qh, kh, (((2,), (2,)), ((0,), (0,))),
                            preferred_element_type=jnp.float32)      # (bt*nh,Sq,Sk)
    s = s - jnp.max(s, axis=-1, keepdims=True)
    p = jnp.exp(s)
    p = p / jnp.sum(p, axis=-1, keepdims=True)                        # exact softmax
    ctx = jax.lax.dot_general(p.astype(bf), vh, (((2,), (1,)), ((0,), (0,))),
                              preferred_element_type=jnp.float32)     # (bt*nh,Sq,dh)
    # Merge heads back to (bt*Sq, D) and run ONE full-width output projection.
    merged = jnp.concatenate(
        [jnp.concatenate([ctx[b * num_heads + h] for h in range(num_heads)], axis=-1)
         for b in range(bt)], axis=0)                                 # (bt*Sq, D)
    return jnp.dot(merged.astype(bf), wo, preferred_element_type=jnp.float32) + bo


def _self_attn(x2, bt, num_heads, wqkv, bqkv, wo, bo):
    """Self-attention with fused QKV projection: one (rows,D)@(D,3D) matmul."""
    d = x2.shape[-1]
    qkv = jnp.dot(x2.astype(jnp.bfloat16), wqkv,
                  preferred_element_type=jnp.float32) + bqkv          # (rows, 3D)
    return _mha(qkv[:, :d], qkv[:, d:2 * d], qkv[:, 2 * d:], bt, num_heads, wo, bo)


def _cross_attn(q_in, kv_in, bt, num_heads, wq, bq, wkv, bkv, wo, bo):
    """Cross-attention with fused KV projection: one (rows,D)@(D,2D) matmul."""
    d = q_in.shape[-1]
    q = jnp.dot(q_in.astype(jnp.bfloat16), wq,
                preferred_element_type=jnp.float32) + bq
    kv = jnp.dot(kv_in.astype(jnp.bfloat16), wkv,
                 preferred_element_type=jnp.float32) + bkv
    return _mha(q, kv[:, :d], kv[:, d:], bt, num_heads, wo, bo)


def _ffn(x, w1, b1, w2, b2):
    h = _gelu(jnp.dot(x.astype(jnp.bfloat16), w1,
                      preferred_element_type=jnp.float32) + b1)
    return jnp.dot(h.astype(jnp.bfloat16), w2,
                   preferred_element_type=jnp.float32) + b2


# --------------------------------- kernels ------------------------------------

def _frontend_kernel(patches_ref, pe_w, pe_b, pos, o_ref):
    """Patch embedding + learned positional embedding (prologue kernel)."""
    bt, n, k = patches_ref.shape
    d = pe_w.shape[-1]
    x = jnp.dot(patches_ref[...].reshape(bt * n, k), pe_w[...],
                preferred_element_type=jnp.float32) + pe_b[...]       # (bt*n, D)
    pos_b = pos[...] if bt == 1 else jnp.concatenate([pos[...]] * bt, axis=0)
    o_ref[...] = (x + pos_b).reshape(bt, n, d)


def _encoder_stack_kernel(num_heads,
                          emb_ref,
                          ln1_g, ln1_b, wqkv, bqkv, wo, bo,
                          ln2_g, ln2_b, w1, b1, w2, b2,
                          lnf_g, lnf_b,
                          o_ref, act_ref):
    """grid=(B//Bt, L). One pre-LN transformer layer per step; the (Bt*N, D)
    activation stays resident in VMEM across the layer ("arbitrary") axis."""
    l = pl.program_id(1)
    bt, n, d = emb_ref.shape

    @pl.when(l == 0)
    def _():
        act_ref[...] = emb_ref[...].reshape(bt * n, d)

    x = act_ref[...]                                                   # (Bt*N, D) f32
    h = _layer_norm(x, ln1_g[0], ln1_b[0])
    x = x + _self_attn(h, bt, num_heads, wqkv[0], bqkv[0], wo[0], bo[0])
    h = _layer_norm(x, ln2_g[0], ln2_b[0])
    x = x + _ffn(h, w1[0], b1[0], w2[0], b2[0])
    act_ref[...] = x

    # final encoder LayerNorm fused into the last layer's epilogue; bf16 out.
    @pl.when(l == pl.num_programs(1) - 1)
    def _():
        o_ref[...] = _layer_norm(x, lnf_g[...], lnf_b[...]).reshape(
            bt, n, d).astype(o_ref.dtype)


def _pooler_head_kernel(num_heads,
                        qtok_ref, enc_ref,
                        lnc_g, lnc_b, wq, bq, wkv, bkv, wo, bo,
                        lnf_g, lnf_b, w1, b1, w2, b2,
                        hw, hb, o_ref):
    """AttentivePooler (CrossAttentionDecoderLayer) + classification head.

    Matches fairseq2: LayerNorm is applied to the K/V source only, the query
    tokens stay raw and provide the residual."""
    bt, n, d = enc_ref.shape
    enc = enc_ref[...].astype(jnp.float32).reshape(bt * n, d)
    enc_n = _layer_norm(enc, lnc_g[...], lnc_b[...])

    qtok = qtok_ref[0]                                                 # (Q=1, D)
    qtok_b = qtok if bt == 1 else jnp.concatenate([qtok] * bt, axis=0)  # (bt, D)

    x = qtok_b + _cross_attn(qtok_b, enc_n, bt, num_heads,
                             wq[...], bq[...], wkv[...], bkv[...],
                             wo[...], bo[...])
    h = _layer_norm(x, lnf_g[...], lnf_b[...])
    x = x + _ffn(h, w1[...], b1[...], w2[...], b2[...])
    logits = jnp.dot(x.astype(jnp.bfloat16), hw[...],
                     preferred_element_type=jnp.float32) + hb[...]     # (bt, NCp)
    o_ref[...] = logits.reshape(bt, 1, -1)


# ------------------------------ spec helpers -----------------------------------

def shared1(shape):
    z = (0,) * len(shape)
    return pl.BlockSpec(tuple(shape), lambda b: z)


def shared2(shape):
    z = (0,) * len(shape)
    return pl.BlockSpec(tuple(shape), lambda b, l: z)


def layer2(shape):
    z = (0,) * len(shape)
    return pl.BlockSpec((1,) + tuple(shape), lambda b, l: (l,) + z)


# ------------------------------- model forward ---------------------------------

def jepa_classifier_forward(x, packed, cfg):
    B, C, H, W = x.shape
    P, D, nh, F = cfg["patch"], cfg["model_dim"], cfg["num_heads"], cfg["ffn_dim"]
    Q, NC, L = cfg["num_queries"], cfg["num_classes"], cfg["num_layers"]
    assert Q == 1, "JepaClassifierModel.forward squeezes the query dim (num_queries == 1)"
    N = (H // P) * (W // P)
    K = C * P * P
    NCp = packed["head"]["w"].shape[1]

    vmem_limit = _vmem_limit_bytes()
    Bt = _pick_batch_block(B, N, D, F, nh, vmem_limit)
    nb = B // Bt

    # NCHW -> patch rows (glue); bf16 halves the input DMA and feeds the MXU.
    patches = (x.reshape(B, C, H // P, P, W // P, P)
                 .transpose(0, 2, 4, 1, 3, 5)
                 .reshape(B, N, K)).astype(jnp.bfloat16)

    # --- prologue: patch embedding + positional embedding --------------------
    fe = packed["frontend"]
    embedded = pl.pallas_call(
        _frontend_kernel,
        grid=(nb,),
        in_specs=[
            pl.BlockSpec((Bt, N, K), lambda b: (b, 0, 0)),
            shared1((K, D)), shared1((1, D)), shared1((N, D)),
        ],
        out_specs=pl.BlockSpec((Bt, N, D), lambda b: (b, 0, 0)),
        out_shape=jax.ShapeDtypeStruct((B, N, D), jnp.float32),
        compiler_params=pltpu.CompilerParams(
            dimension_semantics=("parallel",), vmem_limit_bytes=vmem_limit),
    )(patches, fe["w"], fe["b"], fe["pos"])

    # --- encoder stack + final LN: one (B//Bt, L)-grid pallas_call ------------
    # TODO(synk): at ViT-H scale on v7x (64 MiB VMEM) split w1/w2 along F with an
    # inner "arbitrary" axis (chunked GELU + accumulate) or Buffered(1) the two
    # largest weight specs; unnecessary at these shapes.
    enc = packed["encoder"]
    enc_out = pl.pallas_call(
        functools.partial(_encoder_stack_kernel, nh),
        grid=(nb, L),
        in_specs=[
            pl.BlockSpec((Bt, N, D), lambda b, l: (b, 0, 0)),        # embedded
            layer2((1, D)), layer2((1, D)),                          # ln1
            layer2((D, 3 * D)), layer2((1, 3 * D)),                  # fused qkv
            layer2((D, D)), layer2((1, D)),                          # out proj
            layer2((1, D)), layer2((1, D)),                          # ln2
            layer2((D, F)), layer2((1, F)),                          # ffn inner
            layer2((F, D)), layer2((1, D)),                          # ffn outer
            shared2((1, D)), shared2((1, D)),                        # final LN
        ],
        out_specs=pl.BlockSpec((Bt, N, D), lambda b, l: (b, 0, 0)),
        out_shape=jax.ShapeDtypeStruct((B, N, D), jnp.bfloat16),
        scratch_shapes=[pltpu.VMEM((Bt * N, D), jnp.float32)],
        compiler_params=pltpu.CompilerParams(
            dimension_semantics=("parallel", "arbitrary"),
            vmem_limit_bytes=vmem_limit),
    )(embedded,
      enc["ln1_g"], enc["ln1_b"], enc["wqkv"], enc["bqkv"], enc["wo"], enc["bo"],
      enc["ln2_g"], enc["ln2_b"], enc["w1"], enc["b1"], enc["w2"], enc["b2"],
      enc["lnf_g"], enc["lnf_b"])

    # --- attentive pooler + classification head (lane-dense padded output) ---
    pp, hd = packed["pooler"], packed["head"]
    logits = pl.pallas_call(
        functools.partial(_pooler_head_kernel, nh),
        grid=(nb,),
        in_specs=[
            shared1((1, Q, D)),
            pl.BlockSpec((Bt, N, D), lambda b: (b, 0, 0)),
            shared1((1, D)), shared1((1, D)),                        # cross-attn LN
            shared1((D, D)), shared1((1, D)),                        # q proj (scaled)
            shared1((D, 2 * D)), shared1((1, 2 * D)),                # fused kv proj
            shared1((D, D)), shared1((1, D)),                        # out proj
            shared1((1, D)), shared1((1, D)),                        # ffn LN
            shared1((D, F)), shared1((1, F)),
            shared1((F, D)), shared1((1, D)),
            shared1((D, NCp)), shared1((1, NCp)),                    # head_proj (padded)
        ],
        out_specs=pl.BlockSpec((Bt, 1, NCp), lambda b: (b, 0, 0)),
        out_shape=jax.ShapeDtypeStruct((B, 1, NCp), jnp.float32),
        compiler_params=pltpu.CompilerParams(
            dimension_semantics=("parallel",), vmem_limit_bytes=vmem_limit),
    )(pp["query_tokens"], enc_out,
      pp["lnc_g"], pp["lnc_b"], pp["wq"], pp["bq"], pp["wkv"], pp["bkv"],
      pp["wo"], pp["bo"], pp["lnf_g"], pp["lnf_b"],
      pp["w1"], pp["b1"], pp["w2"], pp["b2"], hd["w"], hd["b"])

    # seqs.squeeze(1) + strip the lane padding of the class dim.
    return logits.reshape(B, NCp)[:, :NC]


# ------------------------------- parameters ------------------------------------

def init_params(key, cfg):
    """PyTorch-shaped ("logical") parameters (synthetic)."""
    D, F, P = cfg["model_dim"], cfg["ffn_dim"], cfg["patch"]
    C, N = cfg["in_channels"], cfg["num_patches"]
    Q, NC = cfg["num_queries"], cfg["num_classes"]
    K = C * P * P
    std = 0.02  # matches trunc_normal_(std=init_std); plain normal here (synthetic)

    keys = iter(jax.random.split(key, 64))

    def w(shape):
        return std * jax.random.normal(next(keys), shape, dtype=jnp.float32)

    def zeros(shape):
        return jnp.zeros(shape, jnp.float32)

    def ones(shape):
        return jnp.ones(shape, jnp.float32)

    def attn_ffn_block():
        return {
            "wq": w((D, D)), "bq": zeros((1, D)),
            "wk": w((D, D)), "bk": zeros((1, D)),
            "wv": w((D, D)), "bv": zeros((1, D)),
            "wo": w((D, D)), "bo": zeros((1, D)),
            "w1": w((D, F)), "b1": zeros((1, F)),
            "w2": w((F, D)), "b2": zeros((1, D)),
        }

    params = {
        "frontend": {"w": w((K, D)), "b": zeros((1, D)), "pos": w((N, D))},
        "encoder_layers": [],
        "encoder_ln_g": ones((1, D)), "encoder_ln_b": zeros((1, D)),
        "pooler": dict(
            query_tokens=w((1, Q, D)),
            lnc_g=ones((1, D)), lnc_b=zeros((1, D)),
            lnf_g=ones((1, D)), lnf_b=zeros((1, D)),
            **attn_ffn_block(),
        ),
        "head": {"w": w((D, NC)), "b": zeros((1, NC))},
    }
    for _ in range(cfg["num_layers"]):
        params["encoder_layers"].append(dict(
            ln1_g=ones((1, D)), ln1_b=zeros((1, D)),
            ln2_g=ones((1, D)), ln2_b=zeros((1, D)),
            **attn_ffn_block(),
        ))
    return params


def pack_params(params, cfg):
    """Kernel-ready params: bf16 weights, fused QKV/KV, softmax scale folded
    into the Q projection, layers stacked on a leading axis, head padded to a
    128-lane multiple."""
    D, nh, NC = cfg["model_dim"], cfg["num_heads"], cfg["num_classes"]
    dh = D // nh
    scale = 1.0 / (dh ** 0.5)
    bf = jnp.bfloat16
    layers = params["encoder_layers"]
    NCp = _round_up(NC, 128)

    def stack(name):
        return jnp.stack([lp[name] for lp in layers])

    fe = params["frontend"]
    frontend = {"w": fe["w"].astype(bf), "b": fe["b"], "pos": fe["pos"]}

    enc = {
        "ln1_g": stack("ln1_g"), "ln1_b": stack("ln1_b"),
        "wqkv": jnp.stack([jnp.concatenate(
            [lp["wq"] * scale, lp["wk"], lp["wv"]], axis=1) for lp in layers]).astype(bf),
        "bqkv": jnp.stack([jnp.concatenate(
            [lp["bq"] * scale, lp["bk"], lp["bv"]], axis=1) for lp in layers]),
        "wo": stack("wo").astype(bf), "bo": stack("bo"),
        "ln2_g": stack("ln2_g"), "ln2_b": stack("ln2_b"),
        "w1": stack("w1").astype(bf), "b1": stack("b1"),
        "w2": stack("w2").astype(bf), "b2": stack("b2"),
        "lnf_g": params["encoder_ln_g"], "lnf_b": params["encoder_ln_b"],
    }

    pp = params["pooler"]
    pooler = {
        "query_tokens": pp["query_tokens"],
        "lnc_g": pp["lnc_g"], "lnc_b": pp["lnc_b"],
        "wq": (pp["wq"] * scale).astype(bf), "bq": pp["bq"] * scale,
        "wkv": jnp.concatenate([pp["wk"], pp["wv"]], axis=1).astype(bf),
        "bkv": jnp.concatenate([pp["bk"], pp["bv"]], axis=1),
        "wo": pp["wo"].astype(bf), "bo": pp["bo"],
        "lnf_g": pp["lnf_g"], "lnf_b": pp["lnf_b"],
        "w1": pp["w1"].astype(bf), "b1": pp["b1"],
        "w2": pp["w2"].astype(bf), "b2": pp["b2"],
    }

    head = {
        "w": jnp.pad(params["head"]["w"], ((0, 0), (0, NCp - NC))).astype(bf),
        "b": jnp.pad(params["head"]["b"], ((0, 0), (0, NCp - NC))),
    }
    return {"frontend": frontend, "encoder": enc, "pooler": pooler, "head": head}


# ----------------------------------- main ---------------------------------------

if __name__ == "__main__":
    B, C, H, W, P = 2, 3, 16, 16, 4
    cfg = dict(
        model_dim=32, num_heads=4, ffn_dim=128, num_layers=2,
        patch=P, in_channels=C, num_patches=(H // P) * (W // P),
        num_queries=1, num_classes=10,
    )
    key = jax.random.PRNGKey(0)
    pkey, xkey = jax.random.split(key)
    params = init_params(pkey, cfg)
    packed = pack_params(params, cfg)
    x = jax.random.normal(xkey, (B, C, H, W), dtype=jnp.float32)  # NCHW like PyTorch

    fwd = jax.jit(lambda xx, pp: jepa_classifier_forward(xx, pp, cfg))
    logits = jax.block_until_ready(fwd(x, packed))
    assert logits.shape == (B, cfg["num_classes"])
    assert bool(jnp.all(jnp.isfinite(logits)))
    print("KERNEL_OK")
</pallas_src>

<mosaic_0001>
module attributes {stable_mosaic.version = 11 : i64} {
  func.func @_frontend_kernel(%arg0: i32, %arg1: memref<1x16x48xbf16, #tpu.memory_space<vmem>>, %arg2: memref<48x32xbf16, #tpu.memory_space<vmem>>, %arg3: memref<1x32xf32, #tpu.memory_space<vmem>>, %arg4: memref<16x32xf32, #tpu.memory_space<vmem>>, %arg5: memref<1x16x32xf32, #tpu.memory_space<vmem>>) attributes {dimension_semantics = [#tpu.dimension_semantics<parallel>], iteration_bounds = array<i64: 2>, scalar_prefetch = 0 : i64, scratch_operands = 0 : i64, tpu.core_type = #tpu.core_type<tc>, window_params = [{transform_indices = @transform_0, window_bounds = array<i64: 1, 16, 48>}, {pipeline_mode = #tpu.pipeline_mode<synchronous>, transform_indices = @transform_1, window_bounds = array<i64: 48, 32>}, {pipeline_mode = #tpu.pipeline_mode<synchronous>, transform_indices = @transform_2, window_bounds = array<i64: 1, 32>}, {pipeline_mode = #tpu.pipeline_mode<synchronous>, transform_indices = @transform_3, window_bounds = array<i64: 16, 32>}, {transform_indices = @transform_4, window_bounds = array<i64: 1, 16, 32>}]} {
    %c0 = arith.constant 0 : index
    %c0_0 = arith.constant 0 : index
    %c0_1 = arith.constant 0 : index
    %0 = vector.load %arg1[%c0, %c0_0, %c0_1] : memref<1x16x48xbf16, #tpu.memory_space<vmem>>, vector<1x16x48xbf16>
    %1 = vector.shape_cast %0 : vector<1x16x48xbf16> to vector<16x48xbf16>
    %c0_2 = arith.constant 0 : index
    %c0_3 = arith.constant 0 : index
    %2 = vector.load %arg2[%c0_2, %c0_3] : memref<48x32xbf16, #tpu.memory_space<vmem>>, vector<48x32xbf16>
    %cst = arith.constant dense<0.000000e+00> : vector<16x32xf32>
    %3 = tpu.matmul %1, %2, %cst {dimension_numbers = #tpu.dot_dimension_numbers<[1], [0], [0], [1], [0, 0, 1, 1], [], []>} : vector<16x48xbf16>, vector<48x32xbf16>, vector<16x32xf32> -> vector<16x32xf32>
    %c0_4 = arith.constant 0 : index
    %c0_5 = arith.constant 0 : index
    %4 = vector.load %arg3[%c0_4, %c0_5] : memref<1x32xf32, #tpu.memory_space<vmem>>, vector<1x32xf32>
    %5 = vector.broadcast %4 : vector<1x32xf32> to vector<16x32xf32>
    %6 = arith.addf %3, %5 : vector<16x32xf32>
    %c0_6 = arith.constant 0 : index
    %c0_7 = arith.constant 0 : index
    %7 = vector.load %arg4[%c0_6, %c0_7] : memref<16x32xf32, #tpu.memory_space<vmem>>, vector<16x32xf32>
    %8 = arith.addf %6, %7 : vector<16x32xf32>
    %9 = vector.shape_cast %8 : vector<16x32xf32> to vector<1x16x32xf32>
    %c0_8 = arith.constant 0 : index
    %c0_9 = arith.constant 0 : index
    %c0_10 = arith.constant 0 : index
    %10 = vector.load %arg5[%c0_8, %c0_9, %c0_10] : memref<1x16x32xf32, #tpu.memory_space<vmem>>, vector<1x16x32xf32>
    tpu.vector_store %arg5[%c0_8, %c0_9, %c0_10], %9 {strides = array<i32>} : memref<1x16x32xf32, #tpu.memory_space<vmem>>, vector<1x16x32xf32>,
    return
  }
  func.func @transform_0(%arg0: i32) -> (i32, i32, i32) {
    %c0_i32 = arith.constant 0 : i32
    %c0_i32_0 = arith.constant 0 : i32
    %c0_i32_1 = arith.constant 0 : i32
    return %arg0, %c0_i32, %c0_i32_0 : i32, i32, i32
  }
  func.func @transform_1(%arg0: i32) -> (i32, i32) {
    %c0_i32 = arith.constant 0 : i32
    %c0_i32_0 = arith.constant 0 : i32
    %c0_i32_1 = arith.constant 0 : i32
    return %c0_i32, %c0_i32_0 : i32, i32
  }
  func.func @transform_2(%arg0: i32) -> (i32, i32) {
    %c0_i32 = arith.constant 0 : i32
    %c0_i32_0 = arith.constant 0 : i32
    %c0_i32_1 = arith.constant 0 : i32
    return %c0_i32, %c0_i32_0 : i32, i32
  }
  func.func @transform_3(%arg0: i32) -> (i32, i32) {
    %c0_i32 = arith.constant 0 : i32
    %c0_i32_0 = arith.constant 0 : i32
    %c0_i32_1 = arith.constant 0 : i32
    return %c0_i32, %c0_i32_0 : i32, i32
  }
  func.func @transform_4(%arg0: i32) -> (i32, i32, i32) {
    %c0_i32 = arith.constant 0 : i32
    %c0_i32_0 = arith.constant 0 : i32
    %c0_i32_1 = arith.constant 0 : i32
    return %arg0, %c0_i32, %c0_i32_0 : i32, i32, i32
  }
}

module attributes {stable_mosaic.version = 11 : i64} {
  func.func @_encoder_stack_kernel(%arg0: i32, %arg1: i32, %arg2: memref<1x16x32xf32, #tpu.memory_space<vmem>>, %arg3: memref<1x1x32xf32, #tpu.memory_space<vmem>>, %arg4: memref<1x1x32xf32, #tpu.memory_space<vmem>>, %arg5: memref<1x32x96xbf16, #tpu.memory_space<vmem>>, %arg6: memref<1x1x96xf32, #tpu.memory_space<vmem>>, %arg7: memref<1x32x32xbf16, #tpu.memory_space<vmem>>, %arg8: memref<1x1x32xf32, #tpu.memory_space<vmem>>, %arg9: memref<1x1x32xf32, #tpu.memory_space<vmem>>, %arg10: memref<1x1x32xf32, #tpu.memory_space<vmem>>, %arg11: memref<1x32x128xbf16, #tpu.memory_space<vmem>>, %arg12: memref<1x1x128xf32, #tpu.memory_space<vmem>>, %arg13: memref<1x128x32xbf16, #tpu.memory_space<vmem>>, %arg14: memref<1x1x32xf32, #tpu.memory_space<vmem>>, %arg15: memref<1x32xf32, #tpu.memory_space<vmem>>, %arg16: memref<1x32xf32, #tpu.memory_space<vmem>>, %arg17: memref<1x16x32xbf16, #tpu.memory_space<vmem>>, %arg18: memref<16x32xf32, #tpu.memory_space<vmem>>) attributes {dimension_semantics = [#tpu.dimension_semantics<parallel>, #tpu.dimension_semantics<arbitrary>], iteration_bounds = array<i64: 2, 2>, scalar_prefetch = 0 : i64, scratch_operands = 1 : i64, tpu.core_type = #tpu.core_type<tc>, window_params = [{transform_indices = @transform_0, window_bounds = array<i64: 1, 16, 32>}, {transform_indices = @transform_1, window_bounds = array<i64: 1, 1, 32>}, {transform_indices = @transform_2, window_bounds = array<i64: 1, 1, 32>}, {transform_indices = @transform_3, window_bounds = array<i64: 1, 32, 96>}, {transform_indices = @transform_4, window_bounds = array<i64: 1, 1, 96>}, {transform_indices = @transform_5, window_bounds = array<i64: 1, 32, 32>}, {transform_indices = @transform_6, window_bounds = array<i64: 1, 1, 32>}, {transform_indices = @transform_7, window_bounds = array<i64: 1, 1, 32>}, {transform_indices = @transform_8, window_bounds = array<i64: 1, 1, 32>}, {transform_indices = @transform_9, window_bounds = array<i64: 1, 32, 128>}, {transform_indices = @transform_10, window_bounds = array<i64: 1, 1, 128>}, {transform_indices = @transform_11, window_bounds = array<i64: 1, 128, 32>}, {transform_indices = @transform_12, window_bounds = array<i64: 1, 1, 32>}, {pipeline_mode = #tpu.pipeline_mode<synchronous>, transform_indices = @transform_13, window_bounds = array<i64: 1, 32>}, {pipeline_mode = #tpu.pipeline_mode<synchronous>, transform_indices = @transform_14, window_bounds = array<i64: 1, 32>}, {transform_indices = @transform_15, window_bounds = array<i64: 1, 16, 32>}]} {
    %c0_i32 = arith.constant 0 : i32
    %0 = arith.cmpi eq, %arg1, %c0_i32 : i32
    %1 = arith.extui %0 : i1 to i32
    %c0_i32_0 = arith.constant 0 : i32
    %2 = arith.cmpi ne, %1, %c0_i32_0 : i32
    scf.if %2 {
      %c0_73 = arith.constant 0 : index
      %c0_74 = arith.constant 0 : index
      %c0_75 = arith.constant 0 : index
      %188 = vector.load %arg2[%c0_73, %c0_74, %c0_75] : memref<1x16x32xf32, #tpu.memory_space<vmem>>, vector<1x16x32xf32>
      %189 = vector.shape_cast %188 : vector<1x16x32xf32> to vector<16x32xf32>
      %c0_76 = arith.constant 0 : index
      %c0_77 = arith.constant 0 : index
      %190 = vector.load %arg18[%c0_76, %c0_77] : memref<16x32xf32, #tpu.memory_space<vmem>>, vector<16x32xf32>
      tpu.vector_store %arg18[%c0_76, %c0_77], %189 {strides = array<i32>} : memref<16x32xf32, #tpu.memory_space<vmem>>, vector<16x32xf32>,
    } else {
    }
    %c0 = arith.constant 0 : index
    %c0_1 = arith.constant 0 : index
    %3 = vector.load %arg18[%c0, %c0_1] : memref<16x32xf32, #tpu.memory_space<vmem>>, vector<16x32xf32>
    %c0_2 = arith.constant 0 : index
    %c0_3 = arith.constant 0 : index
    %c0_4 = arith.constant 0 : index
    %4 = vector.load %arg3[%c0_2, %c0_3, %c0_4] : memref<1x1x32xf32, #tpu.memory_space<vmem>>, vector<1x1x32xf32>
    %5 = vector.shape_cast %4 : vector<1x1x32xf32> to vector<1x32xf32>
    %c0_5 = arith.constant 0 : index
    %c0_6 = arith.constant 0 : index
    %c0_7 = arith.constant 0 : index
    %6 = vector.load %arg4[%c0_5, %c0_6, %c0_7] : memref<1x1x32xf32, #tpu.memory_space<vmem>>, vector<1x1x32xf32>
    %7 = vector.shape_cast %6 : vector<1x1x32xf32> to vector<1x32xf32>
    %cst = arith.constant dense<0.000000e+00> : vector<16xf32>
    %8 = vector.multi_reduction <add>, %3, %cst [1] : vector<16x32xf32> to vector<16xf32>
    %9 = vector.shape_cast %8 : vector<16xf32> to vector<16x1xf32>
    %cst_8 = arith.constant 3.200000e+01 : f32
    %10 = vector.broadcast %cst_8 : f32 to vector<16x1xf32>
    %11 = arith.divf %9, %10 : vector<16x1xf32>
    %12 = vector.broadcast %11 : vector<16x1xf32> to vector<16x32xf32>
    %13 = arith.subf %3, %12 : vector<16x32xf32>
    %14 = arith.mulf %13, %13 : vector<16x32xf32>
    %cst_9 = arith.constant dense<0.000000e+00> : vector<16xf32>
    %15 = vector.multi_reduction <add>, %14, %cst_9 [1] : vector<16x32xf32> to vector<16xf32>
    %16 = vector.shape_cast %15 : vector<16xf32> to vector<16x1xf32>
    %cst_10 = arith.constant 3.200000e+01 : f32
    %17 = vector.broadcast %cst_10 : f32 to vector<16x1xf32>
    %18 = arith.divf %16, %17 : vector<16x1xf32>
    %19 = vector.broadcast %11 : vector<16x1xf32> to vector<16x32xf32>
    %20 = arith.subf %3, %19 : vector<16x32xf32>
    %cst_11 = arith.constant 9.99999974E-6 : f32
    %21 = vector.broadcast %cst_11 : f32 to vector<16x1xf32>
    %22 = arith.addf %18, %21 : vector<16x1xf32>
    %23 = math.rsqrt %22 : vector<16x1xf32>
    %24 = vector.broadcast %23 : vector<16x1xf32> to vector<16x32xf32>
    %25 = arith.mulf %20, %24 : vector<16x32xf32>
    %26 = vector.broadcast %5 : vector<1x32xf32> to vector<16x32xf32>
    %27 = arith.mulf %25, %26 : vector<16x32xf32>
    %28 = vector.broadcast %7 : vector<1x32xf32> to vector<16x32xf32>
    %29 = arith.addf %27, %28 : vector<16x32xf32>
    %c0_12 = arith.constant 0 : index
    %c0_13 = arith.constant 0 : index
    %c0_14 = arith.constant 0 : index
    %30 = vector.load %arg5[%c0_12, %c0_13, %c0_14] : memref<1x32x96xbf16, #tpu.memory_space<vmem>>, vector<1x32x96xbf16>
    %31 = vector.shape_cast %30 : vector<1x32x96xbf16> to vector<32x96xbf16>
    %c0_15 = arith.constant 0 : index
    %c0_16 = arith.constant 0 : index
    %c0_17 = arith.constant 0 : index
    %32 = vector.load %arg6[%c0_15, %c0_16, %c0_17] : memref<1x1x96xf32, #tpu.memory_space<vmem>>, vector<1x1x96xf32>
    %33 = vector.shape_cast %32 : vector<1x1x96xf32> to vector<1x96xf32>
    %c0_18 = arith.constant 0 : index
    %c0_19 = arith.constant 0 : index
    %c0_20 = arith.constant 0 : index
    %34 = vector.load %arg7[%c0_18, %c0_19, %c0_20] : memref<1x32x32xbf16, #tpu.memory_space<vmem>>, vector<1x32x32xbf16>
    %35 = vector.shape_cast %34 : vector<1x32x32xbf16> to vector<32x32xbf16>
    %c0_21 = arith.constant 0 : index
    %c0_22 = arith.constant 0 : index
    %c0_23 = arith.constant 0 : index
    %36 = vector.load %arg8[%c0_21, %c0_22, %c0_23] : memref<1x1x32xf32, #tpu.memory_space<vmem>>, vector<1x1x32xf32>
    %37 = vector.shape_cast %36 : vector<1x1x32xf32> to vector<1x32xf32>
    %38 = arith.truncf %29 : vector<16x32xf32> to vector<16x32xbf16>
    %cst_24 = arith.constant dense<0.000000e+00> : vector<16x96xf32>
    %39 = tpu.matmul %38, %31, %cst_24 {dimension_numbers = #tpu.dot_dimension_numbers<[1], [0], [0], [1], [0, 0, 1, 1], [], []>} : vector<16x32xbf16>, vector<32x96xbf16>, vector<16x96xf32> -> vector<16x96xf32>
    %40 = vector.broadcast %33 : vector<1x96xf32> to vector<16x96xf32>
    %41 = arith.addf %39, %40 : vector<16x96xf32>
    %42 = vector.extract_strided_slice %41 {offsets = [0, 0], sizes = [16, 32], strides = [1, 1]} : vector<16x96xf32> to vector<16x32xf32>
    %43 = vector.extract_strided_slice %41 {offsets = [0, 32], sizes = [16, 32], strides = [1, 1]} : vector<16x96xf32> to vector<16x32xf32>
    %44 = vector.extract_strided_slice %41 {offsets = [0, 64], sizes = [16, 32], strides = [1, 1]} : vector<16x96xf32> to vector<16x32xf32>
    %45 = vector.extract_strided_slice %42 {offsets = [0, 0], sizes = [16, 8], strides = [1, 1]} : vector<16x32xf32> to vector<16x8xf32>
    %46 = vector.extract_strided_slice %42 {offsets = [0, 8], sizes = [16, 8], strides = [1, 1]} : vector<16x32xf32> to vector<16x8xf32>
    %47 = vector.extract_strided_slice %42 {offsets = [0, 16], sizes = [16, 8], strides = [1, 1]} : vector<16x32xf32> to vector<16x8xf32>
    %48 = vector.extract_strided_slice %42 {offsets = [0, 24], sizes = [16, 8], strides = [1, 1]} : vector<16x32xf32> to vector<16x8xf32>
    %49 = vector.shape_cast %45 : vector<16x8xf32> to vector<1x16x8xf32>
    %50 = vector.shape_cast %46 : vector<16x8xf32> to vector<1x16x8xf32>
    %51 = vector.shape_cast %47 : vector<16x8xf32> to vector<1x16x8xf32>
    %52 = vector.shape_cast %48 : vector<16x8xf32> to vector<1x16x8xf32>
    %53 = tpu.concatenate %49, %50, %51, %52 in 0 : vector<1x16x8xf32>, vector<1x16x8xf32>, vector<1x16x8xf32>, vector<1x16x8xf32> -> vector<4x16x8xf32>
    %54 = arith.truncf %53 : vector<4x16x8xf32> to vector<4x16x8xbf16>
    %55 = vector.extract_strided_slice %43 {offsets = [0, 0], sizes = [16, 8], strides = [1, 1]} : vector<16x32xf32> to vector<16x8xf32>
    %56 = vector.extract_strided_slice %43 {offsets = [0, 8], sizes = [16, 8], strides = [1, 1]} : vector<16x32xf32> to vector<16x8xf32>
    %57 = vector.extract_strided_slice %43 {offsets = [0, 16], sizes = [16, 8], strides = [1, 1]} : vector<16x32xf32> to vector<16x8xf32>
    %58 = vector.extract_strided_slice %43 {offsets = [0, 24], sizes = [16, 8], strides = [1, 1]} : vector<16x32xf32> to vector<16x8xf32>
    %59 = vector.shape_cast %55 : vector<16x8xf32> to vector<1x16x8xf32>
    %60 = vector.shape_cast %56 : vector<16x8xf32> to vector<1x16x8xf32>
    %61 = vector.shape_cast %57 : vector<16x8xf32> to vector<1x16x8xf32>
    %62 = vector.shape_cast %58 : vector<16x8xf32> to vector<1x16x8xf32>
    %63 = tpu.concatenate %59, %60, %61, %62 in 0 : vector<1x16x8xf32>, vector<1x16x8xf32>, vector<1x16x8xf32>, vector<1x16x8xf32> -> vector<4x16x8xf32>
    %64 = arith.truncf %63 : vector<4x16x8xf32> to vector<4x16x8xbf16>
    %65 = vector.extract_strided_slice %44 {offsets = [0, 0], sizes = [16, 8], strides = [1, 1]} : vector<16x32xf32> to vector<16x8xf32>
    %66 = vector.extract_strided_slice %44 {offsets = [0, 8], sizes = [16, 8], strides = [1, 1]} : vector<16x32xf32> to vector<16x8xf32>
    %67 = vector.extract_strided_slice %44 {offsets = [0, 16], sizes = [16, 8], strides = [1, 1]} : vector<16x32xf32> to vector<16x8xf32>
    %68 = vector.extract_strided_slice %44 {offsets = [0, 24], sizes = [16, 8], strides = [1, 1]} : vector<16x32xf32> to vector<16x8xf32>
    %69 = vector.shape_cast %65 : vector<16x8xf32> to vector<1x16x8xf32>
    %70 = vector.shape_cast %66 : vector<16x8xf32> to vector<1x16x8xf32>
    %71 = vector.shape_cast %67 : vector<16x8xf32> to vector<1x16x8xf32>
    %72 = vector.shape_cast %68 : vector<16x8xf32> to vector<1x16x8xf32>
    %73 = tpu.concatenate %69, %70, %71, %72 in 0 : vector<1x16x8xf32>, vector<1x16x8xf32>, vector<1x16x8xf32>, vector<1x16x8xf32> -> vector<4x16x8xf32>
    %74 = arith.truncf %73 : vector<4x16x8xf32> to vector<4x16x8xbf16>
    %cst_25 = arith.constant dense<0.000000e+00> : vector<4x16x16xf32>
    %75 = tpu.matmul %54, %64, %cst_25 {dimension_numbers = #tpu.dot_dimension_numbers<[2], [2], [1], [1], [0, 0, 0, 1, 1, 1], [0], [0]>} : vector<4x16x8xbf16>, vector<4x16x8xbf16>, vector<4x16x16xf32> -> vector<4x16x16xf32>
    %cst_26 = arith.constant dense<0xFF800000> : vector<4x16xf32>
    %76 = vector.multi_reduction <maximumf>, %75, %cst_26 [2] : vector<4x16x16xf32> to vector<4x16xf32>
    %77 = vector.shape_cast %76 : vector<4x16xf32> to vector<4x16x1xf32>
    %78 = vector.broadcast %77 : vector<4x16x1xf32> to vector<4x16x16xf32>
    %79 = arith.subf %75, %78 : vector<4x16x16xf32>
    %80 = math.exp %79 : vector<4x16x16xf32>
    %cst_27 = arith.constant dense<0.000000e+00> : vector<4x16xf32>
    %81 = vector.multi_reduction <add>, %80, %cst_27 [2] : vector<4x16x16xf32> to vector<4x16xf32>
    %82 = vector.shape_cast %81 : vector<4x16xf32> to vector<4x16x1xf32>
    %83 = vector.broadcast %82 : vector<4x16x1xf32> to vector<4x16x16xf32>
    %84 = arith.divf %80, %83 : vector<4x16x16xf32>
    %85 = arith.truncf %84 : vector<4x16x16xf32> to vector<4x16x16xbf16>
    %cst_28 = arith.constant dense<0.000000e+00> : vector<4x16x8xf32>
    %86 = tpu.matmul %85, %74, %cst_28 {dimension_numbers = #tpu.dot_dimension_numbers<[2], [1], [1], [2], [0, 0, 0, 1, 1, 2], [0], [0]>} : vector<4x16x16xbf16>, vector<4x16x8xbf16>, vector<4x16x8xf32> -> vector<4x16x8xf32>
    %87 = vector.extract_strided_slice %86 {offsets = [0, 0, 0], sizes = [1, 16, 8], strides = [1, 1, 1]} : vector<4x16x8xf32> to vector<1x16x8xf32>
    %88 = vector.shape_cast %87 : vector<1x16x8xf32> to vector<16x8xf32>
    %89 = vector.extract_strided_slice %86 {offsets = [1, 0, 0], sizes = [1, 16, 8], strides = [1, 1, 1]} : vector<4x16x8xf32> to vector<1x16x8xf32>
    %90 = vector.shape_cast %89 : vector<1x16x8xf32> to vector<16x8xf32>
    %91 = vector.extract_strided_slice %86 {offsets = [2, 0, 0], sizes = [1, 16, 8], strides = [1, 1, 1]} : vector<4x16x8xf32> to vector<1x16x8xf32>
    %92 = vector.shape_cast %91 : vector<1x16x8xf32> to vector<16x8xf32>
    %93 = vector.extract_strided_slice %86 {offsets = [3, 0, 0], sizes = [1, 16, 8], strides = [1, 1, 1]} : vector<4x16x8xf32> to vector<1x16x8xf32>
    %94 = vector.shape_cast %93 : vector<1x16x8xf32> to vector<16x8xf32>
    %95 = tpu.concatenate %88, %90, %92, %94 in 1 : vector<16x8xf32>, vector<16x8xf32>, vector<16x8xf32>, vector<16x8xf32> -> vector<16x32xf32>
    %96 = arith.truncf %95 : vector<16x32xf32> to vector<16x32xbf16>
    %cst_29 = arith.constant dense<0.000000e+00> : vector<16x32xf32>
    %97 = tpu.matmul %96, %35, %cst_29 {dimension_numbers = #tpu.dot_dimension_numbers<[1], [0], [0], [1], [0, 0, 1, 1], [], []>} : vector<16x32xbf16>, vector<32x32xbf16>, vector<16x32xf32> -> vector<16x32xf32>
    %98 = vector.broadcast %37 : vector<1x32xf32> to vector<16x32xf32>
    %99 = arith.addf %97, %98 : vector<16x32xf32>
    %100 = arith.addf %3, %99 : vector<16x32xf32>
    %c0_30 = arith.constant 0 : index
    %c0_31 = arith.constant 0 : index
    %c0_32 = arith.constant 0 : index
    %101 = vector.load %arg9[%c0_30, %c0_31, %c0_32] : memref<1x1x32xf32, #tpu.memory_space<vmem>>, vector<1x1x32xf32>
    %102 = vector.shape_cast %101 : vector<1x1x32xf32> to vector<1x32xf32>
    %c0_33 = arith.constant 0 : index
    %c0_34 = arith.constant 0 : index
    %c0_35 = arith.constant 0 : index
    %103 = vector.load %arg10[%c0_33, %c0_34, %c0_35] : memref<1x1x32xf32, #tpu.memory_space<vmem>>, vector<1x1x32xf32>
    %104 = vector.shape_cast %103 : vector<1x1x32xf32> to vector<1x32xf32>
    %cst_36 = arith.constant dense<0.000000e+00> : vector<16xf32>
    %105 = vector.multi_reduction <add>, %100, %cst_36 [1] : vector<16x32xf32> to vector<16xf32>
    %106 = vector.shape_cast %105 : vector<16xf32> to vector<16x1xf32>
    %cst_37 = arith.constant 3.200000e+01 : f32
    %107 = vector.broadcast %cst_37 : f32 to vector<16x1xf32>
    %108 = arith.divf %106, %107 : vector<16x1xf32>
    %109 = vector.broadcast %108 : vector<16x1xf32> to vector<16x32xf32>
    %110 = arith.subf %100, %109 : vector<16x32xf32>
    %111 = arith.mulf %110, %110 : vector<16x32xf32>
    %cst_38 = arith.constant dense<0.000000e+00> : vector<16xf32>
    %112 = vector.multi_reduction <add>, %111, %cst_38 [1] : vector<16x32xf32> to vector<16xf32>
    %113 = vector.shape_cast %112 : vector<16xf32> to vector<16x1xf32>
    %cst_39 = arith.constant 3.200000e+01 : f32
    %114 = vector.broadcast %cst_39 : f32 to vector<16x1xf32>
    %115 = arith.divf %113, %114 : vector<16x1xf32>
    %116 = vector.broadcast %108 : vector<16x1xf32> to vector<16x32xf32>
    %117 = arith.subf %100, %116 : vector<16x32xf32>
    %cst_40 = arith.constant 9.99999974E-6 : f32
    %118 = vector.broadcast %cst_40 : f32 to vector<16x1xf32>
    %119 = arith.addf %115, %118 : vector<16x1xf32>
    %120 = math.rsqrt %119 : vector<16x1xf32>
    %121 = vector.broadcast %120 : vector<16x1xf32> to vector<16x32xf32>
    %122 = arith.mulf %117, %121 : vector<16x32xf32>
    %123 = vector.broadcast %102 : vector<1x32xf32> to vector<16x32xf32>
    %124 = arith.mulf %122, %123 : vector<16x32xf32>
    %125 = vector.broadcast %104 : vector<1x32xf32> to vector<16x32xf32>
    %126 = arith.addf %124, %125 : vector<16x32xf32>
    %c0_41 = arith.constant 0 : index
    %c0_42 = arith.constant 0 : index
    %c0_43 = arith.constant 0 : index
    %127 = vector.load %arg11[%c0_41, %c0_42, %c0_43] : memref<1x32x128xbf16, #tpu.memory_space<vmem>>, vector<1x32x128xbf16>
    %128 = vector.shape_cast %127 : vector<1x32x128xbf16> to vector<32x128xbf16>
    %c0_44 = arith.constant 0 : index
    %c0_45 = arith.constant 0 : index
    %c0_46 = arith.constant 0 : index
    %129 = vector.load %arg12[%c0_44, %c0_45, %c0_46] : memref<1x1x128xf32, #tpu.memory_space<vmem>>, vector<1x1x128xf32>
    %130 = vector.shape_cast %129 : vector<1x1x128xf32> to vector<1x128xf32>
    %c0_47 = arith.constant 0 : index
    %c0_48 = arith.constant 0 : index
    %c0_49 = arith.constant 0 : index
    %131 = vector.load %arg13[%c0_47, %c0_48, %c0_49] : memref<1x128x32xbf16, #tpu.memory_space<vmem>>, vector<1x128x32xbf16>
    %132 = vector.shape_cast %131 : vector<1x128x32xbf16> to vector<128x32xbf16>
    %c0_50 = arith.constant 0 : index
    %c0_51 = arith.constant 0 : index
    %c0_52 = arith.constant 0 : index
    %133 = vector.load %arg14[%c0_50, %c0_51, %c0_52] : memref<1x1x32xf32, #tpu.memory_space<vmem>>, vector<1x1x32xf32>
    %134 = vector.shape_cast %133 : vector<1x1x32xf32> to vector<1x32xf32>
    %135 = arith.truncf %126 : vector<16x32xf32> to vector<16x32xbf16>
    %cst_53 = arith.constant dense<0.000000e+00> : vector<16x128xf32>
    %136 = tpu.matmul %135, %128, %cst_53 {dimension_numbers = #tpu.dot_dimension_numbers<[1], [0], [0], [1], [0, 0, 1, 1], [], []>} : vector<16x32xbf16>, vector<32x128xbf16>, vector<16x128xf32> -> vector<16x128xf32>
    %137 = vector.broadcast %130 : vector<1x128xf32> to vector<16x128xf32>
    %138 = arith.addf %136, %137 : vector<16x128xf32>
    %cst_54 = arith.constant 5.000000e-01 : f32
    %139 = vector.broadcast %cst_54 : f32 to vector<16x128xf32>
    %140 = arith.mulf %139, %138 : vector<16x128xf32>
    %cst_55 = arith.constant 0.707106769 : f32
    %141 = vector.broadcast %cst_55 : f32 to vector<16x128xf32>
    %142 = arith.mulf %138, %141 : vector<16x128xf32>
    %143 = math.absf %142 : vector<16x128xf32>
    %cst_56 = arith.constant 0.327591091 : f32
    %144 = vector.broadcast %cst_56 : f32 to vector<16x128xf32>
    %145 = arith.mulf %144, %143 : vector<16x128xf32>
    %cst_57 = arith.constant 1.000000e+00 : f32
    %146 = vector.broadcast %cst_57 : f32 to vector<16x128xf32>
    %147 = arith.addf %146, %145 : vector<16x128xf32>
    %cst_58 = arith.constant 1.000000e+00 : f32
    %148 = vector.broadcast %cst_58 : f32 to vector<16x128xf32>
    %149 = arith.divf %148, %147 : vector<16x128xf32>
    %cst_59 = arith.constant 1.06140542 : f32
    %150 = vector.broadcast %cst_59 : f32 to vector<16x128xf32>
    %151 = arith.mulf %150, %149 : vector<16x128xf32>
    %cst_60 = arith.constant -1.45315206 : f32
    %152 = vector.broadcast %cst_60 : f32 to vector<16x128xf32>
    %153 = arith.addf %151, %152 : vector<16x128xf32>
    %154 = arith.mulf %153, %149 : vector<16x128xf32>
    %cst_61 = arith.constant 1.42141378 : f32
    %155 = vector.broadcast %cst_61 : f32 to vector<16x128xf32>
    %156 = arith.addf %154, %155 : vector<16x128xf32>
    %157 = arith.mulf %156, %149 : vector<16x128xf32>
    %cst_62 = arith.constant -0.284496725 : f32
    %158 = vector.broadcast %cst_62 : f32 to vector<16x128xf32>
    %159 = arith.addf %157, %158 : vector<16x128xf32>
    %160 = arith.mulf %159, %149 : vector<16x128xf32>
    %cst_63 = arith.constant 0.254829586 : f32
    %161 = vector.broadcast %cst_63 : f32 to vector<16x128xf32>
    %162 = arith.addf %160, %161 : vector<16x128xf32>
    %163 = arith.mulf %162, %149 : vector<16x128xf32>
    %cst_64 = arith.constant 0.000000e+00 : f32
    %164 = vector.broadcast %cst_64 : f32 to vector<16x128xf32>
    %165 = arith.subf %164, %143 : vector<16x128xf32>
    %166 = arith.mulf %165, %143 : vector<16x128xf32>
    %167 = math.exp %166 : vector<16x128xf32>
    %168 = arith.mulf %163, %167 : vector<16x128xf32>
    %cst_65 = arith.constant 1.000000e+00 : f32
    %169 = vector.broadcast %cst_65 : f32 to vector<16x128xf32>
    %170 = arith.subf %169, %168 : vector<16x128xf32>
    %cst_66 = arith.constant 0.000000e+00 : f32
    %171 = vector.broadcast %cst_66 : f32 to vector<16x128xf32>
    %172 = arith.cmpf olt, %142, %171 : vector<16x128xf32>
    %cst_67 = arith.constant 0.000000e+00 : f32
    %173 = vector.broadcast %cst_67 : f32 to vector<16x128xf32>
    %174 = arith.subf %173, %170 : vector<16x128xf32>
    %175 = arith.select %172, %174, %170 : vector<16x128xi1>, vector<16x128xf32>
    %cst_68 = arith.constant 1.000000e+00 : f32
    %176 = vector.broadcast %cst_68 : f32 to vector<16x128xf32>
    %177 = arith.addf %176, %175 : vector<16x128xf32>
    %178 = arith.mulf %140, %177 : vector<16x128xf32>
    %179 = arith.truncf %178 : vector<16x128xf32> to vector<16x128xbf16>
    %cst_69 = arith.constant dense<0.000000e+00> : vector<16x32xf32>
    %180 = tpu.matmul %179, %132, %cst_69 {dimension_numbers = #tpu.dot_dimension_numbers<[1], [0], [0], [1], [0, 0, 1, 1], [], []>} : vector<16x128xbf16>, vector<128x32xbf16>, vector<16x32xf32> -> vector<16x32xf32>
    %181 = vector.broadcast %134 : vector<1x32xf32> to vector<16x32xf32>
    %182 = arith.addf %180, %181 : vector<16x32xf32>
    %183 = arith.addf %100, %182 : vector<16x32xf32>
    %c0_70 = arith.constant 0 : index
    %c0_71 = arith.constant 0 : index
    %184 = vector.load %arg18[%c0_70, %c0_71] : memref<16x32xf32, #tpu.memory_space<vmem>>, vector<16x32xf32>
    tpu.vector_store %arg18[%c0_70, %c0_71], %183 {strides = array<i32>} : memref<16x32xf32, #tpu.memory_space<vmem>>, vector<16x32xf32>,
    %c1_i32 = arith.constant 1 : i32
    %185 = arith.cmpi eq, %arg1, %c1_i32 : i32
    %186 = arith.extui %185 : i1 to i32
    %c0_i32_72 = arith.constant 0 : i32
    %187 = arith.cmpi ne, %186, %c0_i32_72 : i32
    scf.if %187 {
      %c0_73 = arith.constant 0 : index
      %c0_74 = arith.constant 0 : index
      %188 = vector.load %arg15[%c0_73, %c0_74] : memref<1x32xf32, #tpu.memory_space<vmem>>, vector<1x32xf32>
      %c0_75 = arith.constant 0 : index
      %c0_76 = arith.constant 0 : index
      %189 = vector.load %arg16[%c0_75, %c0_76] : memref<1x32xf32, #tpu.memory_space<vmem>>, vector<1x32xf32>
      %cst_77 = arith.constant dense<0.000000e+00> : vector<16xf32>
      %190 = vector.multi_reduction <add>, %183, %cst_77 [1] : vector<16x32xf32> to vector<16xf32>
      %191 = vector.shape_cast %190 : vector<16xf32> to vector<16x1xf32>
      %cst_78 = arith.constant 3.200000e+01 : f32
      %192 = vector.broadcast %cst_78 : f32 to vector<16x1xf32>
      %193 = arith.divf %191, %192 : vector<16x1xf32>
      %194 = vector.broadcast %193 : vector<16x1xf32> to vector<16x32xf32>
      %195 = arith.subf %183, %194 : vector<16x32xf32>
      %196 = arith.mulf %195, %195 : vector<16x32xf32>
      %cst_79 = arith.constant dense<0.000000e+00> : vector<16xf32>
      %197 = vector.multi_reduction <add>, %196, %cst_79 [1] : vector<16x32xf32> to vector<16xf32>
      %198 = vector.shape_cast %197 : vector<16xf32> to vector<16x1xf32>
      %cst_80 = arith.constant 3.200000e+01 : f32
      %199 = vector.broadcast %cst_80 : f32 to vector<16x1xf32>
      %200 = arith.divf %198, %199 : vector<16x1xf32>
      %201 = vector.broadcast %193 : vector<16x1xf32> to vector<16x32xf32>
      %202 = arith.subf %183, %201 : vector<16x32xf32>
      %cst_81 = arith.constant 9.99999974E-6 : f32
      %203 = vector.broadcast %cst_81 : f32 to vector<16x1xf32>
      %204 = arith.addf %200, %203 : vector<16x1xf32>
      %205 = math.rsqrt %204 : vector<16x1xf32>
      %206 = vector.broadcast %205 : vector<16x1xf32> to vector<16x32xf32>
      %207 = arith.mulf %202, %206 : vector<16x32xf32>
      %208 = vector.broadcast %188 : vector<1x32xf32> to vector<16x32xf32>
      %209 = arith.mulf %207, %208 : vector<16x32xf32>
      %210 = vector.broadcast %189 : vector<1x32xf32> to vector<16x32xf32>
      %211 = arith.addf %209, %210 : vector<16x32xf32>
      %212 = vector.shape_cast %211 : vector<16x32xf32> to vector<1x16x32xf32>
      %213 = arith.truncf %212 : vector<1x16x32xf32> to vector<1x16x32xbf16>
      %c0_82 = arith.constant 0 : index
      %c0_83 = arith.constant 0 : index
      %c0_84 = arith.constant 0 : index
      %214 = vector.load %arg17[%c0_82, %c0_83, %c0_84] : memref<1x16x32xbf16, #tpu.memory_space<vmem>>, vector<1x16x32xbf16>
      tpu.vector_store %arg17[%c0_82, %c0_83, %c0_84], %213 {strides = array<i32>} : memref<1x16x32xbf16, #tpu.memory_space<vmem>>, vector<1x16x32xbf16>,
    } else {
    }
    return
  }
  func.func @transform_0(%arg0: i32, %arg1: i32) -> (i32, i32, i32) {
    %c0_i32 = arith.constant 0 : i32
    %c0_i32_0 = arith.constant 0 : i32
    %c0_i32_1 = arith.constant 0 : i32
    return %arg0, %c0_i32, %c0_i32_0 : i32, i32, i32
  }
  func.func @transform_1(%arg0: i32, %arg1: i32) -> (i32, i32, i32) {
    %c0_i32 = arith.constant 0 : i32
    %c0_i32_0 = arith.constant 0 : i32
    %c0_i32_1 = arith.constant 0 : i32
    return %arg1, %c0_i32, %c0_i32_0 : i32, i32, i32
  }
  func.func @transform_2(%arg0: i32, %arg1: i32) -> (i32, i32, i32) {
    %c0_i32 = arith.constant 0 : i32
    %c0_i32_0 = arith.constant 0 : i32
    %c0_i32_1 = arith.constant 0 : i32
    return %arg1, %c0_i32, %c0_i32_0 : i32, i32, i32
  }
  func.func @transform_3(%arg0: i32, %arg1: i32) -> (i32, i32, i32) {
    %c0_i32 = arith.constant 0 : i32
    %c0_i32_0 = arith.constant 0 : i32
    %c0_i32_1 = arith.constant 0 : i32
    return %arg1, %c0_i32, %c0_i32_0 : i32, i32, i32
  }
  func.func @transform_4(%arg0: i32, %arg1: i32) -> (i32, i32, i32) {
    %c0_i32 = arith.constant 0 : i32
    %c0_i32_0 = arith.constant 0 : i32
    %c0_i32_1 = arith.constant 0 : i32
    return %arg1, %c0_i32, %c0_i32_0 : i32, i32, i32
  }
  func.func @transform_5(%arg0: i32, %arg1: i32) -> (i32, i32, i32) {
    %c0_i32 = arith.constant 0 : i32
    %c0_i32_0 = arith.constant 0 : i32
    %c0_i32_1 = arith.constant 0 : i32
    return %arg1, %c0_i32, %c0_i32_0 : i32, i32, i32
  }
  func.func @transform_6(%arg0: i32, %arg1: i32) -> (i32, i32, i32) {
    %c0_i32 = arith.constant 0 : i32
    %c0_i32_0 = arith.constant 0 : i32
    %c0_i32_1 = arith.constant 0 : i32
    return %arg1, %c0_i32, %c0_i32_0 : i32, i32, i32
  }
  func.func @transform_7(%arg0: i32, %arg1: i32) -> (i32, i32, i32) {
    %c0_i32 = arith.constant 0 : i32
    %c0_i32_0 = arith.constant 0 : i32
    %c0_i32_1 = arith.constant 0 : i32
    return %arg1, %c0_i32, %c0_i32_0 : i32, i32, i32
  }
  func.func @transform_8(%arg0: i32, %arg1: i32) -> (i32, i32, i32) {
    %c0_i32 = arith.constant 0 : i32
    %c0_i32_0 = arith.constant 0 : i32
    %c0_i32_1 = arith.constant 0 : i32
    return %arg1, %c0_i32, %c0_i32_0 : i32, i32, i32
  }
  func.func @transform_9(%arg0: i32, %arg1: i32) -> (i32, i32, i32) {
    %c0_i32 = arith.constant 0 : i32
    %c0_i32_0 = arith.constant 0 : i32
    %c0_i32_1 = arith.constant 0 : i32
    return %arg1, %c0_i32, %c0_i32_0 : i32, i32, i32
  }
  func.func @transform_10(%arg0: i32, %arg1: i32) -> (i32, i32, i32) {
    %c0_i32 = arith.constant 0 : i32
    %c0_i32_0 = arith.constant 0 : i32
    %c0_i32_1 = arith.constant 0 : i32
    return %arg1, %c0_i32, %c0_i32_0 : i32, i32, i32
  }
  func.func @transform_11(%arg0: i32, %arg1: i32) -> (i32, i32, i32) {
    %c0_i32 = arith.constant 0 : i32
    %c0_i32_0 = arith.constant 0 : i32
    %c0_i32_1 = arith.constant 0 : i32
    return %arg1, %c0_i32, %c0_i32_0 : i32, i32, i32
  }
  func.func @transform_12(%arg0: i32, %arg1: i32) -> (i32, i32, i32) {
    %c0_i32 = arith.constant 0 : i32
    %c0_i32_0 = arith.constant 0 : i32
    %c0_i32_1 = arith.constant 0 : i32
    return %arg1, %c0_i32, %c0_i32_0 : i32, i32, i32
  }
  func.func @transform_13(%arg0: i32, %arg1: i32) -> (i32, i32) {
    %c0_i32 = arith.constant 0 : i32
    %c0_i32_0 = arith.constant 0 : i32
    %c0_i32_1 = arith.constant 0 : i32
    return %c0_i32, %c0_i32_0 : i32, i32
  }
  func.func @transform_14(%arg0: i32, %arg1: i32) -> (i32, i32) {
    %c0_i32 = arith.constant 0 : i32
    %c0_i32_0 = arith.constant 0 : i32
    %c0_i32_1 = arith.constant 0 : i32
    return %c0_i32, %c0_i32_0 : i32, i32
  }
  func.func @transform_15(%arg0: i32, %arg1: i32) -> (i32, i32, i32) {
    %c0_i32 = arith.constant 0 : i32
    %c0_i32_0 = arith.constant 0 : i32
    %c0_i32_1 = arith.constant 0 : i32
    return %arg0, %c0_i32, %c0_i32_0 : i32, i32, i32
  }
}

module attributes {stable_mosaic.version = 11 : i64} {
  func.func @_pooler_head_kernel(%arg0: i32, %arg1: memref<1x1x32xf32, #tpu.memory_space<vmem>>, %arg2: memref<1x16x32xbf16, #tpu.memory_space<vmem>>, %arg3: memref<1x32xf32, #tpu.memory_space<vmem>>, %arg4: memref<1x32xf32, #tpu.memory_space<vmem>>, %arg5: memref<32x32xbf16, #tpu.memory_space<vmem>>, %arg6: memref<1x32xf32, #tpu.memory_space<vmem>>, %arg7: memref<32x64xbf16, #tpu.memory_space<vmem>>, %arg8: memref<1x64xf32, #tpu.memory_space<vmem>>, %arg9: memref<32x32xbf16, #tpu.memory_space<vmem>>, %arg10: memref<1x32xf32, #tpu.memory_space<vmem>>, %arg11: memref<1x32xf32, #tpu.memory_space<vmem>>, %arg12: memref<1x32xf32, #tpu.memory_space<vmem>>, %arg13: memref<32x128xbf16, #tpu.memory_space<vmem>>, %arg14: memref<1x128xf32, #tpu.memory_space<vmem>>, %arg15: memref<128x32xbf16, #tpu.memory_space<vmem>>, %arg16: memref<1x32xf32, #tpu.memory_space<vmem>>, %arg17: memref<32x128xbf16, #tpu.memory_space<vmem>>, %arg18: memref<1x128xf32, #tpu.memory_space<vmem>>, %arg19: memref<1x1x128xf32, #tpu.memory_space<vmem>>) attributes {dimension_semantics = [#tpu.dimension_semantics<parallel>], iteration_bounds = array<i64: 2>, scalar_prefetch = 0 : i64, scratch_operands = 0 : i64, tpu.core_type = #tpu.core_type<tc>, window_params = [{pipeline_mode = #tpu.pipeline_mode<synchronous>, transform_indices = @transform_0, window_bounds = array<i64: 1, 1, 32>}, {transform_indices = @transform_1, window_bounds = array<i64: 1, 16, 32>}, {pipeline_mode = #tpu.pipeline_mode<synchronous>, transform_indices = @transform_2, window_bounds = array<i64: 1, 32>}, {pipeline_mode = #tpu.pipeline_mode<synchronous>, transform_indices = @transform_3, window_bounds = array<i64: 1, 32>}, {pipeline_mode = #tpu.pipeline_mode<synchronous>, transform_indices = @transform_4, window_bounds = array<i64: 32, 32>}, {pipeline_mode = #tpu.pipeline_mode<synchronous>, transform_indices = @transform_5, window_bounds = array<i64: 1, 32>}, {pipeline_mode = #tpu.pipeline_mode<synchronous>, transform_indices = @transform_6, window_bounds = array<i64: 32, 64>}, {pipeline_mode = #tpu.pipeline_mode<synchronous>, transform_indices = @transform_7, window_bounds = array<i64: 1, 64>}, {pipeline_mode = #tpu.pipeline_mode<synchronous>, transform_indices = @transform_8, window_bounds = array<i64: 32, 32>}, {pipeline_mode = #tpu.pipeline_mode<synchronous>, transform_indices = @transform_9, window_bounds = array<i64: 1, 32>}, {pipeline_mode = #tpu.pipeline_mode<synchronous>, transform_indices = @transform_10, window_bounds = array<i64: 1, 32>}, {pipeline_mode = #tpu.pipeline_mode<synchronous>, transform_indices = @transform_11, window_bounds = array<i64: 1, 32>}, {pipeline_mode = #tpu.pipeline_mode<synchronous>, transform_indices = @transform_12, window_bounds = array<i64: 32, 128>}, {pipeline_mode = #tpu.pipeline_mode<synchronous>, transform_indices = @transform_13, window_bounds = array<i64: 1, 128>}, {pipeline_mode = #tpu.pipeline_mode<synchronous>, transform_indices = @transform_14, window_bounds = array<i64: 128, 32>}, {pipeline_mode = #tpu.pipeline_mode<synchronous>, transform_indices = @transform_15, window_bounds = array<i64: 1, 32>}, {pipeline_mode = #tpu.pipeline_mode<synchronous>, transform_indices = @transform_16, window_bounds = array<i64: 32, 128>}, {pipeline_mode = #tpu.pipeline_mode<synchronous>, transform_indices = @transform_17, window_bounds = array<i64: 1, 128>}, {transform_indices = @transform_18, window_bounds = array<i64: 1, 1, 128>}]} {
    %c0 = arith.constant 0 : index
    %c0_0 = arith.constant 0 : index
    %c0_1 = arith.constant 0 : index
    %0 = vector.load %arg2[%c0, %c0_0, %c0_1] : memref<1x16x32xbf16, #tpu.memory_space<vmem>>, vector<1x16x32xbf16>
    %1 = arith.extf %0 : vector<1x16x32xbf16> to vector<1x16x32xf32>
    %2 = vector.shape_cast %1 : vector<1x16x32xf32> to vector<16x32xf32>
    %c0_2 = arith.constant 0 : index
    %c0_3 = arith.constant 0 : index
    %3 = vector.load %arg3[%c0_2, %c0_3] : memref<1x32xf32, #tpu.memory_space<vmem>>, vector<1x32xf32>
    %c0_4 = arith.constant 0 : index
    %c0_5 = arith.constant 0 : index
    %4 = vector.load %arg4[%c0_4, %c0_5] : memref<1x32xf32, #tpu.memory_space<vmem>>, vector<1x32xf32>
    %cst = arith.constant dense<0.000000e+00> : vector<16xf32>
    %5 = vector.multi_reduction <add>, %2, %cst [1] : vector<16x32xf32> to vector<16xf32>
    %6 = vector.shape_cast %5 : vector<16xf32> to vector<16x1xf32>
    %cst_6 = arith.constant 3.200000e+01 : f32
    %7 = vector.broadcast %cst_6 : f32 to vector<16x1xf32>
    %8 = arith.divf %6, %7 : vector<16x1xf32>
    %9 = vector.broadcast %8 : vector<16x1xf32> to vector<16x32xf32>
    %10 = arith.subf %2, %9 : vector<16x32xf32>
    %11 = arith.mulf %10, %10 : vector<16x32xf32>
    %cst_7 = arith.constant dense<0.000000e+00> : vector<16xf32>
    %12 = vector.multi_reduction <add>, %11, %cst_7 [1] : vector<16x32xf32> to vector<16xf32>
    %13 = vector.shape_cast %12 : vector<16xf32> to vector<16x1xf32>
    %cst_8 = arith.constant 3.200000e+01 : f32
    %14 = vector.broadcast %cst_8 : f32 to vector<16x1xf32>
    %15 = arith.divf %13, %14 : vector<16x1xf32>
    %16 = vector.broadcast %8 : vector<16x1xf32> to vector<16x32xf32>
    %17 = arith.subf %2, %16 : vector<16x32xf32>
    %cst_9 = arith.constant 9.99999974E-6 : f32
    %18 = vector.broadcast %cst_9 : f32 to vector<16x1xf32>
    %19 = arith.addf %15, %18 : vector<16x1xf32>
    %20 = math.rsqrt %19 : vector<16x1xf32>
    %21 = vector.broadcast %20 : vector<16x1xf32> to vector<16x32xf32>
    %22 = arith.mulf %17, %21 : vector<16x32xf32>
    %23 = vector.broadcast %3 : vector<1x32xf32> to vector<16x32xf32>
    %24 = arith.mulf %22, %23 : vector<16x32xf32>
    %25 = vector.broadcast %4 : vector<1x32xf32> to vector<16x32xf32>
    %26 = arith.addf %24, %25 : vector<16x32xf32>
    %c0_10 = arith.constant 0 : index
    %c0_11 = arith.constant 0 : index
    %c0_12 = arith.constant 0 : index
    %27 = vector.load %arg1[%c0_10, %c0_11, %c0_12] : memref<1x1x32xf32, #tpu.memory_space<vmem>>, vector<1x1x32xf32>
    %28 = vector.shape_cast %27 : vector<1x1x32xf32> to vector<1x32xf32>
    %c0_13 = arith.constant 0 : index
    %c0_14 = arith.constant 0 : index
    %29 = vector.load %arg5[%c0_13, %c0_14] : memref<32x32xbf16, #tpu.memory_space<vmem>>, vector<32x32xbf16>
    %c0_15 = arith.constant 0 : index
    %c0_16 = arith.constant 0 : index
    %30 = vector.load %arg6[%c0_15, %c0_16] : memref<1x32xf32, #tpu.memory_space<vmem>>, vector<1x32xf32>
    %c0_17 = arith.constant 0 : index
    %c0_18 = arith.constant 0 : index
    %31 = vector.load %arg7[%c0_17, %c0_18] : memref<32x64xbf16, #tpu.memory_space<vmem>>, vector<32x64xbf16>
    %c0_19 = arith.constant 0 : index
    %c0_20 = arith.constant 0 : index
    %32 = vector.load %arg8[%c0_19, %c0_20] : memref<1x64xf32, #tpu.memory_space<vmem>>, vector<1x64xf32>
    %c0_21 = arith.constant 0 : index
    %c0_22 = arith.constant 0 : index
    %33 = vector.load %arg9[%c0_21, %c0_22] : memref<32x32xbf16, #tpu.memory_space<vmem>>, vector<32x32xbf16>
    %c0_23 = arith.constant 0 : index
    %c0_24 = arith.constant 0 : index
    %34 = vector.load %arg10[%c0_23, %c0_24] : memref<1x32xf32, #tpu.memory_space<vmem>>, vector<1x32xf32>
    %35 = arith.truncf %28 : vector<1x32xf32> to vector<1x32xbf16>
    %cst_25 = arith.constant dense<0.000000e+00> : vector<1x32xf32>
    %36 = tpu.matmul %35, %29, %cst_25 {dimension_numbers = #tpu.dot_dimension_numbers<[1], [0], [0], [1], [0, 0, 1, 1], [], []>} : vector<1x32xbf16>, vector<32x32xbf16>, vector<1x32xf32> -> vector<1x32xf32>
    %37 = arith.addf %36, %30 : vector<1x32xf32>
    %38 = arith.truncf %26 : vector<16x32xf32> to vector<16x32xbf16>
    %cst_26 = arith.constant dense<0.000000e+00> : vector<16x64xf32>
    %39 = tpu.matmul %38, %31, %cst_26 {dimension_numbers = #tpu.dot_dimension_numbers<[1], [0], [0], [1], [0, 0, 1, 1], [], []>} : vector<16x32xbf16>, vector<32x64xbf16>, vector<16x64xf32> -> vector<16x64xf32>
    %40 = vector.broadcast %32 : vector<1x64xf32> to vector<16x64xf32>
    %41 = arith.addf %39, %40 : vector<16x64xf32>
    %42 = vector.extract_strided_slice %41 {offsets = [0, 0], sizes = [16, 32], strides = [1, 1]} : vector<16x64xf32> to vector<16x32xf32>
    %43 = vector.extract_strided_slice %41 {offsets = [0, 32], sizes = [16, 32], strides = [1, 1]} : vector<16x64xf32> to vector<16x32xf32>
    %44 = vector.extract_strided_slice %37 {offsets = [0, 0], sizes = [1, 8], strides = [1, 1]} : vector<1x32xf32> to vector<1x8xf32>
    %45 = vector.extract_strided_slice %37 {offsets = [0, 8], sizes = [1, 8], strides = [1, 1]} : vector<1x32xf32> to vector<1x8xf32>
    %46 = vector.extract_strided_slice %37 {offsets = [0, 16], sizes = [1, 8], strides = [1, 1]} : vector<1x32xf32> to vector<1x8xf32>
    %47 = vector.extract_strided_slice %37 {offsets = [0, 24], sizes = [1, 8], strides = [1, 1]} : vector<1x32xf32> to vector<1x8xf32>
    %48 = vector.shape_cast %44 : vector<1x8xf32> to vector<1x1x8xf32>
    %49 = vector.shape_cast %45 : vector<1x8xf32> to vector<1x1x8xf32>
    %50 = vector.shape_cast %46 : vector<1x8xf32> to vector<1x1x8xf32>
    %51 = vector.shape_cast %47 : vector<1x8xf32> to vector<1x1x8xf32>
    %52 = tpu.concatenate %48, %49, %50, %51 in 0 : vector<1x1x8xf32>, vector<1x1x8xf32>, vector<1x1x8xf32>, vector<1x1x8xf32> -> vector<4x1x8xf32>
    %53 = arith.truncf %52 : vector<4x1x8xf32> to vector<4x1x8xbf16>
    %54 = vector.extract_strided_slice %42 {offsets = [0, 0], sizes = [16, 8], strides = [1, 1]} : vector<16x32xf32> to vector<16x8xf32>
    %55 = vector.extract_strided_slice %42 {offsets = [0, 8], sizes = [16, 8], strides = [1, 1]} : vector<16x32xf32> to vector<16x8xf32>
    %56 = vector.extract_strided_slice %42 {offsets = [0, 16], sizes = [16, 8], strides = [1, 1]} : vector<16x32xf32> to vector<16x8xf32>
    %57 = vector.extract_strided_slice %42 {offsets = [0, 24], sizes = [16, 8], strides = [1, 1]} : vector<16x32xf32> to vector<16x8xf32>
    %58 = vector.shape_cast %54 : vector<16x8xf32> to vector<1x16x8xf32>
    %59 = vector.shape_cast %55 : vector<16x8xf32> to vector<1x16x8xf32>
    %60 = vector.shape_cast %56 : vector<16x8xf32> to vector<1x16x8xf32>
    %61 = vector.shape_cast %57 : vector<16x8xf32> to vector<1x16x8xf32>
    %62 = tpu.concatenate %58, %59, %60, %61 in 0 : vector<1x16x8xf32>, vector<1x16x8xf32>, vector<1x16x8xf32>, vector<1x16x8xf32> -> vector<4x16x8xf32>
    %63 = arith.truncf %62 : vector<4x16x8xf32> to vector<4x16x8xbf16>
    %64 = vector.extract_strided_slice %43 {offsets = [0, 0], sizes = [16, 8], strides = [1, 1]} : vector<16x32xf32> to vector<16x8xf32>
    %65 = vector.extract_strided_slice %43 {offsets = [0, 8], sizes = [16, 8], strides = [1, 1]} : vector<16x32xf32> to vector<16x8xf32>
    %66 = vector.extract_strided_slice %43 {offsets = [0, 16], sizes = [16, 8], strides = [1, 1]} : vector<16x32xf32> to vector<16x8xf32>
    %67 = vector.extract_strided_slice %43 {offsets = [0, 24], sizes = [16, 8], strides = [1, 1]} : vector<16x32xf32> to vector<16x8xf32>
    %68 = vector.shape_cast %64 : vector<16x8xf32> to vector<1x16x8xf32>
    %69 = vector.shape_cast %65 : vector<16x8xf32> to vector<1x16x8xf32>
    %70 = vector.shape_cast %66 : vector<16x8xf32> to vector<1x16x8xf32>
    %71 = vector.shape_cast %67 : vector<16x8xf32> to vector<1x16x8xf32>
    %72 = tpu.concatenate %68, %69, %70, %71 in 0 : vector<1x16x8xf32>, vector<1x16x8xf32>, vector<1x16x8xf32>, vector<1x16x8xf32> -> vector<4x16x8xf32>
    %73 = arith.truncf %72 : vector<4x16x8xf32> to vector<4x16x8xbf16>
    %cst_27 = arith.constant dense<0.000000e+00> : vector<4x1x16xf32>
    %74 = tpu.matmul %53, %63, %cst_27 {dimension_numbers = #tpu.dot_dimension_numbers<[2], [2], [1], [1], [0, 0, 0, 1, 1, 1], [0], [0]>} : vector<4x1x8xbf16>, vector<4x16x8xbf16>, vector<4x1x16xf32> -> vector<4x1x16xf32>
    %cst_28 = arith.constant dense<0xFF800000> : vector<4x1xf32>
    %75 = vector.multi_reduction <maximumf>, %74, %cst_28 [2] : vector<4x1x16xf32> to vector<4x1xf32>
    %76 = vector.shape_cast %75 : vector<4x1xf32> to vector<4x1x1xf32>
    %77 = vector.broadcast %76 : vector<4x1x1xf32> to vector<4x1x16xf32>
    %78 = arith.subf %74, %77 : vector<4x1x16xf32>
    %79 = math.exp %78 : vector<4x1x16xf32>
    %cst_29 = arith.constant dense<0.000000e+00> : vector<4x1xf32>
    %80 = vector.multi_reduction <add>, %79, %cst_29 [2] : vector<4x1x16xf32> to vector<4x1xf32>
    %81 = vector.shape_cast %80 : vector<4x1xf32> to vector<4x1x1xf32>
    %82 = vector.broadcast %81 : vector<4x1x1xf32> to vector<4x1x16xf32>
    %83 = arith.divf %79, %82 : vector<4x1x16xf32>
    %84 = arith.truncf %83 : vector<4x1x16xf32> to vector<4x1x16xbf16>
    %cst_30 = arith.constant dense<0.000000e+00> : vector<4x1x8xf32>
    %85 = tpu.matmul %84, %73, %cst_30 {dimension_numbers = #tpu.dot_dimension_numbers<[2], [1], [1], [2], [0, 0, 0, 1, 1, 2], [0], [0]>} : vector<4x1x16xbf16>, vector<4x16x8xbf16>, vector<4x1x8xf32> -> vector<4x1x8xf32>
    %86 = vector.extract_strided_slice %85 {offsets = [0, 0, 0], sizes = [1, 1, 8], strides = [1, 1, 1]} : vector<4x1x8xf32> to vector<1x1x8xf32>
    %87 = vector.shape_cast %86 : vector<1x1x8xf32> to vector<1x8xf32>
    %88 = vector.extract_strided_slice %85 {offsets = [1, 0, 0], sizes = [1, 1, 8], strides = [1, 1, 1]} : vector<4x1x8xf32> to vector<1x1x8xf32>
    %89 = vector.shape_cast %88 : vector<1x1x8xf32> to vector<1x8xf32>
    %90 = vector.extract_strided_slice %85 {offsets = [2, 0, 0], sizes = [1, 1, 8], strides = [1, 1, 1]} : vector<4x1x8xf32> to vector<1x1x8xf32>
    %91 = vector.shape_cast %90 : vector<1x1x8xf32> to vector<1x8xf32>
    %92 = vector.extract_strided_slice %85 {offsets = [3, 0, 0], sizes = [1, 1, 8], strides = [1, 1, 1]} : vector<4x1x8xf32> to vector<1x1x8xf32>
    %93 = vector.shape_cast %92 : vector<1x1x8xf32> to vector<1x8xf32>
    %94 = tpu.concatenate %87, %89, %91, %93 in 1 : vector<1x8xf32>, vector<1x8xf32>, vector<1x8xf32>, vector<1x8xf32> -> vector<1x32xf32>
    %95 = arith.truncf %94 : vector<1x32xf32> to vector<1x32xbf16>
    %cst_31 = arith.constant dense<0.000000e+00> : vector<1x32xf32>
    %96 = tpu.matmul %95, %33, %cst_31 {dimension_numbers = #tpu.dot_dimension_numbers<[1], [0], [0], [1], [0, 0, 1, 1], [], []>} : vector<1x32xbf16>, vector<32x32xbf16>, vector<1x32xf32> -> vector<1x32xf32>
    %97 = arith.addf %96, %34 : vector<1x32xf32>
    %98 = arith.addf %28, %97 : vector<1x32xf32>
    %c0_32 = arith.constant 0 : index
    %c0_33 = arith.constant 0 : index
    %99 = vector.load %arg11[%c0_32, %c0_33] : memref<1x32xf32, #tpu.memory_space<vmem>>, vector<1x32xf32>
    %c0_34 = arith.constant 0 : index
    %c0_35 = arith.constant 0 : index
    %100 = vector.load %arg12[%c0_34, %c0_35] : memref<1x32xf32, #tpu.memory_space<vmem>>, vector<1x32xf32>
    %cst_36 = arith.constant dense<0.000000e+00> : vector<1xf32>
    %101 = vector.multi_reduction <add>, %98, %cst_36 [1] : vector<1x32xf32> to vector<1xf32>
    %102 = vector.shape_cast %101 : vector<1xf32> to vector<1x1xf32>
    %cst_37 = arith.constant 3.200000e+01 : f32
    %103 = vector.broadcast %cst_37 : f32 to vector<1x1xf32>
    %104 = arith.divf %102, %103 : vector<1x1xf32>
    %105 = vector.broadcast %104 : vector<1x1xf32> to vector<1x32xf32>
    %106 = arith.subf %98, %105 : vector<1x32xf32>
    %107 = arith.mulf %106, %106 : vector<1x32xf32>
    %cst_38 = arith.constant dense<0.000000e+00> : vector<1xf32>
    %108 = vector.multi_reduction <add>, %107, %cst_38 [1] : vector<1x32xf32> to vector<1xf32>
    %109 = vector.shape_cast %108 : vector<1xf32> to vector<1x1xf32>
    %cst_39 = arith.constant 3.200000e+01 : f32
    %110 = vector.broadcast %cst_39 : f32 to vector<1x1xf32>
    %111 = arith.divf %109, %110 : vector<1x1xf32>
    %112 = vector.broadcast %104 : vector<1x1xf32> to vector<1x32xf32>
    %113 = arith.subf %98, %112 : vector<1x32xf32>
    %cst_40 = arith.constant 9.99999974E-6 : f32
    %114 = vector.broadcast %cst_40 : f32 to vector<1x1xf32>
    %115 = arith.addf %111, %114 : vector<1x1xf32>
    %116 = math.rsqrt %115 : vector<1x1xf32>
    %117 = vector.broadcast %116 : vector<1x1xf32> to vector<1x32xf32>
    %118 = arith.mulf %113, %117 : vector<1x32xf32>
    %119 = arith.mulf %118, %99 : vector<1x32xf32>
    %120 = arith.addf %119, %100 : vector<1x32xf32>
    %c0_41 = arith.constant 0 : index
    %c0_42 = arith.constant 0 : index
    %121 = vector.load %arg13[%c0_41, %c0_42] : memref<32x128xbf16, #tpu.memory_space<vmem>>, vector<32x128xbf16>
    %c0_43 = arith.constant 0 : index
    %c0_44 = arith.constant 0 : index
    %122 = vector.load %arg14[%c0_43, %c0_44] : memref<1x128xf32, #tpu.memory_space<vmem>>, vector<1x128xf32>
    %c0_45 = arith.constant 0 : index
    %c0_46 = arith.constant 0 : index
    %123 = vector.load %arg15[%c0_45, %c0_46] : memref<128x32xbf16, #tpu.memory_space<vmem>>, vector<128x32xbf16>
    %c0_47 = arith.constant 0 : index
    %c0_48 = arith.constant 0 : index
    %124 = vector.load %arg16[%c0_47, %c0_48] : memref<1x32xf32, #tpu.memory_space<vmem>>, vector<1x32xf32>
    %125 = arith.truncf %120 : vector<1x32xf32> to vector<1x32xbf16>
    %cst_49 = arith.constant dense<0.000000e+00> : vector<1x128xf32>
    %126 = tpu.matmul %125, %121, %cst_49 {dimension_numbers = #tpu.dot_dimension_numbers<[1], [0], [0], [1], [0, 0, 1, 1], [], []>} : vector<1x32xbf16>, vector<32x128xbf16>, vector<1x128xf32> -> vector<1x128xf32>
    %127 = arith.addf %126, %122 : vector<1x128xf32>
    %cst_50 = arith.constant 5.000000e-01 : f32
    %128 = vector.broadcast %cst_50 : f32 to vector<1x128xf32>
    %129 = arith.mulf %128, %127 : vector<1x128xf32>
    %cst_51 = arith.constant 0.707106769 : f32
    %130 = vector.broadcast %cst_51 : f32 to vector<1x128xf32>
    %131 = arith.mulf %127, %130 : vector<1x128xf32>
    %132 = math.absf %131 : vector<1x128xf32>
    %cst_52 = arith.constant 0.327591091 : f32
    %133 = vector.broadcast %cst_52 : f32 to vector<1x128xf32>
    %134 = arith.mulf %133, %132 : vector<1x128xf32>
    %cst_53 = arith.constant 1.000000e+00 : f32
    %135 = vector.broadcast %cst_53 : f32 to vector<1x128xf32>
    %136 = arith.addf %135, %134 : vector<1x128xf32>
    %cst_54 = arith.constant 1.000000e+00 : f32
    %137 = vector.broadcast %cst_54 : f32 to vector<1x128xf32>
    %138 = arith.divf %137, %136 : vector<1x128xf32>
    %cst_55 = arith.constant 1.06140542 : f32
    %139 = vector.broadcast %cst_55 : f32 to vector<1x128xf32>
    %140 = arith.mulf %139, %138 : vector<1x128xf32>
    %cst_56 = arith.constant -1.45315206 : f32
    %141 = vector.broadcast %cst_56 : f32 to vector<1x128xf32>
    %142 = arith.addf %140, %141 : vector<1x128xf32>
    %143 = arith.mulf %142, %138 : vector<1x128xf32>
    %cst_57 = arith.constant 1.42141378 : f32
    %144 = vector.broadcast %cst_57 : f32 to vector<1x128xf32>
    %145 = arith.addf %143, %144 : vector<1x128xf32>
    %146 = arith.mulf %145, %138 : vector<1x128xf32>
    %cst_58 = arith.constant -0.284496725 : f32
    %147 = vector.broadcast %cst_58 : f32 to vector<1x128xf32>
    %148 = arith.addf %146, %147 : vector<1x128xf32>
    %149 = arith.mulf %148, %138 : vector<1x128xf32>
    %cst_59 = arith.constant 0.254829586 : f32
    %150 = vector.broadcast %cst_59 : f32 to vector<1x128xf32>
    %151 = arith.addf %149, %150 : vector<1x128xf32>
    %152 = arith.mulf %151, %138 : vector<1x128xf32>
    %cst_60 = arith.constant 0.000000e+00 : f32
    %153 = vector.broadcast %cst_60 : f32 to vector<1x128xf32>
    %154 = arith.subf %153, %132 : vector<1x128xf32>
    %155 = arith.mulf %154, %132 : vector<1x128xf32>
    %156 = math.exp %155 : vector<1x128xf32>
    %157 = arith.mulf %152, %156 : vector<1x128xf32>
    %cst_61 = arith.constant 1.000000e+00 : f32
    %158 = vector.broadcast %cst_61 : f32 to vector<1x128xf32>
    %159 = arith.subf %158, %157 : vector<1x128xf32>
    %cst_62 = arith.constant 0.000000e+00 : f32
    %160 = vector.broadcast %cst_62 : f32 to vector<1x128xf32>
    %161 = arith.cmpf olt, %131, %160 : vector<1x128xf32>
    %cst_63 = arith.constant 0.000000e+00 : f32
    %162 = vector.broadcast %cst_63 : f32 to vector<1x128xf32>
    %163 = arith.subf %162, %159 : vector<1x128xf32>
    %164 = arith.select %161, %163, %159 : vector<1x128xi1>, vector<1x128xf32>
    %cst_64 = arith.constant 1.000000e+00 : f32
    %165 = vector.broadcast %cst_64 : f32 to vector<1x128xf32>
    %166 = arith.addf %165, %164 : vector<1x128xf32>
    %167 = arith.mulf %129, %166 : vector<1x128xf32>
    %168 = arith.truncf %167 : vector<1x128xf32> to vector<1x128xbf16>
    %cst_65 = arith.constant dense<0.000000e+00> : vector<1x32xf32>
    %169 = tpu.matmul %168, %123, %cst_65 {dimension_numbers = #tpu.dot_dimension_numbers<[1], [0], [0], [1], [0, 0, 1, 1], [], []>} : vector<1x128xbf16>, vector<128x32xbf16>, vector<1x32xf32> -> vector<1x32xf32>
    %170 = arith.addf %169, %124 : vector<1x32xf32>
    %171 = arith.addf %98, %170 : vector<1x32xf32>
    %172 = arith.truncf %171 : vector<1x32xf32> to vector<1x32xbf16>
    %c0_66 = arith.constant 0 : index
    %c0_67 = arith.constant 0 : index
    %173 = vector.load %arg17[%c0_66, %c0_67] : memref<32x128xbf16, #tpu.memory_space<vmem>>, vector<32x128xbf16>
    %cst_68 = arith.constant dense<0.000000e+00> : vector<1x128xf32>
    %174 = tpu.matmul %172, %173, %cst_68 {dimension_numbers = #tpu.dot_dimension_numbers<[1], [0], [0], [1], [0, 0, 1, 1], [], []>} : vector<1x32xbf16>, vector<32x128xbf16>, vector<1x128xf32> -> vector<1x128xf32>
    %c0_69 = arith.constant 0 : index
    %c0_70 = arith.constant 0 : index
    %175 = vector.load %arg18[%c0_69, %c0_70] : memref<1x128xf32, #tpu.memory_space<vmem>>, vector<1x128xf32>
    %176 = arith.addf %174, %175 : vector<1x128xf32>
    %177 = vector.shape_cast %176 : vector<1x128xf32> to vector<1x1x128xf32>
    %c0_71 = arith.constant 0 : index
    %c0_72 = arith.constant 0 : index
    %c0_73 = arith.constant 0 : index
    %178 = vector.load %arg19[%c0_71, %c0_72, %c0_73] : memref<1x1x128xf32, #tpu.memory_space<vmem>>, vector<1x1x128xf32>
    tpu.vector_store %arg19[%c0_71, %c0_72, %c0_73], %177 {strides = array<i32>} : memref<1x1x128xf32, #tpu.memory_space<vmem>>, vector<1x1x128xf32>,
    return
  }
  func.func @transform_0(%arg0: i32) -> (i32, i32, i32) {
    %c0_i32 = arith.constant 0 : i32
    %c0_i32_0 = arith.constant 0 : i32
    %c0_i32_1 = arith.constant 0 : i32
    %c0_i32_2 = arith.constant 0 : i32
    return %c0_i32, %c0_i32_0, %c0_i32_1 : i32, i32, i32
  }
  func.func @transform_1(%arg0: i32) -> (i32, i32, i32) {
    %c0_i32 = arith.constant 0 : i32
    %c0_i32_0 = arith.constant 0 : i32
    %c0_i32_1 = arith.constant 0 : i32
    return %arg0, %c0_i32, %c0_i32_0 : i32, i32, i32
  }
  func.func @transform_2(%arg0: i32) -> (i32, i32) {
    %c0_i32 = arith.constant 0 : i32
    %c0_i32_0 = arith.constant 0 : i32
    %c0_i32_1 = arith.constant 0 : i32
    return %c0_i32, %c0_i32_0 : i32, i32
  }
  func.func @transform_3(%arg0: i32) -> (i32, i32) {
    %c0_i32 = arith.constant 0 : i32
    %c0_i32_0 = arith.constant 0 : i32
    %c0_i32_1 = arith.constant 0 : i32
    return %c0_i32, %c0_i32_0 : i32, i32
  }
  func.func @transform_4(%arg0: i32) -> (i32, i32) {
    %c0_i32 = arith.constant 0 : i32
    %c0_i32_0 = arith.constant 0 : i32
    %c0_i32_1 = arith.constant 0 : i32
    return %c0_i32, %c0_i32_0 : i32, i32
  }
  func.func @transform_5(%arg0: i32) -> (i32, i32) {
    %c0_i32 = arith.constant 0 : i32
    %c0_i32_0 = arith.constant 0 : i32
    %c0_i32_1 = arith.constant 0 : i32
    return %c0_i32, %c0_i32_0 : i32, i32
  }
  func.func @transform_6(%arg0: i32) -> (i32, i32) {
    %c0_i32 = arith.constant 0 : i32
    %c0_i32_0 = arith.constant 0 : i32
    %c0_i32_1 = arith.constant 0 : i32
    return %c0_i32, %c0_i32_0 : i32, i32
  }
  func.func @transform_7(%arg0: i32) -> (i32, i32) {
    %c0_i32 = arith.constant 0 : i32
    %c0_i32_0 = arith.constant 0 : i32
    %c0_i32_1 = arith.constant 0 : i32
    return %c0_i32, %c0_i32_0 : i32, i32
  }
  func.func @transform_8(%arg0: i32) -> (i32, i32) {
    %c0_i32 = arith.constant 0 : i32
    %c0_i32_0 = arith.constant 0 : i32
    %c0_i32_1 = arith.constant 0 : i32
    return %c0_i32, %c0_i32_0 : i32, i32
  }
  func.func @transform_9(%arg0: i32) -> (i32, i32) {
    %c0_i32 = arith.constant 0 : i32
    %c0_i32_0 = arith.constant 0 : i32
    %c0_i32_1 = arith.constant 0 : i32
    return %c0_i32, %c0_i32_0 : i32, i32
  }
  func.func @transform_10(%arg0: i32) -> (i32, i32) {
    %c0_i32 = arith.constant 0 : i32
    %c0_i32_0 = arith.constant 0 : i32
    %c0_i32_1 = arith.constant 0 : i32
    return %c0_i32, %c0_i32_0 : i32, i32
  }
  func.func @transform_11(%arg0: i32) -> (i32, i32) {
    %c0_i32 = arith.constant 0 : i32
    %c0_i32_0 = arith.constant 0 : i32
    %c0_i32_1 = arith.constant 0 : i32
    return %c0_i32, %c0_i32_0 : i32, i32
  }
  func.func @transform_12(%arg0: i32) -> (i32, i32) {
    %c0_i32 = arith.constant 0 : i32
    %c0_i32_0 = arith.constant 0 : i32
    %c0_i32_1 = arith.constant 0 : i32
    return %c0_i32, %c0_i32_0 : i32, i32
  }
  func.func @transform_13(%arg0: i32) -> (i32, i32) {
    %c0_i32 = arith.constant 0 : i32
    %c0_i32_0 = arith.constant 0 : i32
    %c0_i32_1 = arith.constant 0 : i32
    return %c0_i32, %c0_i32_0 : i32, i32
  }
  func.func @transform_14(%arg0: i32) -> (i32, i32) {
    %c0_i32 = arith.constant 0 : i32
    %c0_i32_0 = arith.constant 0 : i32
    %c0_i32_1 = arith.constant 0 : i32
    return %c0_i32, %c0_i32_0 : i32, i32
  }
  func.func @transform_15(%arg0: i32) -> (i32, i32) {
    %c0_i32 = arith.constant 0 : i32
    %c0_i32_0 = arith.constant 0 : i32
    %c0_i32_1 = arith.constant 0 : i32
    return %c0_i32, %c0_i32_0 : i32, i32
  }
  func.func @transform_16(%arg0: i32) -> (i32, i32) {
    %c0_i32 = arith.constant 0 : i32
    %c0_i32_0 = arith.constant 0 : i32
    %c0_i32_1 = arith.constant 0 : i32
    return %c0_i32, %c0_i32_0 : i32, i32
  }
  func.func @transform_17(%arg0: i32) -> (i32, i32) {
    %c0_i32 = arith.constant 0 : i32
    %c0_i32_0 = arith.constant 0 : i32
    %c0_i32_1 = arith.constant 0 : i32
    return %c0_i32, %c0_i32_0 : i32, i32
  }
  func.func @transform_18(%arg0: i32) -> (i32, i32, i32) {
    %c0_i32 = arith.constant 0 : i32
    %c0_i32_0 = arith.constant 0 : i32
    %c0_i32_1 = arith.constant 0 : i32
    return %arg0, %c0_i32, %c0_i32_0 : i32, i32, i32
  }
}

</mosaic_0001>

<bundles_post_ra>
// kernel: _lambda_.3
= control target key start
LH: loop header
LB: loop body
LE: loop exit
PB: predicated region body
PF: predicated region fallthrough
CT: control target
= control target key end

     0   :  { %s426_s15 = smov 0   ;;  %s461_s0 = inlined_call_operand.vmem [shape: bf16[2,16,48], index: 0, kind: input, shape index: {}]   ;;  %s462_s1 = inlined_call_operand.vmem [shape: bf16[48,32], index: 1, kind: input, shape index: {}]   ;;  %s463_s2 = inlined_call_operand.vmem [shape: f32[1,32], index: 2, kind: input, shape index: {}]   ;;  %s464_s3 = inlined_call_operand.vmem [shape: f32[16,32], index: 3, kind: input, shape index: {}]   ;;  %s465_s4 = inlined_call_operand.vmem [shape: f32[2,16,32], index: 4, kind: output, shape index: {}]  }
   0x1 LB: > { %s344_s16 = sadd.s32 4294967295, %s397_s15   ;;  %p348_p0 = scmp.ge.s32.totalorder %s397_s15, 1  ;;  %s397_s15 = sphi %s426_s15, %s14_s15  }
   0x2   : > { %p162_p1 = scmp.lt.s32.totalorder %s397_s15, 3 }
   0x4   : > { %p163_p2 = pnand %p348_p0, %p162_p1 }
   0x5   : > { %v387_v0 = vld [vmem:[%s462_s1] sm:$0xff] (!%p163_p2)   ;;  %v399_v1 = vmov (!%p163_p2), 0.0   ;;  %v388_v2 = vld [vmem:[%s462_s1 + $0x8] sm:$0xff] (!%p163_p2)   ;;  %vm400_vm0 = vmmov (!%p163_p2), 0   ;;  %p188_p3 = scmp.lt.s32.totalorder (!%p163_p2), %s344_s16, 1  ;;  %v389_v3 = vld [vmem:[%s462_s1 + $0x10] sm:$0xff] (!%p163_p2)  }
   0x6   : > { %166 = sbr.rel (%p163_p2) target bundleno = 237 (0xed), region = 36  ;;  %367 = vmatprep.subr.bf16.mxu0 (!%p163_p2), %v399_v1  ;;  %373 = vmatprep.mubr.msk.bf16.mxu0 (!%p163_p2), %vm400_vm0, %v399_v1  ;;  %vm237_vm1 = vcmask (!%p163_p2), 392192   ;;  %v353_v5 = vld [vmem:[%s463_s2] ss:$0 sm:$0xff] (!%p163_p2)  ;;  %vm286_vm2 = vcmask (!%p163_p2), 261120   ;;  %v283_v11 = vld [vmem:[%s464_s3 + $0x8] sm:$0xff] (!%p163_p2) }
   0x7   : > { %368 = vmatpush3.bf16.msra.mxu0 (!%p163_p2), %v387_v0  ;;  %v282_v7 = vld [vmem:[%s464_s3] sm:$0xff] (!%p163_p2) }
   0x8   : > { %369 = vmatprep.subr.bf16.mxu0 (!%p163_p2), %v399_v1 }
   0xb   : > { %370 = vmatpush3.bf16.msra.mxu0 (!%p163_p2), %v388_v2 }
   0xc   : > { %371 = vmatprep.subr.bf16.mxu0 (!%p163_p2), %v399_v1 }
   0xd   : > { %s467_s16 = smov (!%p188_p3, %s344_s16), 1 }
   0xe   : > { %s361_s23 = sshll.u32 %s467_s16, 3  ;;  %s362_s29 = sshll.u32 %s467_s16, 4 }
   0xf   : > { %s192_s26 = scalar_lea.vmem %s461_s0, %s361_s23  ;;  %372 = vmatpush3.bf16.msra.mxu0 %v389_v3  ;;  %s197_s8 = scalar_lea.vmem %s465_s4, %s362_s29 }
  0x10   : > { %v390_v4 = vld [vmem:[%s192_s26] sm:$0xff]  }
  0x12   : > { %374 = vmatmul.mubr.msk.bf16.vlgmr.msra.gmra.mrb[0].mxu0 %vm237_vm1, %v390_v4 }
  0xe5   : > { %v275_v6 = vpop.f32.mrb[0].mxu0 }
  0xe6   : > { %v276_v8 = vadd.f32 %v353_v5, %v275_v6  ;;  %v375_v9 = vpop.f32.mrb[1].mxu0 }
  0xe7   : > { %v278_v10 = vpop.f32.mrb[2].mxu0 }
  0xe8   : > { %v284_v12 = vadd.f32 %v282_v7, %v276_v8  ;;  %v279_v13 = vadd.f32 %v353_v5, %v278_v10  ;;  %v376_v14 = vpop.f32.mrb[3].mxu0 }
  0xea   : > { %287 = vst.msk [vmem:[%s197_s8] sm:$0xff] %vm286_vm2, %v284_v12  ;;  %v285_v15 = vadd.f32 %v283_v11, %v279_v13 }
  0xec   : > { %288 = vst.msk [vmem:[%s197_s8 + $0x8] sm:$0xff] %vm286_vm2, %v285_v15 }
  0xed PF: > { %s14_s15 = sadd.s32 1, %s397_s15  }
  0xee   : > { %p11_p4 = scmp.ge.s32.totalorder %s14_s15, 4  }
  0xf0   :  { %13 = sbr.rel (!%p11_p4) target bundleno = 1 (0x1), region = 66 }

// kernel: _lambda_.5
= control target key start
LH: loop header
LB: loop body
LE: loop exit
PB: predicated region body
PF: predicated region fallthrough
CT: control target
= control target key end

     0   :  { %s2406_s0 = inlined_call_operand.vmem [shape: f32[1,1,32], index: 0, kind: input, shape index: {}]   ;;  %s2407_s1 = inlined_call_operand.vmem [shape: bf16[2,16,32], index: 1, kind: input, shape index: {}]   ;;  %s2408_s2 = inlined_call_operand.vmem [shape: f32[1,32], index: 2, kind: input, shape index: {}]   ;;  %s2409_s3 = inlined_call_operand.vmem [shape: f32[1,32], index: 3, kind: input, shape index: {}]   ;;  %s2410_s4 = inlined_call_operand.vmem [shape: bf16[32,32], index: 4, kind: input, shape index: {}]   ;;  %s2411_s5 = inlined_call_operand.vmem [shape: f32[1,32], index: 5, kind: input, shape index: {}]   ;;  %s2412_s6 = inlined_call_operand.vmem [shape: bf16[32,64], index: 6, kind: input, shape index: {}]   ;;  %s2413_s7 = inlined_call_operand.vmem [shape: f32[1,64], index: 7, kind: input, shape index: {}]   ;;  %s2414_s8 = inlined_call_operand.vmem [shape: bf16[32,32], index: 8, kind: input, shape index: {}]   ;;  %s2415_s9 = inlined_call_operand.vmem [shape: f32[1,32], index: 9, kind: input, shape index: {}]   ;;  %s2416_s10 = inlined_call_operand.vmem [shape: f32[1,32], index: 10, kind: input, shape index: {}]   ;;  %s2417_s11 = inlined_call_operand.vmem [shape: f32[1,32], index: 11, kind: input, shape index: {}]   ;;  %s2418_s12 = inlined_call_operand.vmem [shape: bf16[32,128], index: 12, kind: input, shape index: {}]   ;;  %s2419_s13 = inlined_call_operand.vmem [shape: f32[1,128], index: 13, kind: input, shape index: {}]   ;;  %s2420_s14 = inlined_call_operand.vmem [shape: bf16[128,32], index: 14, kind: input, shape index: {}]   ;;  %s2421_s15 = inlined_call_operand.vmem [shape: f32[1,32], index: 15, kind: input, shape index: {}]   ;;  %s2422_s16 = inlined_call_operand.vmem [shape: bf16[32,128], index: 16, kind: input, shape index: {}]   ;;  %s2423_s17 = inlined_call_operand.vmem [shape: f32[1,128], index: 17, kind: input, shape index: {}]   ;;  %s2424_s18 = inlined_call_operand.hbm [shape: f32[2,1,128], index: 18, kind: output, shape index: {}]  }
   0x1   :  { %2425 = sst [smem:[#allocation6_spill]] %s2406_s0 }
   0x2   :  { %2426 = sst [smem:[#allocation7_spill]] %s2407_s1 }
   0x3   :  { %2427 = sst [smem:[#allocation8_spill]] %s2408_s2 }
   0x4   :  { %2428 = sst [smem:[#allocation9_spill]] %s2409_s3 }
   0x5   :  { %2429 = sst [smem:[#allocation10_spill]] %s2410_s4 }
   0x6   :  { %2430 = sst [smem:[#allocation11_spill]] %s2411_s5 }
   0x7   :  { %23 = vsyncpa [#allocation3], 0 }
   0x8   :  { %25 = vsyncpa [#allocation3 + $0x1], 0  ;;  %s2108_s27 = smov 0   ;;  %s2110_s28 = smov 0  }
   0x9   :  { %s2112_s29 = smov 0   ;;  %s2114_s30 = smov 0  }
   0xa LB: > { %s2129_s0 = sadd.s32 4294967295, %s2001_s30   ;;  %s1636_s19 = sadd.s32 4294967294, %s2001_s30   ;;  %s2001_s30 = sphi %s2114_s30, %s2444_s30   ;;  %s1997_s29 = sphi %s2112_s29, %s2443_s29   ;;  %s1993_s28 = sphi %s2110_s28, %s2442_s28   ;;  %s1989_s27 = sphi %s2108_s27, %s2441_s27  }
   0xb   : > { %s2133_s1 = sadd.s32 1, %s2001_s30   ;;  %s421_s20 = sadd.s32 1, %s1997_s29 }
   0xc   : > { %s418_s21 = ssub.s32 %s2001_s30, %s2133_s1  ;;  %p431_p0 = scmp.ne.s32.totalorder %s1997_s29, %s1993_s28 }
   0xd   : > { %p419_p1 = scmp.eq.s32.totalorder %s418_s21, 0  ;;  %p432_p2 = scmp.eq.s32.totalorder %s2129_s0, 1 }
   0xe   : > { %p437_p3 = scmp.ne.s32.totalorder %s1993_s28, %s1989_s27  ;;  %p438_p4 = scmp.eq.s32.totalorder %s1636_s19, 1 }
   0xf   : > { %s2144_s22 = scalar_select %p419_p1, %s1997_s29, %s421_s20  }
  0x10   : > { %p2146_p5 = por %p432_p2, %p431_p0  ;;  %p2150_p6 = por %p438_p4, %p437_p3 }
  0x11   : > { %2431 = sst [smem:[#allocation5_spill]] %s2144_s22  ;;  %p1639_p7 = scmp.ge.s32.totalorder %s2001_s30, 1 }
  0x12   : > { %p515_p8 = scmp.lt.s32.totalorder %s2001_s30, 3 }
  0x14   : > { %p516_p9 = pnand %p1639_p7, %p515_p8 }
  0x15   : > { %p568_p10 = scmp.lt.s32.totalorder (!%p516_p9), %s2129_s0, 1  ;;  %s2434_s20 = sld [smem:[#allocation7_spill]] (!%p516_p9)  ;;  %vm580_vm0 = vcmask (!%p516_p9), 261120   ;;  %v2003_v16 = vmov (!%p516_p9), 0.0   ;;  %vm2004_vm1 = vmmov (!%p516_p9), 0   ;;  %v1897_v20 = vld [vmem:[%s2412_s6] sm:$0xff] (!%p516_p9)  }
  0x16   : > { %519 = sbr.rel (%p516_p9) target bundleno = 2856 (0xb28), region = 92  ;;  %s2435_s4 = sld [smem:[#allocation10_spill]] (!%p516_p9)  ;;  %1724 = vmatprep.subr.bf16.mxu1 (!%p516_p9), %v2003_v16  ;;  %1740 = vmatprep.subr.bf16.mxu0 (!%p516_p9), %v2003_v16  ;;  %v1898_v21 = vld [vmem:[%s2412_s6 + $0x8] sm:$0xff] (!%p516_p9)   ;;  %v1647_v45 = vld [vmem:[%s2413_s7] ss:$0 sm:$0xff] (!%p516_p9)  ;;  %vm797_vm2 = vcmask (!%p516_p9), 64512  }
  0x17   : > { %s2436_s22 = sld [smem:[#allocation6_spill]] (!%p516_p9)  ;;  %1728 = vmatprep.mubr.msk.bf16.mxu1 (!%p516_p9), %vm2004_vm1, %v2003_v16  ;;  %1742 = vmatprep.mubr.msk.bf16.mxu0 (!%p516_p9), %vm2004_vm1, %v2003_v16  ;;  %s2438_s3 = sld [smem:[#allocation9_spill]] (!%p516_p9)  ;;  %vm982_vm3 = vcmask (!%p516_p9), 122880   ;;  %vm1035_vm4 = vcmask (!%p516_p9), 130048   ;;  %vm1234_vm5 = vcmask (!%p516_p9), 195584   ;;  %vm1295_vm6 = vcmask (!%p516_p9), 253952  }
  0x18   : > { %s2439_s5 = sld [smem:[#allocation11_spill]] (!%p516_p9)  ;;  %s2005_s19 = smov (!%p516_p9), 120  }
  0x1c   : > { %v1895_v15 = vld [vmem:[%s2435_s4] sm:$0xff] (!%p516_p9)   ;;  %v1896_v17 = vld [vmem:[%s2435_s4 + $0x8] sm:$0xff] (!%p516_p9)  }
  0x1d   : > { %s569_s24 = scalar_select %p568_p10, %s2129_s0, 1  ;;  %1725 = vmatpush3.bf16.msra.mxu1 %v1895_v15  ;;  %v2177_v18 = vld [vmem:[%s2436_s22] sm:$0x1] }
  0x1e   : > { %1726 = vmatprep.subr.bf16.mxu1 %v2003_v16  ;;  %v640_v19 = vpack.c.bf16 %v2177_v18, %v2177_v18  ;;  %v1643_v34 = vld [vmem:[%s2438_s3] ss:$0 sm:$0xff]  ;;  %s2007_s22 = smov 104   ;;  %s2012_s3 = smov [#allocation2]  }
  0x1f   : > { %s1679_s25 = sshll.u32 %s569_s24, 3  ;;  %v629_v39 = vld [vmem:[%s2439_s5] sm:$0x1]  ;;  %s2006_s24 = smov 112  }
  0x20   : > { %s572_s21 = scalar_lea.vmem %s2434_s20, %s1679_s25  ;;  %s2008_s25 = smov 96  }
  0x21   : > { %v1681_v0 = vld [vmem:[%s572_s21] sm:$0xff]   ;;  %1727 = vmatpush3.bf16.msra.mxu1 %v1896_v17  ;;  %s2437_s21 = sld [smem:[#allocation8_spill]]  ;;  %s2009_s20 = smov 8  }
  0x22   : > { %v1682_v1 = vunpack.c.l.bf16 %v1681_v0  ;;  %v1683_v2 = vunpack.c.h.bf16 %v1681_v0  ;;  %1732 = vmatprep.subr.bf16.mxu1 %v2003_v16  ;;  %s1943_s5 = sshll.u32 %s2012_s3, 4  ;;  %s1944_s5 = int_to_ptr.vmem [resolvable:$false] %s1943_s5 }
  0x24   : > { %v581_v3 = vsel %vm580_vm0, %v1682_v1, 0.0  ;;  %v584_v4 = vsel %vm580_vm0, %v1683_v2, 0.0  ;;  %1729 = vmatmul.mubr.msk.bf16.vlgmr.msra.gmra.mrb[0].mxu1 %vm580_vm0, %v640_v19 }
  0x25   : > { %582 = vadd.xlane.f32.xlu0 %v581_v3  ;;  %1736 = vmatprep.mubr.msk.bf16.mxu1 %vm2004_vm1, %v2003_v16 }
  0x26   : > { %1733 = vmatpush3.bf16.msra.mxu1 %v1897_v20 }
  0x27   : > { %1734 = vmatprep.subr.bf16.mxu1 %v2003_v16  ;;  %v1642_v30 = vld [vmem:[%s2437_s21] ss:$0 sm:$0xff]  ;;  %s2010_s21 = smov 16  }
  0x29   : > { %585 = vadd.xlane.f32.xlu0 %v584_v4 }
  0x2a   : > { %1735 = vmatpush3.bf16.msra.mxu1 %v1898_v21 }
  0x2b   : > { %1746 = vmatprep.subr.bf16.mxu1 %v2003_v16 }
  0xb2   : > { %v583_v5 = vpop.xlane.xlu0 %582 }
  0xb3   : > { %v588_v6 = vmul.f32 0.03125, %v583_v5 }
  0xb5   : > { %v590_v7 = vsub.f32 %v1682_v1, %v588_v6 }
  0xb6   : > { %v586_v8 = vpop.xlane.xlu0 %585 }
  0xb7   : > { %v589_v9 = vmul.f32 0.03125, %v586_v8  ;;  %v592_v10 = vmul.f32 %v590_v7, %v590_v7 }
  0xb9   : > { %v591_v11 = vsub.f32 %v1683_v2, %v589_v9  ;;  %v594_v12 = vsel %vm580_vm0, %v592_v10, 0.0 }
  0xba   : > { %595 = vadd.xlane.f32.xlu1 %v594_v12 }
  0xbb   : > { %v593_v13 = vmul.f32 %v591_v11, %v591_v11 }
  0xbd   : > { %v597_v14 = vsel %vm580_vm0, %v593_v13, 0.0 }
  0xbe   : > { %598 = vadd.xlane.f32.xlu1 %v597_v14 }
  0xf7   : > { %v690_v40 = vpop.f32.mrb[0].mxu1 }
  0xf8   : > { %v691_v41 = vadd.f32 %v690_v40, %v629_v39  ;;  %v1730_v42 = vpop.f32.mrb[1].mxu1 }
  0xf9   : > { %v693_v43 = vpop.f32.mrb[2].mxu1 }
  0xfa   : > { %v1731_v44 = vpop.f32.mrb[3].mxu1  ;;  %760 = vrot.lane.b32.xlu1 %v691_v41, %s2005_s19  ;;  %v769_v55 = vpack.c.bf16 %v691_v41, %v691_v41 }
 0x147   : > { %v596_v22 = vpop.xlane.xlu1 %595 }
 0x148   : > { %v600_v23 = vmul.f32 0.03125, %v596_v22 }
 0x14a   : > { %v602_v24 = vadd.f32 1e-05, %v600_v23 }
 0x14b   : > { %v599_v25 = vpop.xlane.xlu1 %598 }
 0x14c   : > { %1913 = vrsqrt.f32 %v602_v24  ;;  %v601_v26 = vmul.f32 0.03125, %v599_v25 }
 0x14e   : > { %v603_v27 = vadd.f32 1e-05, %v601_v26 }
 0x150   : > { %1915 = vrsqrt.f32 %v603_v27 }
 0x156   : > { %v1914_v28 = vpop.eup %1913 }
 0x157   : > { %v606_v29 = vmul.f32 %v1914_v28, %v590_v7 }
 0x159   : > { %v614_v32 = vmul.f32 %v1642_v30, %v606_v29 }
 0x15a   : > { %v1916_v31 = vpop.eup %1915 }
 0x15b   : > { %v607_v33 = vmul.f32 %v1916_v31, %v591_v11  ;;  %v622_v36 = vadd.f32 %v1643_v34, %v614_v32 }
 0x15d   : > { %v615_v35 = vmul.f32 %v1642_v30, %v607_v33 }
 0x15f   : > { %v623_v37 = vadd.f32 %v1643_v34, %v615_v35 }
 0x161   : > { %v696_v38 = vpack.c.bf16 %v623_v37, %v622_v36 }
 0x163   : > { %1737 = vmatmul.mubr.msk.bf16.vlgmr.msra.gmra.mrb[4].mxu1 %vm580_vm0, %v696_v38 }
 0x164   : > { %1748 = vmatprep.mubr.msk.bf16.mxu1 %vm2004_vm1, %v2003_v16 }
 0x16c   : > { %v761_v56 = vpop.permute.xlu1 %760 }
 0x16d   : > { %v770_v8 = vpack.c.bf16 %v761_v56, %v761_v56 }
 0x236   : > { %v752_v46 = vpop.f32.mrb[4].mxu1 }
 0x237   : > { %v1738_v47 = vpop.f32.mrb[5].mxu1  ;;  %v753_v49 = vadd.f32 %v1647_v45, %v752_v46 }
 0x238   : > { %v755_v48 = vpop.f32.mrb[6].mxu1 }
 0x239   : > { %v756_v50 = vadd.f32 %v1647_v45, %v755_v48  ;;  %v1739_v51 = vpop.f32.mrb[7].mxu1 }
 0x23b   : > { %v1885_v52 = vpack.i.bf16 %v756_v50, %v753_v49  ;;  %v2212_v53 = vpack.c.bf16 %v756_v50, %v753_v49 }
 0x23d   : > { %1886 = vrot.lane.b32.xlu1 %v1885_v52, %s2006_s24  ;;  %1881 = vrot.lane.b32.xlu0 %v1885_v52, %s2005_s19  ;;  %v802_v54 = vsel %vm797_vm2, %v2212_v53, 0 }
 0x23e   : > { %1741 = vmatpush3.bf16.xpose.msra.mxu0 %v802_v54 }
 0x23f   : > { %1752 = vmatprep.subr.bf16.mxu0 %v2003_v16 }
 0x241   : > { %1891 = vrot.lane.b32.xlu1 %v1885_v52, %s2007_s22  ;;  %763 = vrot.lane.b32.xlu0 %v691_v41, %s2006_s24  ;;  %s566_s24 = sand.u32 1, %s1993_s28  }
 0x242   : > { %s567_s26 = scalar_lea.vmem [#allocation2], %s566_s24 }
 0x243   : > { %s1581_s19 = sshll.u32 %s567_s26, 4  ;;  %s2366_s19 = int_to_ptr.vmem [resolvable:$true] %s1581_s19 }
 0x244   : > { %p1946_p0 = scmp.lt.s32.totalorder %s2366_s19, %s1944_s5 }
 0x245   : > { %766 = vrot.lane.b32.xlu1 %v691_v41, %s2007_s22  ;;  %1743 = vmatmul.mubr.msk.bf16.vlgmr.msra.gmra.mrb[0].mxu0 %vm797_vm2, %v769_v55  ;;  %s1569_s22 = scalar_lea.sflag [#allocation3], %s566_s24 }
 0x246   : > { %1754 = vmatprep.mubr.msk.bf16.mxu0 %vm2004_vm1, %v2003_v16 }
 0x2af   : > { %v1882_v57 = vpop.permute.xlu0 %1881  ;;  %v1887_v58 = vpop.permute.xlu1 %1886 }
 0x2b0   : > { %v1884_v59 = vunpack.i.h.bf16 %v1882_v57  ;;  %v1883_v60 = vunpack.i.l.bf16 %v1882_v57  ;;  %v1889_v61 = vunpack.i.h.bf16 %v1887_v58  ;;  %v1888_v62 = vunpack.i.l.bf16 %v1887_v58 }
 0x2b2   : > { %v2220_v63 = vpack.c.bf16 %v1884_v59, %v1883_v60  ;;  %v2222_v0 = vpack.c.bf16 %v1889_v61, %v1888_v62 }
 0x2b3   : > { %v1892_v1 = vpop.permute.xlu1 %1891  ;;  %v764_v6 = vpop.permute.xlu0 %763 }
 0x2b4   : > { %v1894_v2 = vunpack.i.h.bf16 %v1892_v1  ;;  %v1893_v3 = vunpack.i.l.bf16 %v1892_v1  ;;  %v848_v4 = vsel %vm797_vm2, %v2220_v63, 0  ;;  %v894_v5 = vsel %vm797_vm2, %v2222_v0, 0 }
 0x2b5   : > { %1747 = vmatpush3.bf16.xpose.msra.mxu1 %v848_v4  ;;  %1753 = vmatpush3.bf16.xpose.msra.mxu0 %v894_v5  ;;  %v771_v9 = vpack.c.bf16 %v764_v6, %v764_v6 }
 0x2b6   : > { %1758 = vmatprep.subr.bf16.mxu1 %v2003_v16  ;;  %1764 = vmatprep.subr.bf16.mxu0 %v2003_v16  ;;  %v2230_v7 = vpack.c.bf16 %v1894_v2, %v1893_v3 }
 0x2b7   : > { %v767_v11 = vpop.permute.xlu1 %766 }
 0x2b8   : > { %v940_v10 = vsel %vm797_vm2, %v2230_v7, 0  ;;  %v772_v12 = vpack.c.bf16 %v767_v11, %v767_v11  ;;  %v1899_v11 = vld [vmem:[%s2414_s8] sm:$0xff]  }
 0x2bc   : > { %1749 = vmatmul.mubr.msk.bf16.vlgmr.msra.gmra.mrb[8].mxu1 %vm797_vm2, %v770_v8  ;;  %1755 = vmatmul.mubr.msk.bf16.vlgmr.msra.gmra.mrb[4].mxu0 %vm797_vm2, %v771_v9 }
 0x2bd   : > { %1759 = vmatpush3.bf16.xpose.msra.mxu1 %v940_v10  ;;  %1760 = vmatprep.mubr.msk.bf16.mxu1 %vm2004_vm1, %v2003_v16 }
 0x2be   : > { %1770 = vmatprep.subr.bf16.mxu1 %v2003_v16  ;;  %1766 = vmatprep.mubr.msk.bf16.mxu0 %vm2004_vm1, %v2003_v16 }
 0x2c4   : > { %1761 = vmatmul.mubr.msk.bf16.vlgmr.msra.gmra.mrb[12].mxu1 %vm797_vm2, %v772_v12 }
 0x2c5   : > { %1772 = vmatprep.mubr.msk.bf16.mxu1 %vm2004_vm1, %v2003_v16 }
 0x318   : > { %v838_v13 = vpop.f32.mrb[0].mxu0 }
 0x319   : > { %v1744_v14 = vpop.f32.mrb[1].mxu0  ;;  %v983_v15 = vsel %vm982_vm3, %v838_v13, -inf }
 0x31a   : > { %984 = vmax.xlane.f32.xlu0 %v983_v15  ;;  %v841_v17 = vpop.f32.mrb[2].mxu0 }
 0x31b   : > { %v1745_v19 = vpop.f32.mrb[3].mxu0 }
 0x38f   : > { %v884_v20 = vpop.f32.mrb[8].mxu1  ;;  %v930_v21 = vpop.f32.mrb[4].mxu0 }
 0x390   : > { %v1750_v22 = vpop.f32.mrb[9].mxu1  ;;  %v986_v23 = vsel %vm982_vm3, %v884_v20, -inf  ;;  %v1756_v24 = vpop.f32.mrb[5].mxu0  ;;  %v989_v26 = vsel %vm982_vm3, %v930_v21, -inf }
 0x391   : > { %987 = vmax.xlane.f32.xlu1 %v986_v23  ;;  %v887_v25 = vpop.f32.mrb[10].mxu1  ;;  %990 = vmax.xlane.f32.xlu0 %v989_v26  ;;  %v933_v27 = vpop.f32.mrb[6].mxu0  ;;  %v1900_v26 = vld [vmem:[%s2414_s8 + $0x8] sm:$0xff]  }
 0x392   : > { %v1751_v28 = vpop.f32.mrb[11].mxu1  ;;  %v1757_v29 = vpop.f32.mrb[7].mxu0 }
 0x397   : > { %v976_v30 = vpop.f32.mrb[12].mxu1 }
 0x398   : > { %v1762_v31 = vpop.f32.mrb[13].mxu1  ;;  %v992_v32 = vsel %vm982_vm3, %v976_v30, -inf }
 0x399   : > { %v979_v33 = vpop.f32.mrb[14].mxu1  ;;  %993 = vmax.xlane.f32.xlu0 %v992_v32 }
 0x39a   : > { %v1763_v34 = vpop.f32.mrb[15].mxu1 }
 0x3a7   : > { %v985_v35 = vpop.xlane.xlu0 %984 }
 0x3a8   : > { %v995_v36 = vsub.f32 %v838_v13, %v985_v35 }
 0x3aa   : > { %v999_v37 = vmul.f32 1.442695, %v995_v36 }
 0x3ac   : > { %1917 = vpow2.f32 %v999_v37 }
 0x3b6   : > { %v1918_v38 = vpop.eup %1917 }
 0x3b7   : > { %v1007_v39 = vsel %vm982_vm3, %v1918_v38, 0.0 }
 0x3b8   : > { %1008 = vadd.xlane.f32.xlu0 %v1007_v39 }
 0x41e   : > { %v988_v40 = vpop.xlane.xlu1 %987  ;;  %v991_v42 = vpop.xlane.xlu0 %990 }
 0x41f   : > { %v996_v41 = vsub.f32 %v884_v20, %v988_v40  ;;  %v997_v43 = vsub.f32 %v930_v21, %v991_v42 }
 0x421   : > { %v1001_v44 = vmul.f32 1.442695, %v996_v41  ;;  %v1003_v45 = vmul.f32 1.442695, %v997_v43 }
 0x423   : > { %1919 = vpow2.f32 %v1001_v44 }
 0x424   : > { %1921 = vpow2.f32 %v1003_v45 }
 0x426   : > { %v994_v50 = vpop.xlane.xlu0 %993 }
 0x427   : > { %v998_v51 = vsub.f32 %v976_v30, %v994_v50 }
 0x429   : > { %v1005_v52 = vmul.f32 1.442695, %v998_v51  ;;  %v1901_v51 = vld [vmem:[%s2418_s12] sm:$0xff]  }
 0x42b   : > { %1923 = vpow2.f32 %v1005_v52 }
 0x42d   : > { %v1920_v46 = vpop.eup %1919 }
 0x42e   : > { %v1922_v47 = vpop.eup %1921  ;;  %v1010_v48 = vsel %vm982_vm3, %v1920_v46, 0.0 }
 0x42f   : > { %1011 = vadd.xlane.f32.xlu1 %v1010_v48  ;;  %v1013_v49 = vsel %vm982_vm3, %v1922_v47, 0.0 }
 0x430   : > { %1014 = vadd.xlane.f32.xlu0 %v1013_v49 }
 0x435   : > { %v1924_v54 = vpop.eup %1923 }
 0x436   : > { %v1016_v55 = vsel %vm982_vm3, %v1924_v54, 0.0 }
 0x440   : > { %1080 = vrot.lane.b32.xlu1 %v2220_v63, %s2008_s25 }
 0x444   : > { %1127 = vrot.lane.b32.xlu1 %v2222_v0, %s2008_s25 }
 0x445   : > { %v1009_v56 = vpop.xlane.xlu0 %1008 }
 0x446   : > { %1032 = vrot.lane.b32.xlu0 %v2212_v53, %s2008_s25  ;;  %1925 = vrcp.f32 %v1009_v56 }
 0x450   : > { %v1926_v57 = vpop.eup %1925 }
 0x451   : > { %v1020_v60 = vmul.f32 %v1926_v57, %v1918_v38  ;;  %v639_v38 = vld [vmem:[%s2415_s9] sm:$0x1] }
 0x452   : > { %v1293_v57 = vld [vmem:[%s2416_s10] sm:$0x1] }
 0x453   : > { %v1027_v62 = vpack.c.bf16 %v1020_v60, %v1020_v60 }
 0x468   : > { %1017 = vadd.xlane.f32.xlu1 %v1016_v55 }
 0x479   : > { %1174 = vrot.lane.b32.xlu1 %v2230_v7, %s2008_s25  ;;  %s2011_s25 = smov 24  }
 0x4bc   : > { %v1012_v58 = vpop.xlane.xlu1 %1011 }
 0x4bd   : > { %1927 = vrcp.f32 %v1012_v58  ;;  %v1015_v59 = vpop.xlane.xlu0 %1014 }
 0x4be   : > { %1929 = vrcp.f32 %v1015_v59  ;;  %v1294_v59 = vld [vmem:[%s2417_s11] sm:$0x1] }
 0x4c0   : > { %v1081_v61 = vpop.permute.xlu1 %1080 }
 0x4c1   : > { %v1033_v53 = vpop.permute.xlu0 %1032  ;;  %1771 = vmatpush3.bf16.msra.mxu1 %v1081_v61 }
 0x4c2   : > { %1765 = vmatpush3.bf16.msra.mxu0 %v1033_v53  ;;  %1782 = vmatprep.subr.bf16.mxu1 %v2003_v16 }
 0x4c3   : > { %1776 = vmatprep.subr.bf16.mxu0 %v2003_v16 }
 0x4c4   : > { %v1128_v63 = vpop.permute.xlu1 %1127 }
 0x4c5   : > { %1767 = vmatmul.mubr.msk.bf16.vlgmr.msra.gmra.mrb[8].mxu0 %vm1035_vm4, %v1027_v62  ;;  %v1903_v62 = vld [vmem:[%s2420_s14] sm:$0xff]  }
 0x4c6   : > { %1777 = vmatpush3.bf16.msra.mxu0 %v1128_v63  ;;  %1778 = vmatprep.mubr.msk.bf16.mxu0 %vm2004_vm1, %v2003_v16  ;;  %v1904_v63 = vld [vmem:[%s2420_s14 + $0x8] sm:$0xff]  }
 0x4c7   : > { %v1928_v0 = vpop.eup %1927  ;;  %1788 = vmatprep.subr.bf16.mxu0 %v2003_v16 }
 0x4c8   : > { %v1930_v1 = vpop.eup %1929  ;;  %v1022_v2 = vmul.f32 %v1928_v0, %v1920_v46  ;;  %v1905_v0 = vld [vmem:[%s2420_s14 + $0x10] sm:$0xff]  }
 0x4c9   : > { %v1024_v3 = vmul.f32 %v1930_v1, %v1922_v47  ;;  %v1906_v1 = vld [vmem:[%s2420_s14 + $0x18] sm:$0xff]  }
 0x4ca   : > { %v1028_v4 = vpack.c.bf16 %v1022_v2, %v1022_v2  ;;  %v1907_v2 = vld [vmem:[%s2420_s14 + $0x20] sm:$0xff]  }
 0x4cb   : > { %v1029_v5 = vpack.c.bf16 %v1024_v3, %v1024_v3  ;;  %v1908_v3 = vld [vmem:[%s2420_s14 + $0x28] sm:$0xff]  }
 0x4cc   : > { %1773 = vmatmul.mubr.msk.bf16.vlgmr.msra.gmra.mrb[16].mxu1 %vm1035_vm4, %v1028_v4  ;;  %v1909_v4 = vld [vmem:[%s2420_s14 + $0x30] sm:$0xff]  }
 0x4cd   : > { %1779 = vmatmul.mubr.msk.bf16.vlgmr.msra.gmra.mrb[12].mxu0 %vm1035_vm4, %v1029_v5  ;;  %1784 = vmatprep.mubr.msk.bf16.mxu1 %vm2004_vm1, %v2003_v16  ;;  %v1910_v5 = vld [vmem:[%s2420_s14 + $0x38] sm:$0xff]  }
 0x4ce   : > { %1792 = vmatprep.mubr.msk.bf16.mxu0 %vm2004_vm1, %v2003_v16  ;;  %1789 = vmatpush3.bf16.msra.mxu0 %v1899_v11 }
 0x4cf   : > { %1790 = vmatprep.subr.bf16.mxu0 %v2003_v16 }
 0x4d2   : > { %1791 = vmatpush3.bf16.msra.mxu0 %v1900_v26 }
 0x4d3   : > { %1804 = vmatprep.subr.bf16.mxu0 %v2003_v16 }
 0x4f5   : > { %v1018_v6 = vpop.xlane.xlu1 %1017 }
 0x4f6   : > { %1931 = vrcp.f32 %v1018_v6  ;;  %v1315_v6 = vld [vmem:[%s2419_s13] sm:$0x1] }
 0x4f9   : > { %v1175_v7 = vpop.permute.xlu1 %1174 }
 0x4fa   : > { %1783 = vmatpush3.bf16.msra.mxu1 %v1175_v7 }
 0x4fb   : > { %1796 = vmatprep.subr.bf16.mxu1 %v2003_v16 }
 0x500   : > { %v1932_v8 = vpop.eup %1931 }
 0x501   : > { %v1026_v9 = vmul.f32 %v1932_v8, %v1924_v54 }
 0x503   : > { %v1030_v10 = vpack.c.bf16 %v1026_v9, %v1026_v9 }
 0x505   : > { %1785 = vmatmul.mubr.msk.bf16.vlgmr.msra.gmra.mrb[20].mxu1 %vm1035_vm4, %v1030_v10 }
 0x506   : > { %1800 = vmatprep.mubr.msk.bf16.mxu1 %vm2004_vm1, %v2003_v16  ;;  %1797 = vmatpush3.bf16.msra.mxu1 %v1901_v51 }
 0x507   : > { %1798 = vmatprep.subr.bf16.mxu1 %v2003_v16 }
 0x598   : > { %v1073_v12 = vpop.f32.mrb[8].mxu0 }
 0x599   : > { %v1768_v13 = vpop.f32.mrb[9].mxu0 }
 0x59a   : > { %v1076_v14 = vpop.f32.mrb[10].mxu0 }
 0x59b   : > { %v1769_v15 = vpop.f32.mrb[11].mxu0 }
 0x59f   : > { %v1120_v17 = vpop.f32.mrb[16].mxu1 }
 0x5a0   : > { %v1167_v19 = vpop.f32.mrb[12].mxu0  ;;  %v1774_v20 = vpop.f32.mrb[17].mxu1  ;;  %1221 = vrot.lane.b32.xlu0 %v1120_v17, %s2009_s20  ;;  %s1945_s20 = scalar_lea.vmem %s1944_s5, 32 }
 0x5a1   : > { %1225 = vrot.lane.b32.xlu1 %v1167_v19, %s2010_s21  ;;  %v1780_v21 = vpop.f32.mrb[13].mxu0  ;;  %v1123_v22 = vpop.f32.mrb[18].mxu1 }
 0x5a2   : > { %v1170_v23 = vpop.f32.mrb[14].mxu0  ;;  %v1775_v24 = vpop.f32.mrb[19].mxu1 }
 0x5a3   : > { %v1781_v25 = vpop.f32.mrb[15].mxu0 }
 0x5d8   : > { %v1214_v27 = vpop.f32.mrb[20].mxu1 }
 0x5d9   : > { %1229 = vrot.lane.b32.xlu0 %v1214_v27, %s2011_s25  ;;  %v1786_v28 = vpop.f32.mrb[21].mxu1  ;;  %s1676_s25 = sshll.u32 %s2129_s0, 4  ;;  %s1939_s0 = scalar_lea.vmem %s2366_s19, 16 }
 0x5da   : > { %v1217_v29 = vpop.f32.mrb[22].mxu1  ;;  %s2364_s4 = scalar_lea.hbm %s2424_s18, %s1676_s25  ;;  %p1940_p11 = scmp.ne.s32.totalorder %s2366_s19, %s1939_s0 }
 0x5db   : > { %v1787_v30 = vpop.f32.mrb[23].mxu1  ;;  %p1947_p1 = scmp.lt.s32.totalorder %s1945_s20, %s1939_s0 }
 0x5dc   : > { %p1941_p12 = pnand %p1940_p11, %p2146_p5 }
 0x5dd   : > { %p1948_p2 = por %p1947_p1, %p1946_p0 }
 0x5de   : > { %p1942_p13 = pneg %p1941_p12 }
 0x5e0   : > { %p1949_p3 = pnand %p1948_p2, %p1942_p13 }
 0x612   : > { %v1222_v31 = vpop.permute.xlu0 %1221 }
 0x613   : > { %v1232_v32 = vsel %vm797_vm2, %v1073_v12, %v1222_v31  ;;  %v1226_v33 = vpop.permute.xlu1 %1225 }
 0x614   : > { %v1233_v34 = vsel %vm1035_vm4, %v1232_v32, %v1226_v33 }
 0x64b   : > { %v1230_v35 = vpop.permute.xlu0 %1229 }
 0x64c   : > { %v1235_v36 = vsel %vm1234_vm5, %v1233_v34, %v1230_v35 }
 0x64d   : > { %v1236_v37 = vpack.c.bf16 %v1235_v36, %v1235_v36 }
 0x64f   : > { %1793 = vmatmul.mubr.msk.bf16.vlgmr.msra.gmra.mrb[16].mxu0 %vm580_vm0, %v1236_v37 }
 0x650   : > { %1820 = vmatprep.mubr.msk.bf16.mxu0 %vm2004_vm1, %v2003_v16  ;;  %1805 = vmatpush3.bf16.msra.mxu0 %v1903_v62 }
 0x651   : > { %1806 = vmatprep.subr.bf16.mxu0 %v2003_v16 }
 0x654   : > { %1807 = vmatpush3.bf16.msra.mxu0 %v1904_v63 }
 0x655   : > { %1808 = vmatprep.subr.bf16.mxu0 %v2003_v16 }
 0x658   : > { %1809 = vmatpush3.bf16.msra.mxu0 %v1905_v0 }
 0x659   : > { %1810 = vmatprep.subr.bf16.mxu0 %v2003_v16 }
 0x65c   : > { %1811 = vmatpush3.bf16.msra.mxu0 %v1906_v1 }
 0x65d   : > { %1812 = vmatprep.subr.bf16.mxu0 %v2003_v16 }
 0x660   : > { %1813 = vmatpush3.bf16.msra.mxu0 %v1907_v2 }
 0x661   : > { %1814 = vmatprep.subr.bf16.mxu0 %v2003_v16 }
 0x664   : > { %1815 = vmatpush3.bf16.msra.mxu0 %v1908_v3 }
 0x665   : > { %1816 = vmatprep.subr.bf16.mxu0 %v2003_v16 }
 0x668   : > { %1817 = vmatpush3.bf16.msra.mxu0 %v1909_v4 }
 0x669   : > { %1818 = vmatprep.subr.bf16.mxu0 %v2003_v16 }
 0x66c   : > { %1819 = vmatpush3.bf16.msra.mxu0 %v1910_v5 }
 0x722   : > { %v1286_v39 = vpop.f32.mrb[16].mxu0 }
 0x723   : > { %v1287_v40 = vadd.f32 %v1286_v39, %v639_v38  ;;  %v1794_v41 = vpop.f32.mrb[17].mxu0 }
 0x724   : > { %v1289_v42 = vpop.f32.mrb[18].mxu0  ;;  %v1912_v41 = vld [vmem:[%s2422_s16 + $0x8] sm:$0xff]  }
 0x725   : > { %v2289_v43 = vadd.f32 %v1287_v40, %v2177_v18  ;;  %v1795_v44 = vpop.f32.mrb[19].mxu0  ;;  %v1902_v18 = vld [vmem:[%s2418_s12 + $0x8] sm:$0xff]   ;;  %v1911_v40 = vld [vmem:[%s2422_s16] sm:$0xff]  }
 0x726   : > { %1799 = vmatpush3.bf16.msra.mxu1 %v1902_v18  ;;  %v1332_v42 = vld [vmem:[%s2421_s15] sm:$0x1] }
 0x727   : > { %v1296_v45 = vsel %vm1295_vm6, %v2289_v43, 0.0  ;;  %1824 = vmatprep.subr.bf16.mxu1 %v2003_v16 }
 0x728   : > { %1297 = vadd.xlane.f32.xlu1 %v1296_v45 }
 0x7b5   : > { %v1298_v46 = vpop.xlane.xlu1 %1297 }
 0x7b6   : > { %v1299_v47 = vmul.f32 0.03125, %v1298_v46 }
 0x7b8   : > { %v1300_v48 = vsub.f32 %v2289_v43, %v1299_v47 }
 0x7ba   : > { %v1301_v49 = vmul.f32 %v1300_v48, %v1300_v48 }
 0x7bc   : > { %v1302_v50 = vsel %vm1295_vm6, %v1301_v49, 0.0 }
 0x7bd   : > { %1303 = vadd.xlane.f32.xlu0 %v1302_v50 }
 0x84a   : > { %v1304_v52 = vpop.xlane.xlu0 %1303 }
 0x84b   : > { %v1305_v54 = vmul.f32 0.03125, %v1304_v52 }
 0x84d   : > { %v1306_v55 = vadd.f32 1e-05, %v1305_v54 }
 0x84f   : > { %1933 = vrsqrt.f32 %v1306_v55 }
 0x859   : > { %v1934_v56 = vpop.eup %1933 }
 0x85a   : > { %v1308_v58 = vmul.f32 %v1934_v56, %v1300_v48 }
 0x85c   : > { %v1309_v60 = vmul.f32 %v1308_v58, %v1293_v57 }
 0x85e   : > { %v1310_v61 = vadd.f32 %v1309_v60, %v1294_v59 }
 0x860   : > { %v1333_v53 = vpack.c.bf16 %v1310_v61, %v1310_v61 }
 0x862   : > { %1801 = vmatmul.mubr.msk.bf16.vlgmr.msra.gmra.mrb[24].mxu1 %vm580_vm0, %v1333_v53 }
 0x863   : > { %1828 = vmatprep.mubr.msk.bf16.mxu1 %vm2004_vm1, %v2003_v16  ;;  %1825 = vmatpush3.bf16.msra.mxu1 %v1911_v40 }
 0x864   : > { %1826 = vmatprep.subr.bf16.mxu1 %v2003_v16  ;;  %v1511_v16 = vld [vmem:[%s2423_s17] sm:$0x1] }
 0x867   : > { %1827 = vmatpush3.bf16.msra.mxu1 %v1912_v41 }
 0x935   : > { %v1383_v7 = vpop.f32.mrb[24].mxu1 }
 0x936   : > { %v1384_v8 = vadd.f32 %v1383_v7, %v1315_v6  ;;  %v1802_v9 = vpop.f32.mrb[25].mxu1 }
 0x937   : > { %v1386_v10 = vpop.f32.mrb[26].mxu1 }
 0x938   : > { %v1390_v11 = vmul.f32 0.70710677, %v1384_v8  ;;  %v1803_v12 = vpop.f32.mrb[27].mxu1  ;;  %v1389_v36 = vmul.f32 0.5, %v1384_v8 }
 0x93a   : > { %v1391_v13 = vand.u32 2147483647, %v1390_v11  ;;  %vm1411_vm7 = vcmp.lt.f32.partialorder %v1390_v11, 0.0 }
 0x93c   : > { %v1392_v14 = vmul.f32 0.3275911, %v1391_v13  ;;  %v1405_v17 = vsub.f32 0.0, %v1391_v13 }
 0x93e   : > { %v1393_v15 = vadd.f32 1.0, %v1392_v14  ;;  %v1406_v20 = vmul.f32 %v1405_v17, %v1391_v13 }
 0x940   : > { %1935 = vrcp.f32 %v1393_v15  ;;  %v1407_v23 = vmul.f32 1.442695, %v1406_v20 }
 0x942   : > { %1937 = vpow2.f32 %v1407_v23 }
 0x94a   : > { %v1936_v19 = vpop.eup %1935 }
 0x94b   : > { %v1396_v21 = vmul.f32 1.0614054, %v1936_v19 }
 0x94c   : > { %v1938_v31 = vpop.eup %1937 }
 0x94d   : > { %v1397_v22 = vadd.f32 -1.4531521, %v1396_v21 }
 0x94f   : > { %v1398_v24 = vmul.f32 %v1936_v19, %v1397_v22 }
 0x951   : > { %v1399_v25 = vadd.f32 1.4214138, %v1398_v24 }
 0x953   : > { %v1400_v26 = vmul.f32 %v1936_v19, %v1399_v25 }
 0x955   : > { %v1401_v27 = vadd.f32 -0.28449672, %v1400_v26 }
 0x957   : > { %v1402_v28 = vmul.f32 %v1936_v19, %v1401_v27 }
 0x959   : > { %v1403_v29 = vadd.f32 0.2548296, %v1402_v28 }
 0x95b   : > { %v1404_v30 = vmul.f32 %v1936_v19, %v1403_v29 }
 0x95d   : > { %v1409_v32 = vmul.f32 %v1938_v31, %v1404_v30 }
 0x95f   : > { %v1410_v33 = vsub.f32 1.0, %v1409_v32 }
 0x961   : > { %v1412_v34 = vsub.f32 0.0, %v1410_v33 }
 0x963   : > { %v1413_v35 = vsel %vm1411_vm7, %v1412_v34, %v1410_v33 }
 0x964   : > { %v1414_v37 = vadd.f32 1.0, %v1413_v35 }
 0x966   : > { %v1415_v38 = vmul.f32 %v1414_v37, %v1389_v36 }
 0x968   : > { %v1416_v39 = vpack.c.bf16 %v1415_v38, %v1415_v38 }
 0x96a   : > { %1821 = vmatmul.mubr.bf16.vlgmr.msra.gmra.mrb[20].mxu0 %v1416_v39 }
 0xa3d   : > { %v1499_v44 = vpop.f32.mrb[20].mxu0 }
 0xa3e   : > { %v1500_v45 = vadd.f32 %v1499_v44, %v1332_v42  ;;  %v1822_v46 = vpop.f32.mrb[21].mxu0 }
 0xa3f   : > { %v1502_v47 = vpop.f32.mrb[22].mxu0 }
 0xa40   : > { %v1505_v48 = vadd.f32 %v1500_v45, %v2289_v43  ;;  %v1823_v49 = vpop.f32.mrb[23].mxu0 }
 0xa42   : > { %v1506_v50 = vpack.c.bf16 %v1505_v48, %v1505_v48 }
 0xa44   : > { %1829 = vmatmul.mubr.msk.bf16.vlgmr.msra.gmra.mrb[28].mxu1 %vm580_vm0, %v1506_v50 }
 0xb17   : > { %v1561_v51 = vpop.f32.mrb[28].mxu1 }
 0xb18   : > { %v1562_v18 = vadd.f32 %v1561_v51, %v1511_v16  ;;  %v1830_v52 = vpop.f32.mrb[29].mxu1 }
 0xb19   : > { %v1564_v43 = vpop.f32.mrb[30].mxu1 }
 0xb1a   : > { %1567 = vst [vmem:[%s567_s26] sm:$0x1] %v1562_v18  ;;  %v1831_v54 = vpop.f32.mrb[31].mxu1 }
 0xb1b   : > { %1952 = shalt.err (!%p1949_p3)
}
 0xb1c   : > { %s1953_s24 = scalar_lea.hbm %s2364_s4, 16  ;;  %s1957_s21 = scalar_lea.hbm %s2424_s18, 32 }
 0xb1d   : > { %p1954_p4 = scmp.ne.s32.totalorder %s2364_s4, %s1953_s24  ;;  %p1958_p9 = scmp.lt.u32.totalorder %s2364_s4, %s2424_s18 }
 0xb1e   : > { %p1959_p10 = scmp.lt.u32.totalorder %s1957_s21, %s1953_s24  ;;  %p1961_p12 = scmp.lt.u32.totalorder %s1953_s24, %s2364_s4 }
 0xb1f   : > { %p1955_p7 = pnand %p1954_p4, %p2146_p5 }
 0xb20   : > { %p1960_p11 = por %p1959_p10, %p1958_p9 }
 0xb21   : > { %p1956_p8 = pneg %p1955_p7 }
 0xb22   : > { %p1962_p13 = por %p1961_p12, %p1960_p11 }
 0xb24   : > { %p1963_p0 = pnand %p1962_p13, %p1956_p8 }
 0xb26   : > { %1966 = shalt.err (!%p1963_p0)
}
 0xb27   : > { %1832 = dma.vmem_to_hbm [thread:$0]  (%p2146_p5), %s2366_s19, 16, %s2364_s4, %s1569_s22  }
 0xb28 PF: > { %p1838_p1 = scmp.ge.s32.totalorder %s2001_s30, 2  ;;  %s1593_s0 = sand.u32 1, %s1989_s27  }
 0xb29   : > { %s1594_s20 = scalar_lea.sflag [#allocation3], %s1593_s0 }
 0xb2a   : > { %p1835_p2 = pnand %p1838_p1, %p2150_p6 }
 0xb2c   : > { %1984 = dma.done.wait (!%p1835_p2), %s1594_s20, 16  }
 0xb2d   : > { %1986 = vsyncadd (!%p1835_p2), %s1594_s20, 4294967280  ;;  %s2440_s24 = sld [smem:[#allocation5_spill]]  ;;  %p28_p3 = scmp.ge.s32.totalorder %s2133_s1, 4  }
 0xb2e   : > { %s2441_s27 = smov %s1993_s28  ;;  %s2442_s28 = smov %s1997_s29 }
 0xb2f   : > { %s2444_s30 = smov %s2133_s1  ;;  %30 = sbr.rel (!%p28_p3) target bundleno = 10 (0xa), region = 127 }
 0xb33   : > { %s2443_s29 = smov %s2440_s24 }
 0xb36   :  { %1598 = vsyncpa [#allocation3], 1 }
 0xb37   :  { %1600 = vsyncpa [#allocation3 + $0x1], 1 }

// kernel: _lambda_.4
= control target key start
LH: loop header
LB: loop body
LE: loop exit
PB: predicated region body
PF: predicated region fallthrough
CT: control target
= control target key end

     0   :  { %s2428_s18 = smov 0   ;;  %s2430_s19 = smov 0   ;;  %s2744_s0 = inlined_call_operand.vmem [shape: f32[2,16,32], index: 0, kind: input, shape index: {}]   ;;  %s2745_s1 = inlined_call_operand.vmem [shape: f32[2,1,32], index: 1, kind: input, shape index: {}]   ;;  %s2746_s2 = inlined_call_operand.vmem [shape: f32[2,1,32], index: 2, kind: input, shape index: {}]   ;;  %s2747_s3 = inlined_call_operand.vmem [shape: bf16[2,32,96], index: 3, kind: input, shape index: {}]   ;;  %s2748_s4 = inlined_call_operand.vmem [shape: f32[2,1,96], index: 4, kind: input, shape index: {}]   ;;  %s2749_s5 = inlined_call_operand.vmem [shape: bf16[2,32,32], index: 5, kind: input, shape index: {}]   ;;  %s2750_s6 = inlined_call_operand.vmem [shape: f32[2,1,32], index: 6, kind: input, shape index: {}]   ;;  %s2751_s7 = inlined_call_operand.vmem [shape: f32[2,1,32], index: 7, kind: input, shape index: {}]   ;;  %s2752_s8 = inlined_call_operand.vmem [shape: f32[2,1,32], index: 8, kind: input, shape index: {}]   ;;  %s2753_s9 = inlined_call_operand.vmem [shape: bf16[2,32,128], index: 9, kind: input, shape index: {}]   ;;  %s2754_s10 = inlined_call_operand.vmem [shape: f32[2,1,128], index: 10, kind: input, shape index: {}]   ;;  %s2755_s11 = inlined_call_operand.vmem [shape: bf16[2,128,32], index: 11, kind: input, shape index: {}]   ;;  %s2756_s12 = inlined_call_operand.vmem [shape: f32[2,1,32], index: 12, kind: input, shape index: {}]   ;;  %s2757_s13 = inlined_call_operand.vmem [shape: f32[1,32], index: 13, kind: input, shape index: {}]   ;;  %s2758_s14 = inlined_call_operand.vmem [shape: f32[1,32], index: 14, kind: input, shape index: {}]   ;;  %s2759_s15 = inlined_call_operand.vmem [shape: bf16[2,16,32], index: 15, kind: output, shape index: {}]  }
   0x1   :  { %2764 = sst [smem:[#allocation9_spill]] %s2744_s0  ;;  %s2432_s20 = smov 0  }
   0x2   :  { %2765 = sst [smem:[#allocation10_spill]] %s2747_s3  ;;  %s2434_s21 = smov 0  }
   0x3   :  { %2766 = sst [smem:[#allocation11_spill]] %s2749_s5  ;;  %s2436_s22 = smov 0  }
   0x4   :  { %2767 = sst [smem:[#allocation12_spill]] %s2751_s7 }
   0x5   :  { %2768 = sst [smem:[#allocation13_spill]] %s2755_s11 }
   0x6   :  { %2769 = sst [smem:[#allocation14_spill]] %s2757_s13 }
   0x7   :  { %2770 = sst [smem:[#allocation15_spill]] %s2758_s14 }
   0x8   :  { %2771 = sst [smem:[#allocation16_spill]] %s2759_s15 }
   0x9 LB: > { %2772 = sst [smem:[#allocation3_spill]] %s2320_s18  ;;  %s34_s23 = sadd.s32 1, %s2328_s20  ;;  %s2336_s22 = sphi %s2436_s22, %s25_s22   ;;  %s2332_s21 = sphi %s2434_s21, %s2799_s21   ;;  %s2328_s20 = sphi %s2432_s20, %s2798_s20   ;;  %s2324_s19 = sphi %s2430_s19, %s2797_s19   ;;  %s2320_s18 = sphi %s2428_s18, %s2796_s18  }
   0xa   : > { %2773 = sst [smem:[#allocation4_spill]] %s2328_s20  ;;  %s37_s24 = sadd.s32 1, %s2332_s21 }
   0xb   : > { %2774 = sst [smem:[#allocation5_spill]] %s2332_s21  ;;  %p35_p0 = scmp.ge.s32.totalorder %s34_s23, 2 }
   0xc   : > { %2775 = sst [smem:[#allocation6_spill]] %s2336_s22  ;;  %p1964_p1 = scmp.ge.s32.totalorder %s2336_s22, 1 }
   0xd   : > { %p553_p2 = scmp.lt.s32.totalorder %s2336_s22, 5  ;;  %s2801_s23 = smov (%p35_p0, %s34_s23), 0 }
   0xe   : > { %2776 = sst [smem:[#allocation7_spill]] %s2801_s23  ;;  %s2803_s24 = smov (!%p35_p0, %s37_s24), %s2332_s21 }
   0xf   : > { %p554_p3 = pnand %p1964_p1, %p553_p2  ;;  %p39_p4 = scmp.ge.s32.totalorder %s2803_s24, 2 }
  0x10   : > { %p645_p5 = scmp.lt.s32.totalorder (!%p554_p3), %s2324_s19, 1  ;;  %p650_p6 = scmp.lt.s32.totalorder (!%p554_p3), %s2320_s18, 1 }
  0x11   : > { %s2805_s24 = smov (%p39_p4, %s2803_s24), 0  ;;  %557 = sbr.rel (%p554_p3) target bundleno = 3040 (0xbe0), region = 80 }
  0x12   : > { %2777 = sst [smem:[#allocation8_spill]] %s2805_s24  ;;  %s2778_s0 = sld [smem:[#allocation9_spill]] (!%p554_p3) }
  0x13   : > { %s2779_s3 = sld [smem:[#allocation10_spill]] (!%p554_p3)  ;;  %s2780_s5 = sld [smem:[#allocation11_spill]] (!%p554_p3) }
  0x14   : > { %s2782_s24 = sld [smem:[#allocation13_spill]] (!%p554_p3) }
  0x18   : > { %s2807_s19 = smov (!%p645_p5, %s2324_s19), 1 }
  0x19   : > { %s2462_s25 = scalar_select %p650_p6, %s2320_s18, 1 }
  0x1a   : > { %s2018_s26 = sshll.u32 %s2807_s19, 4  ;;  %s2023_s27 = sshll.u32 %s2807_s19, 3 }
  0x1b   : > { %s649_s30 = scalar_lea.vmem %s2778_s0, %s2018_s26  ;;  %s2019_s22 = sshll.u32 %s2462_s25, 4 }
  0x1c   : > { %s2479_s18 = scalar_lea.vmem %s2779_s3, %s2019_s22  ;;  %s2488_s29 = scalar_lea.vmem %s2780_s5, %s2019_s22 }
  0x1d   : > { %s2505_s19 = scalar_lea.vmem %s2753_s9, %s2019_s22  ;;  %s685_s11 = scalar_lea.vmem %s2754_s10, %s2462_s25 }
  0x1e   : > { %s2022_s5 = sshll.u32 %s2462_s25, 6  ;;  %s693_s21 = scalar_lea.vmem %s2756_s12, %s2462_s25 }
  0x1f   : > { %s2519_s7 = scalar_lea.vmem %s2782_s24, %s2022_s5  ;;  %s2783_s0 = sld [smem:[#allocation16_spill]] }
  0x20   : > { %s2784_s22 = sld [smem:[#allocation3_spill]] }
  0x25   : > { %s2524_s3 = scalar_lea.vmem %s2783_s0, %s2023_s27 }
  0x26   : > { %p1977_p7 = scmp.ne.s32.totalorder %s2784_s22, 0 }
  0x27   : > { %v704_v0 = vld [vmem:[%s649_s30] sm:$0xff] (!%p1977_p7)  ;;  %vm706_vm0 = vcmask (!%p1977_p7), 261120   ;;  %v705_v1 = vld [vmem:[%s649_s30 + $0x8] sm:$0xff] (!%p1977_p7) }
  0x28   : > { %703 = sbr.rel (%p1977_p7) target bundleno = 47 (0x2f), region = 84  ;;  %707 = vst.msk [vmem:[#allocation2] sm:$0xff] (!%p1977_p7), %vm706_vm0, %v704_v0  ;;  %708 = vst.msk [vmem:[#allocation2 + $0x8] sm:$0xff] (!%p1977_p7), %vm706_vm0, %v705_v1 }
  0x2f PF: > { %v2527_v2 = vld [vmem:[#allocation2] sm:$0xff]  ;;  %vm713_vm1 = vcmask 261120   ;;  %v2529_v3 = vld [vmem:[#allocation2 + $0x8] sm:$0xff]  ;;  %v2338_v17 = vmov 0.0   ;;  %vm2339_vm2 = vmmov 0   ;;  %s2786_s30 = scalar_lea.vmem %s2746_s2, %s2462_s25  ;;  %s2787_s26 = scalar_lea.vmem %s2748_s4, %s2462_s25  ;;  %vm857_vm3 = vcmask 64512  }
  0x30   : > { %v714_v4 = vsel %vm713_vm1, %v2527_v2, 0.0  ;;  %v717_v5 = vsel %vm713_vm1, %v2529_v3, 0.0  ;;  %v2232_v16 = vld [vmem:[%s2479_s18] sm:$0xff]   ;;  %2060 = vmatprep.subr.bf16.mxu0 %v2338_v17  ;;  %2080 = vmatprep.subr.bf16.mxu1 %v2338_v17  ;;  %v2233_v18 = vld [vmem:[%s2479_s18 + $0x8] sm:$0xff]   ;;  %s2785_s18 = scalar_lea.vmem %s2745_s1, %s2462_s25  ;;  %s2340_s16 = smov 112   ;;  %vm1055_vm4 = vcmask 130048  }
  0x31   : > { %715 = vadd.xlane.f32.xlu0 %v714_v4  ;;  %2061 = vmatpush3.bf16.msra.mxu0 %v2232_v16  ;;  %v1978_v27 = vld [vmem:[%s2785_s18] ss:$0 sm:$0xff]  ;;  %s2341_s17 = smov 120   ;;  %s2342_s20 = smov 104   ;;  %vm1364_vm5 = vcmask 195584  }
  0x32   : > { %2064 = vmatprep.mubr.msk.bf16.mxu0 %vm2339_vm2, %v2338_v17  ;;  %2062 = vmatprep.subr.bf16.mxu0 %v2338_v17  ;;  %v1979_v31 = vld [vmem:[%s2786_s30] ss:$0 sm:$0xff]  ;;  %s2343_s23 = smov 96   ;;  %s2344_s13 = smov 64  }
  0x33   : > { %2082 = vmatprep.mubr.msk.bf16.mxu1 %vm2339_vm2, %v2338_v17  ;;  %v1980_v36 = vld [vmem:[%s2787_s26] ss:$0 sm:$0xff]  ;;  %s2345_s14 = smov 8   ;;  %s2346_s22 = smov 16  }
  0x34   : > { %s2788_s18 = scalar_lea.vmem %s2750_s6, %s2462_s25  ;;  %s2789_s30 = sld [smem:[#allocation12_spill]] }
  0x35   : > { %718 = vadd.xlane.f32.xlu0 %v717_v5  ;;  %2063 = vmatpush3.bf16.msra.mxu0 %v2233_v18  ;;  %s2791_s26 = scalar_lea.vmem %s2752_s8, %s2462_s25 }
  0x36   : > { %2068 = vmatprep.subr.bf16.mxu0 %v2338_v17 }
  0xbe   : > { %v716_v6 = vpop.xlane.xlu0 %715 }
  0xbf   : > { %v721_v7 = vmul.f32 0.03125, %v716_v6 }
  0xc1   : > { %v723_v8 = vsub.f32 %v2527_v2, %v721_v7 }
  0xc2   : > { %v719_v9 = vpop.xlane.xlu0 %718 }
  0xc3   : > { %v722_v10 = vmul.f32 0.03125, %v719_v9  ;;  %v725_v11 = vmul.f32 %v723_v8, %v723_v8 }
  0xc5   : > { %v724_v12 = vsub.f32 %v2529_v3, %v722_v10  ;;  %v727_v13 = vsel %vm713_vm1, %v725_v11, 0.0 }
  0xc6   : > { %728 = vadd.xlane.f32.xlu1 %v727_v13 }
  0xc7   : > { %v726_v14 = vmul.f32 %v724_v12, %v724_v12 }
  0xc9   : > { %v730_v15 = vsel %vm713_vm1, %v726_v14, 0.0 }
  0xca   : > { %731 = vadd.xlane.f32.xlu1 %v730_v15 }
 0x153   : > { %v729_v19 = vpop.xlane.xlu1 %728 }
 0x154   : > { %v733_v20 = vmul.f32 0.03125, %v729_v19 }
 0x156   : > { %v735_v21 = vadd.f32 1e-05, %v733_v20 }
 0x157   : > { %v732_v22 = vpop.xlane.xlu1 %731 }
 0x158   : > { %2246 = vrsqrt.f32 %v735_v21  ;;  %v734_v23 = vmul.f32 0.03125, %v732_v22 }
 0x15a   : > { %v736_v24 = vadd.f32 1e-05, %v734_v23 }
 0x15c   : > { %2248 = vrsqrt.f32 %v736_v24 }
 0x162   : > { %v2247_v25 = vpop.eup %2246 }
 0x163   : > { %v739_v26 = vmul.f32 %v2247_v25, %v723_v8 }
 0x165   : > { %v747_v30 = vmul.f32 %v1978_v27, %v739_v26 }
 0x166   : > { %v2249_v28 = vpop.eup %2248 }
 0x167   : > { %v740_v29 = vmul.f32 %v2249_v28, %v724_v12  ;;  %v755_v33 = vadd.f32 %v1979_v31, %v747_v30 }
 0x169   : > { %v748_v32 = vmul.f32 %v1978_v27, %v740_v29 }
 0x16b   : > { %v756_v34 = vadd.f32 %v1979_v31, %v748_v32 }
 0x16d   : > { %v767_v35 = vpack.c.bf16 %v756_v34, %v755_v33 }
 0x16f   : > { %2065 = vmatmul.mubr.msk.bf16.vlgmr.msra.gmra.mrb[0].mxu0 %vm713_vm1, %v767_v35 }
 0x170   : > { %2070 = vmatprep.mubr.msk.bf16.mxu0 %vm2339_vm2, %v2338_v17 }
 0x242   : > { %v823_v37 = vpop.f32.mrb[0].mxu0 }
 0x243   : > { %v2066_v38 = vpop.f32.mrb[1].mxu0  ;;  %v824_v40 = vadd.f32 %v1980_v36, %v823_v37 }
 0x244   : > { %v826_v39 = vpop.f32.mrb[2].mxu0 }
 0x245   : > { %v827_v41 = vadd.f32 %v1980_v36, %v826_v39  ;;  %v2067_v42 = vpop.f32.mrb[3].mxu0 }
 0x247   : > { %v2207_v43 = vpack.i.bf16 %v827_v41, %v824_v40  ;;  %v2567_v44 = vpack.c.bf16 %v827_v41, %v824_v40 }
 0x249   : > { %2208 = vrot.lane.b32.xlu1 %v2207_v43, %s2340_s16  ;;  %2203 = vrot.lane.b32.xlu0 %v2207_v43, %s2341_s17 }
 0x24d   : > { %2213 = vrot.lane.b32.xlu1 %v2207_v43, %s2342_s20  ;;  %s2792_s20 = sld [smem:[#allocation3_spill]] }
 0x251   : > { %855 = vrot.lane.b32.xlu1 %v2567_v44, %s2343_s23 }
 0x253   : > { %p2011_p8 = scmp.ne.s32.totalorder %s2792_s20, 1 }
 0x254   : > { %vm1771_vm8 = vcmask (!%p2011_p8), 257024  }
 0x2bb   : > { %v2209_v45 = vpop.permute.xlu1 %2208  ;;  %v2204_v46 = vpop.permute.xlu0 %2203 }
 0x2bc   : > { %v2211_v47 = vunpack.i.h.bf16 %v2209_v45  ;;  %v2210_v48 = vunpack.i.l.bf16 %v2209_v45  ;;  %v2206_v49 = vunpack.i.h.bf16 %v2204_v46  ;;  %v2205_v50 = vunpack.i.l.bf16 %v2204_v46 }
 0x2be   : > { %v2570_v51 = vpack.c.bf16 %v2211_v47, %v2210_v48  ;;  %v2572_v52 = vpack.c.bf16 %v2206_v49, %v2205_v50 }
 0x2bf   : > { %v2214_v53 = vpop.permute.xlu1 %2213 }
 0x2c0   : > { %v2216_v54 = vunpack.i.h.bf16 %v2214_v53  ;;  %v2215_v55 = vunpack.i.l.bf16 %v2214_v53  ;;  %906 = vrot.lane.b32.xlu0 %v2572_v52, %s2343_s23  ;;  %956 = vrot.lane.b32.xlu1 %v2570_v51, %s2343_s23 }
 0x2c2   : > { %v2576_v56 = vpack.c.bf16 %v2216_v54, %v2215_v55 }
 0x2c3   : > { %v856_v57 = vpop.permute.xlu1 %855 }
 0x2c4   : > { %v862_v58 = vsel %vm857_vm3, %v856_v57, 0  ;;  %1006 = vrot.lane.b32.xlu0 %v2576_v56, %s2343_s23  ;;  %s2793_s23 = sld [smem:[#allocation14_spill]] (!%p2011_p8) }
 0x2c5   : > { %2069 = vmatpush3.bf16.xpose.msra.mxu0 %v862_v58 }
 0x2c6   : > { %2074 = vmatprep.subr.bf16.mxu0 %v2338_v17 }
 0x2cc   : > { %2071 = vmatmul.mubr.msk.bf16.vlgmr.msra.gmra.mrb[4].mxu0 %vm857_vm3, %v2567_v44 }
 0x2cd   : > { %2076 = vmatprep.mubr.msk.bf16.mxu0 %vm2339_vm2, %v2338_v17 }
 0x332   : > { %v907_v59 = vpop.permute.xlu0 %906  ;;  %v957_v60 = vpop.permute.xlu1 %956 }
 0x333   : > { %v912_v61 = vsel %vm857_vm3, %v907_v59, 0  ;;  %v962_v62 = vsel %vm857_vm3, %v957_v60, 0 }
 0x334   : > { %2075 = vmatpush3.bf16.xpose.msra.mxu0 %v912_v61  ;;  %2081 = vmatpush3.bf16.xpose.msra.mxu1 %v962_v62 }
 0x335   : > { %2086 = vmatprep.subr.bf16.mxu0 %v2338_v17  ;;  %2092 = vmatprep.subr.bf16.mxu1 %v2338_v17 }
 0x336   : > { %v1007_v63 = vpop.permute.xlu0 %1006 }
 0x337   : > { %v1012_v0 = vsel %vm857_vm3, %v1007_v63, 0 }
 0x33b   : > { %2077 = vmatmul.mubr.msk.bf16.vlgmr.msra.gmra.mrb[8].mxu0 %vm857_vm3, %v2572_v52  ;;  %2083 = vmatmul.mubr.msk.bf16.vlgmr.msra.gmra.mrb[0].mxu1 %vm857_vm3, %v2570_v51 }
 0x33c   : > { %2087 = vmatpush3.bf16.xpose.msra.mxu0 %v1012_v0  ;;  %2088 = vmatprep.mubr.msk.bf16.mxu0 %vm2339_vm2, %v2338_v17 }
 0x33d   : > { %2094 = vmatprep.mubr.msk.bf16.mxu1 %vm2339_vm2, %v2338_v17  ;;  %2098 = vmatprep.subr.bf16.mxu0 %v2338_v17 }
 0x343   : > { %2089 = vmatmul.mubr.msk.bf16.vlgmr.msra.gmra.mrb[12].mxu0 %vm857_vm3, %v2576_v56 }
 0x344   : > { %2100 = vmatprep.mubr.msk.bf16.mxu0 %vm2339_vm2, %v2338_v17 }
 0x39f   : > { %v898_v1 = vpop.f32.mrb[4].mxu0 }
 0x3a0   : > { %v2072_v4 = vpop.f32.mrb[5].mxu0  ;;  %v1056_v5 = vsel %vm1055_vm4, %v898_v1, -inf }
 0x3a1   : > { %1057 = vmax.xlane.f32.xlu1 %v1056_v5  ;;  %v901_v6 = vpop.f32.mrb[6].mxu0 }
 0x3a2   : > { %v2073_v7 = vpop.f32.mrb[7].mxu0  ;;  %v1059_v8 = vsel %vm1055_vm4, %v901_v6, -inf }
 0x3a3   : > { %1060 = vmax.xlane.f32.xlu0 %v1059_v8 }
 0x40e   : > { %v948_v9 = vpop.f32.mrb[8].mxu0  ;;  %v998_v10 = vpop.f32.mrb[0].mxu1 }
 0x40f   : > { %v2078_v11 = vpop.f32.mrb[9].mxu0  ;;  %v2084_v12 = vpop.f32.mrb[1].mxu1  ;;  %v1068_v13 = vsel %vm1055_vm4, %v998_v10, -inf  ;;  %v1062_v14 = vsel %vm1055_vm4, %v948_v9, -inf }
 0x410   : > { %v1001_v15 = vpop.f32.mrb[2].mxu1  ;;  %1069 = vmax.xlane.f32.xlu1 %v1068_v13  ;;  %1063 = vmax.xlane.f32.xlu0 %v1062_v14  ;;  %v951_v16 = vpop.f32.mrb[10].mxu0 }
 0x411   : > { %v2079_v18 = vpop.f32.mrb[11].mxu0  ;;  %v2085_v19 = vpop.f32.mrb[3].mxu1  ;;  %v1065_v20 = vsel %vm1055_vm4, %v951_v16, -inf  ;;  %v1071_v23 = vsel %vm1055_vm4, %v1001_v15, -inf }
 0x414   : > { %1066 = vmax.xlane.f32.xlu0 %v1065_v20 }
 0x416   : > { %v1048_v21 = vpop.f32.mrb[12].mxu0 }
 0x417   : > { %v2090_v22 = vpop.f32.mrb[13].mxu0  ;;  %v1074_v24 = vsel %vm1055_vm4, %v1048_v21, -inf }
 0x418   : > { %1072 = vmax.xlane.f32.xlu0 %v1071_v23  ;;  %1075 = vmax.xlane.f32.xlu1 %v1074_v24  ;;  %v1051_v25 = vpop.f32.mrb[14].mxu0 }
 0x419   : > { %v2091_v26 = vpop.f32.mrb[15].mxu0  ;;  %v1077_v27 = vsel %vm1055_vm4, %v1051_v25, -inf }
 0x41c   : > { %1078 = vmax.xlane.f32.xlu0 %v1077_v27 }
 0x429   : > { %1148 = vrot.lane.b32.xlu1 %v2567_v44, %s2344_s13 }
 0x42e   : > { %v1058_v31 = vpop.xlane.xlu1 %1057 }
 0x42f   : > { %v1080_v32 = vsub.f32 %v898_v1, %v1058_v31 }
 0x430   : > { %v1061_v28 = vpop.xlane.xlu0 %1060 }
 0x431   : > { %v1081_v29 = vsub.f32 %v901_v6, %v1061_v28  ;;  %v1088_v33 = vmul.f32 1.442695, %v1080_v32 }
 0x433   : > { %v1090_v30 = vmul.f32 1.442695, %v1081_v29 }
 0x435   : > { %2250 = vpow2.f32 %v1090_v30 }
 0x436   : > { %2252 = vpow2.f32 %v1088_v33 }
 0x43f   : > { %v2251_v34 = vpop.eup %2250 }
 0x440   : > { %v1107_v35 = vsel %vm1055_vm4, %v2251_v34, 0.0  ;;  %v2253_v36 = vpop.eup %2252 }
 0x441   : > { %1108 = vadd.xlane.f32.xlu0 %v1107_v35  ;;  %v1104_v37 = vsel %vm1055_vm4, %v2253_v36, 0.0 }
 0x44d   : > { %1105 = vadd.xlane.f32.xlu1 %v1104_v37 }
 0x49d   : > { %v1070_v38 = vpop.xlane.xlu1 %1069  ;;  %v1064_v39 = vpop.xlane.xlu0 %1063 }
 0x49e   : > { %v1084_v40 = vsub.f32 %v998_v10, %v1070_v38  ;;  %v1082_v41 = vsub.f32 %v948_v9, %v1064_v39 }
 0x4a0   : > { %v1092_v42 = vmul.f32 1.442695, %v1082_v41  ;;  %v1096_v43 = vmul.f32 1.442695, %v1084_v40 }
 0x4a1   : > { %v1067_v44 = vpop.xlane.xlu0 %1066 }
 0x4a2   : > { %v1083_v45 = vsub.f32 %v951_v16, %v1067_v44  ;;  %2254 = vpow2.f32 %v1092_v42 }
 0x4a3   : > { %2256 = vpow2.f32 %v1096_v43  ;;  %v2234_v43 = vld [vmem:[%s2488_s29] sm:$0xff]  }
 0x4a4   : > { %v1094_v46 = vmul.f32 1.442695, %v1083_v45 }
 0x4a5   : > { %v1073_v47 = vpop.xlane.xlu0 %1072  ;;  %v1076_v48 = vpop.xlane.xlu1 %1075 }
 0x4a6   : > { %2258 = vpow2.f32 %v1094_v46  ;;  %v1085_v49 = vsub.f32 %v1001_v15, %v1073_v47  ;;  %v1086_v50 = vsub.f32 %v1048_v21, %v1076_v48  ;;  %v2235_v46 = vld [vmem:[%s2488_s29 + $0x8] sm:$0xff]   ;;  %s2347_s29 = smov 24  }
 0x4a8   : > { %v1098_v53 = vmul.f32 1.442695, %v1085_v49  ;;  %v1100_v54 = vmul.f32 1.442695, %v1086_v50 }
 0x4a9   : > { %v1149_v55 = vpop.permute.xlu1 %1148  ;;  %v1079_v57 = vpop.xlane.xlu0 %1078 }
 0x4aa   : > { %2260 = vpow2.f32 %v1098_v53  ;;  %v1087_v58 = vsub.f32 %v1051_v25, %v1079_v57  ;;  %2093 = vmatpush3.bf16.msra.mxu1 %v1149_v55 }
 0x4ab   : > { %2262 = vpow2.f32 %v1100_v54  ;;  %2104 = vmatprep.subr.bf16.mxu1 %v2338_v17 }
 0x4ac   : > { %v1102_v59 = vmul.f32 1.442695, %v1087_v58  ;;  %v2255_v60 = vpop.eup %2254 }
 0x4ad   : > { %v1110_v61 = vsel %vm1055_vm4, %v2255_v60, 0.0  ;;  %v2257_v62 = vpop.eup %2256 }
 0x4ae   : > { %2264 = vpow2.f32 %v1102_v59  ;;  %1111 = vadd.xlane.f32.xlu1 %v1110_v61  ;;  %v1116_v1 = vsel %vm1055_vm4, %v2257_v62, 0.0 }
 0x4b0   : > { %v2259_v63 = vpop.eup %2258 }
 0x4b1   : > { %v1113_v0 = vsel %vm1055_vm4, %v2259_v63, 0.0 }
 0x4b2   : > { %1114 = vadd.xlane.f32.xlu0 %v1113_v0  ;;  %1117 = vadd.xlane.f32.xlu1 %v1116_v1 }
 0x4b4   : > { %v2261_v4 = vpop.eup %2260 }
 0x4b5   : > { %v2263_v5 = vpop.eup %2262  ;;  %v1119_v6 = vsel %vm1055_vm4, %v2261_v4, 0.0 }
 0x4b6   : > { %v1122_v7 = vsel %vm1055_vm4, %v2263_v5, 0.0  ;;  %1120 = vadd.xlane.f32.xlu0 %v1119_v6 }
 0x4b7   : > { %1123 = vadd.xlane.f32.xlu1 %v1122_v7 }
 0x4b8   : > { %v2265_v8 = vpop.eup %2264 }
 0x4b9   : > { %v1125_v9 = vsel %vm1055_vm4, %v2265_v8, 0.0 }
 0x4ba   : > { %1126 = vadd.xlane.f32.xlu0 %v1125_v9 }
 0x4c8   : > { %1242 = vrot.lane.b32.xlu1 %v2570_v51, %s2344_s13 }
 0x4cc   : > { %1289 = vrot.lane.b32.xlu1 %v2576_v56, %s2344_s13 }
 0x4ce   : > { %v1109_v10 = vpop.xlane.xlu0 %1108 }
 0x4cf   : > { %2266 = vrcp.f32 %v1109_v10 }
 0x4d0   : > { %1195 = vrot.lane.b32.xlu0 %v2572_v52, %s2344_s13 }
 0x4d9   : > { %v2267_v12 = vpop.eup %2266 }
 0x4da   : > { %v1106_v11 = vpop.xlane.xlu1 %1105  ;;  %v1131_v14 = vmul.f32 %v2267_v12, %v2251_v34 }
 0x4db   : > { %2268 = vrcp.f32 %v1106_v11 }
 0x4e5   : > { %v2269_v13 = vpop.eup %2268 }
 0x4e6   : > { %v1129_v15 = vmul.f32 %v2269_v13, %v2253_v36 }
 0x4e8   : > { %v1144_v16 = vpack.c.bf16 %v1131_v14, %v1129_v15 }
 0x4ea   : > { %2095 = vmatmul.mubr.msk.bf16.vlgmr.msra.gmra.mrb[4].mxu1 %vm1055_vm4, %v1144_v16 }
 0x4eb   : > { %2106 = vmatprep.mubr.msk.bf16.mxu1 %vm2339_vm2, %v2338_v17 }
 0x53b   : > { %v1112_v51 = vpop.xlane.xlu1 %1111 }
 0x53c   : > { %2270 = vrcp.f32 %v1112_v51  ;;  %v1992_v51 = vld [vmem:[%s2788_s18] ss:$0 sm:$0xff] }
 0x53f   : > { %v1115_v56 = vpop.xlane.xlu0 %1114  ;;  %v1118_v18 = vpop.xlane.xlu1 %1117 }
 0x540   : > { %2272 = vrcp.f32 %v1115_v56 }
 0x541   : > { %2274 = vrcp.f32 %v1118_v18 }
 0x543   : > { %v1121_v52 = vpop.xlane.xlu0 %1120 }
 0x544   : > { %v1124_v19 = vpop.xlane.xlu1 %1123  ;;  %2276 = vrcp.f32 %v1121_v52 }
 0x545   : > { %2278 = vrcp.f32 %v1124_v19 }
 0x546   : > { %v2271_v21 = vpop.eup %2270 }
 0x547   : > { %v1127_v20 = vpop.xlane.xlu0 %1126  ;;  %v1133_v24 = vmul.f32 %v2271_v21, %v2255_v60 }
 0x548   : > { %v1243_v22 = vpop.permute.xlu1 %1242  ;;  %2280 = vrcp.f32 %v1127_v20 }
 0x549   : > { %2105 = vmatpush3.bf16.msra.mxu1 %v1243_v22 }
 0x54a   : > { %v2273_v23 = vpop.eup %2272  ;;  %2116 = vmatprep.subr.bf16.mxu1 %v2338_v17 }
 0x54b   : > { %v1135_v25 = vmul.f32 %v2273_v23, %v2259_v63  ;;  %v1196_v26 = vpop.permute.xlu0 %1195  ;;  %v2275_v27 = vpop.eup %2274 }
 0x54c   : > { %2099 = vmatpush3.bf16.msra.mxu0 %v1196_v26  ;;  %v1137_v30 = vmul.f32 %v2275_v27, %v2257_v62  ;;  %v1290_v32 = vpop.permute.xlu1 %1289 }
 0x54d   : > { %v1145_v28 = vpack.c.bf16 %v1135_v25, %v1133_v24  ;;  %2110 = vmatprep.subr.bf16.mxu0 %v2338_v17 }
 0x54e   : > { %v2277_v29 = vpop.eup %2276 }
 0x54f   : > { %v1139_v31 = vmul.f32 %v2277_v29, %v2261_v4  ;;  %2101 = vmatmul.mubr.msk.bf16.vlgmr.msra.gmra.mrb[16].mxu0 %vm1055_vm4, %v1145_v28  ;;  %v2279_v33 = vpop.eup %2278 }
 0x550   : > { %2111 = vmatpush3.bf16.msra.mxu0 %v1290_v32  ;;  %2112 = vmatprep.mubr.msk.bf16.mxu0 %vm2339_vm2, %v2338_v17  ;;  %v1141_v36 = vmul.f32 %v2279_v33, %v2263_v5 }
 0x551   : > { %v1146_v34 = vpack.c.bf16 %v1139_v31, %v1137_v30  ;;  %2124 = vmatprep.subr.bf16.mxu0 %v2338_v17 }
 0x552   : > { %v2281_v35 = vpop.eup %2280 }
 0x553   : > { %v1143_v37 = vmul.f32 %v2281_v35, %v2265_v8  ;;  %2107 = vmatmul.mubr.msk.bf16.vlgmr.msra.gmra.mrb[8].mxu1 %vm1055_vm4, %v1146_v34  ;;  %v2236_v34 = vld [vmem:[%s2505_s19] sm:$0xff]   ;;  %v2237_v35 = vld [vmem:[%s2505_s19 + $0x8] sm:$0xff]   ;;  %s2790_s19 = scalar_lea.vmem %s2789_s30, %s2462_s25 }
 0x554   : > { %2120 = vmatprep.mubr.msk.bf16.mxu1 %vm2339_vm2, %v2338_v17  ;;  %2117 = vmatpush3.bf16.msra.mxu1 %v2234_v43 }
 0x555   : > { %v1147_v38 = vpack.c.bf16 %v1143_v37, %v1141_v36  ;;  %2118 = vmatprep.subr.bf16.mxu1 %v2338_v17 }
 0x557   : > { %2113 = vmatmul.mubr.msk.bf16.vlgmr.msra.gmra.mrb[20].mxu0 %vm1055_vm4, %v1147_v38 }
 0x558   : > { %2128 = vmatprep.mubr.msk.bf16.mxu0 %vm2339_vm2, %v2338_v17  ;;  %2119 = vmatpush3.bf16.msra.mxu1 %v2235_v46 }
 0x559   : > { %2132 = vmatprep.subr.bf16.mxu1 %v2338_v17  ;;  %2125 = vmatpush3.bf16.msra.mxu0 %v2236_v34 }
 0x55a   : > { %2126 = vmatprep.subr.bf16.mxu0 %v2338_v17 }
 0x55d   : > { %2127 = vmatpush3.bf16.msra.mxu0 %v2237_v35 }
 0x5bd   : > { %v1188_v39 = vpop.f32.mrb[4].mxu1 }
 0x5be   : > { %v2096_v40 = vpop.f32.mrb[5].mxu1 }
 0x5bf   : > { %v1191_v41 = vpop.f32.mrb[6].mxu1 }
 0x5c0   : > { %v2097_v42 = vpop.f32.mrb[7].mxu1 }
 0x622   : > { %v1235_v44 = vpop.f32.mrb[16].mxu0 }
 0x623   : > { %v2102_v45 = vpop.f32.mrb[17].mxu0 }
 0x624   : > { %v1238_v47 = vpop.f32.mrb[18].mxu0 }
 0x625   : > { %v2217_v48 = vpack.i.bf16 %v1238_v47, %v1235_v44  ;;  %v2103_v49 = vpop.f32.mrb[19].mxu0  ;;  %v1996_v44 = vld [vmem:[%s2790_s19] ss:$0 sm:$0xff] }
 0x626   : > { %v1282_v50 = vpop.f32.mrb[8].mxu1 }
 0x627   : > { %v2108_v53 = vpop.f32.mrb[9].mxu1  ;;  %2218 = vrot.lane.b32.xlu1 %v2217_v48, %s2345_s14  ;;  %v1997_v48 = vld [vmem:[%s2791_s26] ss:$0 sm:$0xff] }
 0x628   : > { %v1285_v54 = vpop.f32.mrb[10].mxu1 }
 0x629   : > { %v2222_v55 = vpack.i.bf16 %v1285_v54, %v1282_v50  ;;  %v2109_v57 = vpop.f32.mrb[11].mxu1 }
 0x62a   : > { %v1329_v58 = vpop.f32.mrb[20].mxu0  ;;  %v2239_v57 = vld [vmem:[%s2519_s7 + $0x8] sm:$0xff]  }
 0x62b   : > { %2223 = vrot.lane.b32.xlu0 %v2222_v55, %s2346_s22  ;;  %v2114_v59 = vpop.f32.mrb[21].mxu0  ;;  %v2238_v55 = vld [vmem:[%s2519_s7] sm:$0xff]   ;;  %s2794_s22 = sld [smem:[#allocation15_spill]] (!%p2011_p8) }
 0x62c   : > { %v1332_v60 = vpop.f32.mrb[22].mxu0  ;;  %v2241_v59 = vld [vmem:[%s2519_s7 + $0x18] sm:$0xff]  }
 0x62d   : > { %v2227_v61 = vpack.i.bf16 %v1332_v60, %v1329_v58  ;;  %v2115_v62 = vpop.f32.mrb[23].mxu0  ;;  %v2240_v58 = vld [vmem:[%s2519_s7 + $0x10] sm:$0xff]   ;;  %v2242_v60 = vld [vmem:[%s2519_s7 + $0x20] sm:$0xff]  }
 0x62e   : > { %v2244_v62 = vld [vmem:[%s2519_s7 + $0x30] sm:$0xff]  }
 0x62f   : > { %2228 = vrot.lane.b32.xlu1 %v2227_v61, %s2347_s29  ;;  %v2243_v61 = vld [vmem:[%s2519_s7 + $0x28] sm:$0xff]  }
 0x699   : > { %v2219_v63 = vpop.permute.xlu1 %2218 }
 0x69a   : > { %v2221_v1 = vunpack.i.h.bf16 %v2219_v63  ;;  %v2220_v4 = vunpack.i.l.bf16 %v2219_v63  ;;  %v2245_v63 = vld [vmem:[%s2519_s7 + $0x38] sm:$0xff]  }
 0x69c   : > { %v1361_v8 = vsel %vm857_vm3, %v1191_v41, %v2221_v1  ;;  %v1360_v9 = vsel %vm857_vm3, %v1188_v39, %v2220_v4 }
 0x69d   : > { %v2224_v0 = vpop.permute.xlu0 %2223 }
 0x69e   : > { %v2226_v5 = vunpack.i.h.bf16 %v2224_v0  ;;  %v2225_v6 = vunpack.i.l.bf16 %v2224_v0  ;;  %v1998_v0 = vld [vmem:[%s685_s11] ss:$0 sm:$0xff] }
 0x6a0   : > { %v1362_v12 = vsel %vm1055_vm4, %v1360_v9, %v2225_v6  ;;  %v1363_v13 = vsel %vm1055_vm4, %v1361_v8, %v2226_v5 }
 0x6a1   : > { %v2229_v7 = vpop.permute.xlu1 %2228 }
 0x6a2   : > { %v2231_v10 = vunpack.i.h.bf16 %v2229_v7  ;;  %v2230_v11 = vunpack.i.l.bf16 %v2229_v7 }
 0x6a4   : > { %v1366_v14 = vsel %vm1364_vm5, %v1363_v13, %v2231_v10  ;;  %v1365_v15 = vsel %vm1364_vm5, %v1362_v12, %v2230_v11 }
 0x6a5   : > { %v1367_v16 = vpack.c.bf16 %v1366_v14, %v1365_v15 }
 0x6a7   : > { %2121 = vmatmul.mubr.msk.bf16.vlgmr.msra.gmra.mrb[12].mxu1 %vm713_vm1, %v1367_v16 }
 0x6a8   : > { %2148 = vmatprep.mubr.msk.bf16.mxu1 %vm2339_vm2, %v2338_v17  ;;  %2133 = vmatpush3.bf16.msra.mxu1 %v2238_v55 }
 0x6a9   : > { %2134 = vmatprep.subr.bf16.mxu1 %v2338_v17 }
 0x6ac   : > { %2135 = vmatpush3.bf16.msra.mxu1 %v2239_v57 }
 0x6ad   : > { %2136 = vmatprep.subr.bf16.mxu1 %v2338_v17 }
 0x6b0   : > { %2137 = vmatpush3.bf16.msra.mxu1 %v2240_v58 }
 0x6b1   : > { %2138 = vmatprep.subr.bf16.mxu1 %v2338_v17 }
 0x6b4   : > { %2139 = vmatpush3.bf16.msra.mxu1 %v2241_v59 }
 0x6b5   : > { %2140 = vmatprep.subr.bf16.mxu1 %v2338_v17 }
 0x6b8   : > { %2141 = vmatpush3.bf16.msra.mxu1 %v2242_v60  ;;  %v2002_v60 = vld [vmem:[%s693_s21] ss:$0 sm:$0xff] }
 0x6b9   : > { %2142 = vmatprep.subr.bf16.mxu1 %v2338_v17 }
 0x6bc   : > { %2143 = vmatpush3.bf16.msra.mxu1 %v2243_v61 }
 0x6bd   : > { %2144 = vmatprep.subr.bf16.mxu1 %v2338_v17 }
 0x6c0   : > { %2145 = vmatpush3.bf16.msra.mxu1 %v2244_v62 }
 0x6c1   : > { %2146 = vmatprep.subr.bf16.mxu1 %v2338_v17 }
 0x6c4   : > { %2147 = vmatpush3.bf16.msra.mxu1 %v2245_v63 }
 0x77a   : > { %v1423_v56 = vpop.f32.mrb[12].mxu1 }
 0x77b   : > { %v1424_v18 = vadd.f32 %v1992_v51, %v1423_v56  ;;  %v2122_v52 = vpop.f32.mrb[13].mxu1 }
 0x77c   : > { %v1426_v19 = vpop.f32.mrb[14].mxu1 }
 0x77d   : > { %v2660_v20 = vadd.f32 %v1424_v18, %v2527_v2  ;;  %v1427_v21 = vadd.f32 %v1992_v51, %v1426_v19  ;;  %v2123_v22 = vpop.f32.mrb[15].mxu1 }
 0x77f   : > { %v2663_v23 = vadd.f32 %v1427_v21, %v2529_v3  ;;  %v1434_v24 = vsel %vm713_vm1, %v2660_v20, 0.0 }
 0x780   : > { %1435 = vadd.xlane.f32.xlu0 %v1434_v24 }
 0x781   : > { %v1437_v25 = vsel %vm713_vm1, %v2663_v23, 0.0 }
 0x782   : > { %1438 = vadd.xlane.f32.xlu1 %v1437_v25 }
 0x80d   : > { %v1436_v26 = vpop.xlane.xlu0 %1435 }
 0x80e   : > { %v1440_v27 = vmul.f32 0.03125, %v1436_v26 }
 0x80f   : > { %v1439_v28 = vpop.xlane.xlu1 %1438 }
 0x810   : > { %v1442_v2 = vsub.f32 %v2660_v20, %v1440_v27  ;;  %v1441_v29 = vmul.f32 0.03125, %v1439_v28 }
 0x812   : > { %v1443_v30 = vsub.f32 %v2663_v23, %v1441_v29  ;;  %v1444_v3 = vmul.f32 %v1442_v2, %v1442_v2 }
 0x814   : > { %v1446_v31 = vsel %vm713_vm1, %v1444_v3, 0.0  ;;  %v1445_v32 = vmul.f32 %v1443_v30, %v1443_v30 }
 0x815   : > { %1447 = vadd.xlane.f32.xlu0 %v1446_v31 }
 0x816   : > { %v1449_v33 = vsel %vm713_vm1, %v1445_v32, 0.0 }
 0x819   : > { %1450 = vadd.xlane.f32.xlu0 %v1449_v33 }
 0x8a2   : > { %v1448_v36 = vpop.xlane.xlu0 %1447 }
 0x8a3   : > { %v1452_v37 = vmul.f32 0.03125, %v1448_v36 }
 0x8a5   : > { %v1454_v38 = vadd.f32 1e-05, %v1452_v37 }
 0x8a6   : > { %v1451_v39 = vpop.xlane.xlu0 %1450 }
 0x8a7   : > { %2282 = vrsqrt.f32 %v1454_v38  ;;  %v1453_v40 = vmul.f32 0.03125, %v1451_v39 }
 0x8a9   : > { %v1455_v41 = vadd.f32 1e-05, %v1453_v40 }
 0x8ab   : > { %2284 = vrsqrt.f32 %v1455_v41 }
 0x8b1   : > { %v2283_v42 = vpop.eup %2282 }
 0x8b2   : > { %v1458_v43 = vmul.f32 %v2283_v42, %v1442_v2 }
 0x8b4   : > { %v1466_v46 = vmul.f32 %v1996_v44, %v1458_v43 }
 0x8b5   : > { %v2285_v45 = vpop.eup %2284 }
 0x8b6   : > { %v1459_v47 = vmul.f32 %v2285_v45, %v1443_v30  ;;  %v1474_v50 = vadd.f32 %v1997_v48, %v1466_v46 }
 0x8b8   : > { %v1467_v49 = vmul.f32 %v1996_v44, %v1459_v47 }
 0x8ba   : > { %v1475_v53 = vadd.f32 %v1997_v48, %v1467_v49 }
 0x8bc   : > { %v1498_v54 = vpack.c.bf16 %v1475_v53, %v1474_v50 }
 0x8be   : > { %2129 = vmatmul.mubr.msk.bf16.vlgmr.msra.gmra.mrb[24].mxu0 %vm713_vm1, %v1498_v54 }
 0x991   : > { %v1554_v1 = vpop.f32.mrb[24].mxu0 }
 0x992   : > { %v1555_v4 = vadd.f32 %v1998_v0, %v1554_v1  ;;  %v2130_v5 = vpop.f32.mrb[25].mxu0 }
 0x993   : > { %v1557_v6 = vpop.f32.mrb[26].mxu0 }
 0x994   : > { %v1563_v7 = vmul.f32 0.70710677, %v1555_v4  ;;  %v1558_v8 = vadd.f32 %v1998_v0, %v1557_v6  ;;  %v2131_v9 = vpop.f32.mrb[27].mxu0  ;;  %v1561_v53 = vmul.f32 0.5, %v1555_v4 }
 0x996   : > { %v1565_v10 = vand.u32 2147483647, %v1563_v7  ;;  %v1564_v11 = vmul.f32 0.70710677, %v1558_v8  ;;  %vm1605_vm6 = vcmp.lt.f32.partialorder %v1563_v7, 0.0  ;;  %v1562_v54 = vmul.f32 0.5, %v1558_v8 }
 0x998   : > { %v1567_v12 = vmul.f32 0.3275911, %v1565_v10  ;;  %v1566_v13 = vand.u32 2147483647, %v1564_v11  ;;  %v1593_v16 = vsub.f32 0.0, %v1565_v10  ;;  %vm1606_vm7 = vcmp.lt.f32.partialorder %v1564_v11, 0.0 }
 0x99a   : > { %v1569_v14 = vadd.f32 1.0, %v1567_v12  ;;  %v1568_v17 = vmul.f32 0.3275911, %v1566_v13  ;;  %v1594_v51 = vsub.f32 0.0, %v1566_v13  ;;  %v1595_v18 = vmul.f32 %v1593_v16, %v1565_v10 }
 0x99c   : > { %2286 = vrcp.f32 %v1569_v14  ;;  %v1570_v15 = vadd.f32 1.0, %v1568_v17  ;;  %v1596_v22 = vmul.f32 %v1594_v51, %v1566_v13  ;;  %v1597_v24 = vmul.f32 1.442695, %v1595_v18 }
 0x99e   : > { %2288 = vrcp.f32 %v1570_v15  ;;  %v1599_v2 = vmul.f32 1.442695, %v1596_v22  ;;  %v2012_v22 = vld [vmem:[%s2793_s23] ss:$0 sm:$0xff] (!%p2011_p8) }
 0x99f   : > { %2290 = vpow2.f32 %v1597_v24 }
 0x9a0   : > { %2292 = vpow2.f32 %v1599_v2 }
 0x9a6   : > { %v2287_v56 = vpop.eup %2286 }
 0x9a7   : > { %v1575_v52 = vmul.f32 1.0614054, %v2287_v56 }
 0x9a8   : > { %v2289_v19 = vpop.eup %2288 }
 0x9a9   : > { %v1577_v21 = vadd.f32 -1.4531521, %v1575_v52  ;;  %v1576_v25 = vmul.f32 1.0614054, %v2289_v19  ;;  %v2291_v38 = vpop.eup %2290 }
 0x9aa   : > { %v2293_v42 = vpop.eup %2292 }
 0x9ab   : > { %v1579_v26 = vmul.f32 %v2287_v56, %v1577_v21  ;;  %v1578_v27 = vadd.f32 -1.4531521, %v1576_v25  ;;  %v2013_v25 = vld [vmem:[%s2794_s22] ss:$0 sm:$0xff] (!%p2011_p8) }
 0x9ad   : > { %v1581_v28 = vadd.f32 1.4214138, %v1579_v26  ;;  %v1580_v29 = vmul.f32 %v2289_v19, %v1578_v27 }
 0x9af   : > { %v1583_v30 = vmul.f32 %v2287_v56, %v1581_v28  ;;  %v1582_v3 = vadd.f32 1.4214138, %v1580_v29 }
 0x9b1   : > { %v1585_v31 = vadd.f32 -0.28449672, %v1583_v30  ;;  %v1584_v32 = vmul.f32 %v2289_v19, %v1582_v3 }
 0x9b3   : > { %v1587_v33 = vmul.f32 %v2287_v56, %v1585_v31  ;;  %v1586_v34 = vadd.f32 -0.28449672, %v1584_v32 }
 0x9b5   : > { %v1589_v35 = vadd.f32 0.2548296, %v1587_v33  ;;  %v1588_v36 = vmul.f32 %v2289_v19, %v1586_v34 }
 0x9b7   : > { %v1591_v37 = vmul.f32 %v2287_v56, %v1589_v35  ;;  %v1590_v39 = vadd.f32 0.2548296, %v1588_v36 }
 0x9b9   : > { %v1601_v40 = vmul.f32 %v2291_v38, %v1591_v37  ;;  %v1592_v41 = vmul.f32 %v2289_v19, %v1590_v39 }
 0x9bb   : > { %v1603_v43 = vsub.f32 1.0, %v1601_v40  ;;  %v1602_v44 = vmul.f32 %v2293_v42, %v1592_v41 }
 0x9bd   : > { %v1607_v45 = vsub.f32 0.0, %v1603_v43  ;;  %v1604_v46 = vsub.f32 1.0, %v1602_v44 }
 0x9bf   : > { %v1609_v47 = vsel %vm1605_vm6, %v1607_v45, %v1603_v43  ;;  %v1608_v48 = vsub.f32 0.0, %v1604_v46 }
 0x9c0   : > { %v1611_v49 = vadd.f32 1.0, %v1609_v47 }
 0x9c1   : > { %v1610_v50 = vsel %vm1606_vm7, %v1608_v48, %v1604_v46 }
 0x9c2   : > { %v1612_v55 = vadd.f32 1.0, %v1610_v50  ;;  %v1613_v57 = vmul.f32 %v1611_v49, %v1561_v53 }
 0x9c4   : > { %v1614_v58 = vmul.f32 %v1612_v55, %v1562_v54 }
 0x9c6   : > { %v1615_v59 = vpack.c.bf16 %v1614_v58, %v1613_v57 }
 0x9c8   : > { %2149 = vmatmul.mubr.bf16.vlgmr.msra.gmra.mrb[16].mxu1 %v1615_v59 }
 0xa9b   : > { %v1704_v61 = vpop.f32.mrb[16].mxu1 }
 0xa9c   : > { %v1705_v62 = vadd.f32 %v2002_v60, %v1704_v61  ;;  %v2150_v63 = vpop.f32.mrb[17].mxu1  ;;  %1718 = sbr.rel (%p2011_p8) target bundleno = 3040 (0xbe0), region = 88 }
 0xa9d   : > { %v1707_v0 = vpop.f32.mrb[18].mxu1 }
 0xa9e   : > { %v1711_v1 = vadd.f32 %v1705_v62, %v2660_v20  ;;  %v1708_v5 = vadd.f32 %v2002_v60, %v1707_v0  ;;  %v2151_v6 = vpop.f32.mrb[19].mxu1 }
 0xaa0   : > { %1713 = vst.msk [vmem:[#allocation2] sm:$0xff] %vm713_vm1, %v1711_v1  ;;  %v1712_v4 = vadd.f32 %v1708_v5, %v2663_v23  ;;  %v1721_v7 = vsel (!%p2011_p8), %vm713_vm1, %v1711_v1, 0.0 }
 0xaa1   : > { %1722 = vadd.xlane.f32.xlu0 (!%p2011_p8), %v1721_v7 }
 0xaa2   : > { %1714 = vst.msk [vmem:[#allocation2 + $0x8] sm:$0xff] %vm713_vm1, %v1712_v4  ;;  %v1724_v8 = vsel (!%p2011_p8), %vm713_vm1, %v1712_v4, 0.0 }
 0xaa5   : > { %1725 = vadd.xlane.f32.xlu0 %v1724_v8 }
 0xb2e   : > { %v1723_v9 = vpop.xlane.xlu0 %1722 }
 0xb2f   : > { %v1727_v10 = vmul.f32 0.03125, %v1723_v9 }
 0xb31   : > { %v1729_v20 = vsub.f32 %v1711_v1, %v1727_v10 }
 0xb32   : > { %v1726_v11 = vpop.xlane.xlu0 %1725 }
 0xb33   : > { %v1728_v12 = vmul.f32 0.03125, %v1726_v11  ;;  %v1731_v13 = vmul.f32 %v1729_v20, %v1729_v20 }
 0xb35   : > { %v1730_v14 = vsub.f32 %v1712_v4, %v1728_v12  ;;  %v1733_v23 = vsel %vm713_vm1, %v1731_v13, 0.0 }
 0xb36   : > { %1734 = vadd.xlane.f32.xlu1 %v1733_v23 }
 0xb37   : > { %v1732_v17 = vmul.f32 %v1730_v14, %v1730_v14 }
 0xb39   : > { %v1736_v15 = vsel %vm713_vm1, %v1732_v17, 0.0 }
 0xb3a   : > { %1737 = vadd.xlane.f32.xlu1 %v1736_v15 }
 0xbc3   : > { %v1735_v16 = vpop.xlane.xlu1 %1734 }
 0xbc4   : > { %v1739_v51 = vmul.f32 0.03125, %v1735_v16 }
 0xbc6   : > { %v1741_v56 = vadd.f32 1e-05, %v1739_v51 }
 0xbc7   : > { %v1738_v18 = vpop.xlane.xlu1 %1737 }
 0xbc8   : > { %2294 = vrsqrt.f32 %v1741_v56  ;;  %v1740_v52 = vmul.f32 0.03125, %v1738_v18 }
 0xbca   : > { %v1742_v19 = vadd.f32 1e-05, %v1740_v52 }
 0xbcc   : > { %2296 = vrsqrt.f32 %v1742_v19 }
 0xbd2   : > { %v2295_v21 = vpop.eup %2294 }
 0xbd3   : > { %v1745_v24 = vmul.f32 %v2295_v21, %v1729_v20 }
 0xbd5   : > { %v1753_v26 = vmul.f32 %v2012_v22, %v1745_v24 }
 0xbd6   : > { %v2297_v27 = vpop.eup %2296 }
 0xbd7   : > { %v1761_v28 = vadd.f32 %v2013_v25, %v1753_v26  ;;  %v1746_v2 = vmul.f32 %v2297_v27, %v1730_v14 }
 0xbd9   : > { %v2024_v29 = vpack.c.bf16 %v1761_v28, %v1761_v28  ;;  %v1754_v30 = vmul.f32 %v2012_v22, %v1746_v2 }
 0xbdb   : > { %1772 = vst.msk [vmem:[%s2524_s3] sm:$0xf] %vm1771_vm8, %v2024_v29  ;;  %v1762_v3 = vadd.f32 %v2013_v25, %v1754_v30 }
 0xbdd   : > { %v2025_v31 = vpack.c.bf16 %v1762_v3, %v1762_v3 }
 0xbdf   : > { %1773 = vst.msk [vmem:[%s2524_s3 + $0x4] sm:$0xf] %vm1771_vm8, %v2025_v31 }
 0xbe0 PF: > { %s2795_s29 = sld [smem:[#allocation6_spill]]  ;;  %s2796_s18 = sld [smem:[#allocation4_spill]] }
 0xbe1   : > { %s2797_s19 = sld [smem:[#allocation5_spill]]  ;;  %s2798_s20 = sld [smem:[#allocation7_spill]] }
 0xbe2   : > { %s2799_s21 = sld [smem:[#allocation8_spill]] }
 0xbe6   : > { %s25_s22 = sadd.s32 1, %s2795_s29  }
 0xbe7   : > { %p22_p9 = scmp.ge.s32.totalorder %s25_s22, 6  }
 0xbe9   :  { %24 = sbr.rel (!%p22_p9) target bundleno = 9 (0x9), region = 154 }

</bundles_post_ra>
